<compile_context>
chip_gen: v5e
topology: v5e:2x2
jax: 0.10.0
libtpu: 0.0.40
codegen_flags: <defaults>
</compile_context>

<pallas_src>
import functools

import jax
import jax.numpy as jnp
from jax.experimental import pallas as pl
from jax.experimental.pallas import tpu as pltpu


# model dims (small, synthetic)
C_IN, C_STEM, C_EXP, C_SE, C_PROJ = 3, 16, 64, 8, 24
NUM_FEATURES = 128        # analogue of base_model.num_features (1280 for b0)
NUM_CLASSES = 10
PADDED_CLASSES = 128      # lane-dense output slab; sliced to NUM_CLASSES in wrapper
K_STEM = 32               # 9*C_IN = 27 zero-padded to 32 (aligned K)
BN_EPS = 1e-5             # nn.BatchNorm1d default
CONV_BN_EPS = 1e-3        # timm BatchNorm2d eps


# ---------------------------------------------------------------------------
# Single fused kernel
# ---------------------------------------------------------------------------
def _fused_kernel(
    p_ref,                               # (M, K_STEM)           bf16  stem im2col patches
    stem_w_ref, stem_b_ref,              # (K_STEM, C_STEM) bf16, (1, C_STEM) f32
    exp_w_ref, exp_b_ref,                # (C_STEM, C_EXP)  bf16, (1, C_EXP) f32
    dw_w_ref, dw_s_ref, dw_b_ref,        # (9, C_EXP) f32, (1, C_EXP) f32 x2
    se1_w_ref, se1_b_ref,                # (C_EXP, C_SE) bf16, (1, C_SE) f32
    se2_w_ref, se2_b_ref,                # (C_SE, C_EXP) bf16, (1, C_EXP) f32
    proj_w_ref, proj_b_ref,              # (C_EXP, C_PROJ) bf16, (1, C_PROJ) f32
    head_w_ref, head_b_ref,              # (C_PROJ, NUM_FEATURES) bf16, (1, NUM_FEATURES) f32
    bn_g_ref, bn_b_ref, bn_m_ref, bn_v_ref,   # (1, NUM_FEATURES) f32 each
    fc_w_ref, fc_b_ref,                  # (NUM_FEATURES, PADDED_CLASSES) bf16, (1, PADDED_CLASSES) f32
    out_ref,                             # (N, PADDED_CLASSES) f32
    xpad_ref,                            # scratch: (N, H+2, W+2, C_EXP) f32
    *, n, h, w, eps,
):
    f32 = jnp.float32
    bf16 = jnp.bfloat16
    inv_hw = 1.0 / (h * w)

    def silu(v):
        return v * jax.nn.sigmoid(v)

    def mm(x, w_ref, b_ref):
        # MXU matmul on bf16 operands, f32 accumulate; elementwise stays f32.
        return (jnp.dot(x.astype(bf16), w_ref[...], preferred_element_type=f32)
                + b_ref[...])

    # ---- stem conv3x3/s2 (+ folded BN) + SiLU, as a single MXU matmul ----
    x = silu(mm(p_ref[...], stem_w_ref, stem_b_ref))          # (M, C_STEM)

    # ---- MBConv: expand 1x1 (+ folded BN) + SiLU ----
    x = silu(mm(x, exp_w_ref, exp_b_ref))                     # (M, C_EXP)

    # ---- depthwise 3x3, stride 1, pad 1 (+ folded BN) + SiLU ----
    xpad_ref[...] = jnp.zeros_like(xpad_ref)
    xpad_ref[:, 1:h + 1, 1:w + 1, :] = x.reshape(n, h, w, C_EXP)
    acc = jnp.zeros((n, h, w, C_EXP), f32)
    for dh in range(3):
        for dw in range(3):
            acc = acc + (xpad_ref[:, dh:dh + h, dw:dw + w, :]
                         * dw_w_ref[dh * 3 + dw, :])
    y = silu(acc * dw_s_ref[...] + dw_b_ref[...])             # (N, H, W, C_EXP)

    # ---- squeeze-excite: GAP -> FC -> SiLU -> FC -> sigmoid -> scale ----
    s = jnp.sum(y, axis=(1, 2)) * inv_hw                      # (N, C_EXP)
    s = silu(mm(s, se1_w_ref, se1_b_ref))                     # (N, C_SE)
    s = jax.nn.sigmoid(mm(s, se2_w_ref, se2_b_ref))           # (N, C_EXP)
    y = y * s[:, None, None, :]

    # ---- project 1x1 (+ folded BN, no activation) ----
    x = mm(y.reshape(n * h * w, C_EXP), proj_w_ref, proj_b_ref)   # (M, C_PROJ)

    # ---- head conv 1x1 (+ folded BN) + SiLU ----
    x = silu(mm(x, head_w_ref, head_b_ref))                   # (M, NUM_FEATURES)

    # ---- global average pool over H*W per image ----
    feats = jnp.sum(x.reshape(n, h * w, NUM_FEATURES), axis=1) * inv_hw   # (N, F)

    # ---- BatchNorm1d (eval, running stats) + Dropout(eval = identity) + Linear ----
    z = (feats - bn_m_ref[...]) * jax.lax.rsqrt(bn_v_ref[...] + eps)
    z = z * bn_g_ref[...] + bn_b_ref[...]
    out = mm(z, fc_w_ref, fc_b_ref)                           # (N, PADDED_CLASSES)
    out_ref[...] = out.astype(out_ref.dtype)


# ---------------------------------------------------------------------------
# JAX glue
# ---------------------------------------------------------------------------
def im2col_3x3(x, stride, pad):
    """NHWC 3x3 patch extraction; column layout index = (dh*3+dw)*C + c."""
    N, H, W, C = x.shape
    xp = jnp.pad(x, ((0, 0), (pad, pad), (pad, pad), (0, 0)))
    Ho = (H + 2 * pad - 3) // stride + 1
    Wo = (W + 2 * pad - 3) // stride + 1
    cols = []
    for dh in range(3):
        for dw in range(3):
            cols.append(xp[:, dh:dh + stride * Ho:stride, dw:dw + stride * Wo:stride, :])
    p = jnp.concatenate(cols, axis=-1)
    return p.reshape(N * Ho * Wo, 9 * C), (N, Ho, Wo)


def init_params(key):
    ks = jax.random.split(key, 10)

    def w(k, shape, scale=0.1):
        return scale * jax.random.normal(k, shape, jnp.float32)

    # Conv BNs are folded (init: gamma=1, beta=0, mean=0, var=1).
    bn_scale = 1.0 / jnp.sqrt(1.0 + CONV_BN_EPS)

    # stem conv weight: PyTorch (Cout, Cin, 3, 3) -> im2col (9*Cin, Cout), K padded to 32
    stem_w = w(ks[0], (C_STEM, C_IN, 3, 3))
    stem_w = jnp.transpose(stem_w, (2, 3, 1, 0)).reshape(9 * C_IN, C_STEM) * bn_scale
    stem_w = jnp.pad(stem_w, ((0, K_STEM - 9 * C_IN), (0, 0)))

    # depthwise weight: PyTorch (C, 1, 3, 3) -> (9, C)
    dw = w(ks[2], (C_EXP, 3, 3))
    dw = jnp.transpose(dw, (1, 2, 0)).reshape(9, C_EXP)

    # final Linear, class dim zero-padded to a lane-dense 128 slab
    fc_w = jnp.pad(w(ks[7], (NUM_FEATURES, NUM_CLASSES)),
                   ((0, 0), (0, PADDED_CLASSES - NUM_CLASSES)))
    fc_b = jnp.pad(w(ks[8], (1, NUM_CLASSES), scale=0.01),
                   ((0, 0), (0, PADDED_CLASSES - NUM_CLASSES)))

    bf = lambda a: a.astype(jnp.bfloat16)     # MXU operands stored bf16

    return {
        "stem_w": bf(stem_w),
        "stem_b": jnp.zeros((1, C_STEM), jnp.float32),
        "exp_w": bf(w(ks[1], (C_STEM, C_EXP)) * bn_scale),
        "exp_b": jnp.zeros((1, C_EXP), jnp.float32),
        "dw_w": dw,                                              # f32 (VPU path)
        "dw_scale": jnp.full((1, C_EXP), bn_scale, jnp.float32),
        "dw_bias": jnp.zeros((1, C_EXP), jnp.float32),
        "se1_w": bf(w(ks[3], (C_EXP, C_SE))),
        "se1_b": jnp.zeros((1, C_SE), jnp.float32),
        "se2_w": bf(w(ks[4], (C_SE, C_EXP))),
        "se2_b": jnp.zeros((1, C_EXP), jnp.float32),
        "proj_w": bf(w(ks[5], (C_EXP, C_PROJ)) * bn_scale),
        "proj_b": jnp.zeros((1, C_PROJ), jnp.float32),
        "head_w": bf(w(ks[6], (C_PROJ, NUM_FEATURES)) * bn_scale),
        "head_b": jnp.zeros((1, NUM_FEATURES), jnp.float32),
        # head BatchNorm1d (running stats, eval mode)
        "bn_gamma": jnp.ones((1, NUM_FEATURES), jnp.float32),
        "bn_beta": jnp.zeros((1, NUM_FEATURES), jnp.float32),
        "bn_mean": jnp.zeros((1, NUM_FEATURES), jnp.float32),
        "bn_var": jnp.ones((1, NUM_FEATURES), jnp.float32),
        "fc_w": bf(fc_w),
        "fc_b": fc_b,
    }


def efficientnet_vehicle_forward(params, x_nchw):
    # NCHW (PyTorch convention) -> NHWC so channels sit on the lane dim.
    x = jnp.transpose(x_nchw, (0, 2, 3, 1)).astype(jnp.float32)
    N = x.shape[0]

    # Stem im2col (tiny at these shapes) stays in the wrapper; K padded 27 -> 32.
    p, (_, Ho, Wo) = im2col_3x3(x, stride=2, pad=1)
    p = jnp.pad(p, ((0, 0), (0, K_STEM - p.shape[1]))).astype(jnp.bfloat16)

    out = pl.pallas_call(
        functools.partial(_fused_kernel, n=N, h=Ho, w=Wo, eps=BN_EPS),
        out_shape=jax.ShapeDtypeStruct((N, PADDED_CLASSES), jnp.float32),
        scratch_shapes=[pltpu.VMEM((N, Ho + 2, Wo + 2, C_EXP), jnp.float32)],
    )(
        p,
        params["stem_w"], params["stem_b"],
        params["exp_w"], params["exp_b"],
        params["dw_w"], params["dw_scale"], params["dw_bias"],
        params["se1_w"], params["se1_b"],
        params["se2_w"], params["se2_b"],
        params["proj_w"], params["proj_b"],
        params["head_w"], params["head_b"],
        params["bn_gamma"], params["bn_beta"], params["bn_mean"], params["bn_var"],
        params["fc_w"], params["fc_b"],
    )
    return out[:, :NUM_CLASSES]


if __name__ == "__main__":
    key = jax.random.PRNGKey(0)
    pkey, xkey = jax.random.split(key)
    params = init_params(pkey)
    x = jax.random.normal(xkey, (2, 3, 16, 16), jnp.float32)  # NCHW input images

    fwd = jax.jit(efficientnet_vehicle_forward)
    out = fwd(params, x)
    jax.block_until_ready(out)
    assert out.shape == (2, NUM_CLASSES), out.shape
    assert bool(jnp.all(jnp.isfinite(out)))
    print("KERNEL_OK")
</pallas_src>

<mosaic_0001>
module attributes {stable_mosaic.version = 11 : i64} {
  func.func @_fused_kernel(%arg0: memref<128x32xbf16, #tpu.memory_space<vmem>>, %arg1: memref<32x16xbf16, #tpu.memory_space<vmem>>, %arg2: memref<1x16xf32, #tpu.memory_space<vmem>>, %arg3: memref<16x64xbf16, #tpu.memory_space<vmem>>, %arg4: memref<1x64xf32, #tpu.memory_space<vmem>>, %arg5: memref<9x64xf32, #tpu.memory_space<vmem>>, %arg6: memref<1x64xf32, #tpu.memory_space<vmem>>, %arg7: memref<1x64xf32, #tpu.memory_space<vmem>>, %arg8: memref<64x8xbf16, #tpu.memory_space<vmem>>, %arg9: memref<1x8xf32, #tpu.memory_space<vmem>>, %arg10: memref<8x64xbf16, #tpu.memory_space<vmem>>, %arg11: memref<1x64xf32, #tpu.memory_space<vmem>>, %arg12: memref<64x24xbf16, #tpu.memory_space<vmem>>, %arg13: memref<1x24xf32, #tpu.memory_space<vmem>>, %arg14: memref<24x128xbf16, #tpu.memory_space<vmem>>, %arg15: memref<1x128xf32, #tpu.memory_space<vmem>>, %arg16: memref<1x128xf32, #tpu.memory_space<vmem>>, %arg17: memref<1x128xf32, #tpu.memory_space<vmem>>, %arg18: memref<1x128xf32, #tpu.memory_space<vmem>>, %arg19: memref<1x128xf32, #tpu.memory_space<vmem>>, %arg20: memref<128x128xbf16, #tpu.memory_space<vmem>>, %arg21: memref<1x128xf32, #tpu.memory_space<vmem>>, %arg22: memref<2x128xf32, #tpu.memory_space<vmem>>, %arg23: memref<2x10x10x64xf32, #tpu.memory_space<vmem>>) attributes {dimension_semantics = [], scalar_prefetch = 0 : i64, scratch_operands = 1 : i64, tpu.core_type = #tpu.core_type<tc>} {
    %c0 = arith.constant 0 : index
    %c0_0 = arith.constant 0 : index
    %0 = vector.load %arg0[%c0, %c0_0] : memref<128x32xbf16, #tpu.memory_space<vmem>>, vector<128x32xbf16>
    %c0_1 = arith.constant 0 : index
    %c0_2 = arith.constant 0 : index
    %1 = vector.load %arg1[%c0_1, %c0_2] : memref<32x16xbf16, #tpu.memory_space<vmem>>, vector<32x16xbf16>
    %cst = arith.constant dense<0.000000e+00> : vector<128x16xf32>
    %2 = tpu.matmul %0, %1, %cst {dimension_numbers = #tpu.dot_dimension_numbers<[1], [0], [0], [1], [0, 0, 1, 1], [], []>} : vector<128x32xbf16>, vector<32x16xbf16>, vector<128x16xf32> -> vector<128x16xf32>
    %c0_3 = arith.constant 0 : index
    %c0_4 = arith.constant 0 : index
    %3 = vector.load %arg2[%c0_3, %c0_4] : memref<1x16xf32, #tpu.memory_space<vmem>>, vector<1x16xf32>
    %4 = vector.broadcast %3 : vector<1x16xf32> to vector<128x16xf32>
    %5 = arith.addf %2, %4 : vector<128x16xf32>
    %6 = arith.negf %5 : vector<128x16xf32>
    %7 = math.exp %6 : vector<128x16xf32>
    %cst_5 = arith.constant 1.000000e+00 : f32
    %8 = vector.broadcast %cst_5 : f32 to vector<128x16xf32>
    %9 = arith.addf %8, %7 : vector<128x16xf32>
    %10 = arith.divf %8, %9 : vector<128x16xf32>
    %11 = arith.mulf %5, %10 : vector<128x16xf32>
    %12 = arith.truncf %11 : vector<128x16xf32> to vector<128x16xbf16>
    %c0_6 = arith.constant 0 : index
    %c0_7 = arith.constant 0 : index
    %13 = vector.load %arg3[%c0_6, %c0_7] : memref<16x64xbf16, #tpu.memory_space<vmem>>, vector<16x64xbf16>
    %cst_8 = arith.constant dense<0.000000e+00> : vector<128x64xf32>
    %14 = tpu.matmul %12, %13, %cst_8 {dimension_numbers = #tpu.dot_dimension_numbers<[1], [0], [0], [1], [0, 0, 1, 1], [], []>} : vector<128x16xbf16>, vector<16x64xbf16>, vector<128x64xf32> -> vector<128x64xf32>
    %c0_9 = arith.constant 0 : index
    %c0_10 = arith.constant 0 : index
    %15 = vector.load %arg4[%c0_9, %c0_10] : memref<1x64xf32, #tpu.memory_space<vmem>>, vector<1x64xf32>
    %16 = vector.broadcast %15 : vector<1x64xf32> to vector<128x64xf32>
    %17 = arith.addf %14, %16 : vector<128x64xf32>
    %18 = arith.negf %17 : vector<128x64xf32>
    %19 = math.exp %18 : vector<128x64xf32>
    %cst_11 = arith.constant 1.000000e+00 : f32
    %20 = vector.broadcast %cst_11 : f32 to vector<128x64xf32>
    %21 = arith.addf %20, %19 : vector<128x64xf32>
    %22 = arith.divf %20, %21 : vector<128x64xf32>
    %23 = arith.mulf %17, %22 : vector<128x64xf32>
    %cst_12 = arith.constant 0.000000e+00 : f32
    %24 = vector.broadcast %cst_12 : f32 to vector<2x10x10x64xf32>
    %c0_13 = arith.constant 0 : index
    %c0_14 = arith.constant 0 : index
    %c0_15 = arith.constant 0 : index
    %c0_16 = arith.constant 0 : index
    %25 = vector.load %arg23[%c0_13, %c0_14, %c0_15, %c0_16] : memref<2x10x10x64xf32, #tpu.memory_space<vmem>>, vector<2x10x10x64xf32>
    tpu.vector_store %arg23[%c0_13, %c0_14, %c0_15, %c0_16], %24 {strides = array<i32>} : memref<2x10x10x64xf32, #tpu.memory_space<vmem>>, vector<2x10x10x64xf32>,
    %26 = vector.shape_cast %23 : vector<128x64xf32> to vector<2x8x8x64xf32>
    %c0_17 = arith.constant 0 : index
    %c1 = arith.constant 1 : index
    %c1_18 = arith.constant 1 : index
    %c0_19 = arith.constant 0 : index
    %27 = vector.load %arg23[%c0_17, %c1, %c1_18, %c0_19] : memref<2x10x10x64xf32, #tpu.memory_space<vmem>>, vector<2x8x8x64xf32>
    tpu.vector_store %arg23[%c0_17, %c1, %c1_18, %c0_19], %26 {strides = array<i32>} : memref<2x10x10x64xf32, #tpu.memory_space<vmem>>, vector<2x8x8x64xf32>,
    %cst_20 = arith.constant 0.000000e+00 : f32
    %28 = vector.broadcast %cst_20 : f32 to vector<2x8x8x64xf32>
    %c0_21 = arith.constant 0 : index
    %c0_22 = arith.constant 0 : index
    %c0_23 = arith.constant 0 : index
    %c0_24 = arith.constant 0 : index
    %29 = vector.load %arg23[%c0_21, %c0_22, %c0_23, %c0_24] : memref<2x10x10x64xf32, #tpu.memory_space<vmem>>, vector<2x8x8x64xf32>
    %c0_25 = arith.constant 0 : index
    %c0_26 = arith.constant 0 : index
    %30 = vector.load %arg5[%c0_25, %c0_26] : memref<9x64xf32, #tpu.memory_space<vmem>>, vector<1x64xf32>
    %31 = vector.shape_cast %30 : vector<1x64xf32> to vector<64xf32>
    %32 = vector.shape_cast %31 : vector<64xf32> to vector<1x1x1x64xf32>
    %33 = vector.broadcast %32 : vector<1x1x1x64xf32> to vector<2x8x8x64xf32>
    %34 = arith.mulf %29, %33 : vector<2x8x8x64xf32>
    %35 = arith.addf %28, %34 : vector<2x8x8x64xf32>
    %c0_27 = arith.constant 0 : index
    %c0_28 = arith.constant 0 : index
    %c1_29 = arith.constant 1 : index
    %c0_30 = arith.constant 0 : index
    %36 = vector.load %arg23[%c0_27, %c0_28, %c1_29, %c0_30] : memref<2x10x10x64xf32, #tpu.memory_space<vmem>>, vector<2x8x8x64xf32>
    %c1_31 = arith.constant 1 : index
    %c0_32 = arith.constant 0 : index
    %37 = vector.load %arg5[%c1_31, %c0_32] : memref<9x64xf32, #tpu.memory_space<vmem>>, vector<1x64xf32>
    %38 = vector.shape_cast %37 : vector<1x64xf32> to vector<64xf32>
    %39 = vector.shape_cast %38 : vector<64xf32> to vector<1x1x1x64xf32>
    %40 = vector.broadcast %39 : vector<1x1x1x64xf32> to vector<2x8x8x64xf32>
    %41 = arith.mulf %36, %40 : vector<2x8x8x64xf32>
    %42 = arith.addf %35, %41 : vector<2x8x8x64xf32>
    %c0_33 = arith.constant 0 : index
    %c0_34 = arith.constant 0 : index
    %c2 = arith.constant 2 : index
    %c0_35 = arith.constant 0 : index
    %43 = vector.load %arg23[%c0_33, %c0_34, %c2, %c0_35] : memref<2x10x10x64xf32, #tpu.memory_space<vmem>>, vector<2x8x8x64xf32>
    %c2_36 = arith.constant 2 : index
    %c0_37 = arith.constant 0 : index
    %44 = vector.load %arg5[%c2_36, %c0_37] : memref<9x64xf32, #tpu.memory_space<vmem>>, vector<1x64xf32>
    %45 = vector.shape_cast %44 : vector<1x64xf32> to vector<64xf32>
    %46 = vector.shape_cast %45 : vector<64xf32> to vector<1x1x1x64xf32>
    %47 = vector.broadcast %46 : vector<1x1x1x64xf32> to vector<2x8x8x64xf32>
    %48 = arith.mulf %43, %47 : vector<2x8x8x64xf32>
    %49 = arith.addf %42, %48 : vector<2x8x8x64xf32>
    %c0_38 = arith.constant 0 : index
    %c1_39 = arith.constant 1 : index
    %c0_40 = arith.constant 0 : index
    %c0_41 = arith.constant 0 : index
    %50 = vector.load %arg23[%c0_38, %c1_39, %c0_40, %c0_41] : memref<2x10x10x64xf32, #tpu.memory_space<vmem>>, vector<2x8x8x64xf32>
    %c3 = arith.constant 3 : index
    %c0_42 = arith.constant 0 : index
    %51 = vector.load %arg5[%c3, %c0_42] : memref<9x64xf32, #tpu.memory_space<vmem>>, vector<1x64xf32>
    %52 = vector.shape_cast %51 : vector<1x64xf32> to vector<64xf32>
    %53 = vector.shape_cast %52 : vector<64xf32> to vector<1x1x1x64xf32>
    %54 = vector.broadcast %53 : vector<1x1x1x64xf32> to vector<2x8x8x64xf32>
    %55 = arith.mulf %50, %54 : vector<2x8x8x64xf32>
    %56 = arith.addf %49, %55 : vector<2x8x8x64xf32>
    %c0_43 = arith.constant 0 : index
    %c1_44 = arith.constant 1 : index
    %c1_45 = arith.constant 1 : index
    %c0_46 = arith.constant 0 : index
    %57 = vector.load %arg23[%c0_43, %c1_44, %c1_45, %c0_46] : memref<2x10x10x64xf32, #tpu.memory_space<vmem>>, vector<2x8x8x64xf32>
    %c4 = arith.constant 4 : index
    %c0_47 = arith.constant 0 : index
    %58 = vector.load %arg5[%c4, %c0_47] : memref<9x64xf32, #tpu.memory_space<vmem>>, vector<1x64xf32>
    %59 = vector.shape_cast %58 : vector<1x64xf32> to vector<64xf32>
    %60 = vector.shape_cast %59 : vector<64xf32> to vector<1x1x1x64xf32>
    %61 = vector.broadcast %60 : vector<1x1x1x64xf32> to vector<2x8x8x64xf32>
    %62 = arith.mulf %57, %61 : vector<2x8x8x64xf32>
    %63 = arith.addf %56, %62 : vector<2x8x8x64xf32>
    %c0_48 = arith.constant 0 : index
    %c1_49 = arith.constant 1 : index
    %c2_50 = arith.constant 2 : index
    %c0_51 = arith.constant 0 : index
    %64 = vector.load %arg23[%c0_48, %c1_49, %c2_50, %c0_51] : memref<2x10x10x64xf32, #tpu.memory_space<vmem>>, vector<2x8x8x64xf32>
    %c5 = arith.constant 5 : index
    %c0_52 = arith.constant 0 : index
    %65 = vector.load %arg5[%c5, %c0_52] : memref<9x64xf32, #tpu.memory_space<vmem>>, vector<1x64xf32>
    %66 = vector.shape_cast %65 : vector<1x64xf32> to vector<64xf32>
    %67 = vector.shape_cast %66 : vector<64xf32> to vector<1x1x1x64xf32>
    %68 = vector.broadcast %67 : vector<1x1x1x64xf32> to vector<2x8x8x64xf32>
    %69 = arith.mulf %64, %68 : vector<2x8x8x64xf32>
    %70 = arith.addf %63, %69 : vector<2x8x8x64xf32>
    %c0_53 = arith.constant 0 : index
    %c2_54 = arith.constant 2 : index
    %c0_55 = arith.constant 0 : index
    %c0_56 = arith.constant 0 : index
    %71 = vector.load %arg23[%c0_53, %c2_54, %c0_55, %c0_56] : memref<2x10x10x64xf32, #tpu.memory_space<vmem>>, vector<2x8x8x64xf32>
    %c6 = arith.constant 6 : index
    %c0_57 = arith.constant 0 : index
    %72 = vector.load %arg5[%c6, %c0_57] : memref<9x64xf32, #tpu.memory_space<vmem>>, vector<1x64xf32>
    %73 = vector.shape_cast %72 : vector<1x64xf32> to vector<64xf32>
    %74 = vector.shape_cast %73 : vector<64xf32> to vector<1x1x1x64xf32>
    %75 = vector.broadcast %74 : vector<1x1x1x64xf32> to vector<2x8x8x64xf32>
    %76 = arith.mulf %71, %75 : vector<2x8x8x64xf32>
    %77 = arith.addf %70, %76 : vector<2x8x8x64xf32>
    %c0_58 = arith.constant 0 : index
    %c2_59 = arith.constant 2 : index
    %c1_60 = arith.constant 1 : index
    %c0_61 = arith.constant 0 : index
    %78 = vector.load %arg23[%c0_58, %c2_59, %c1_60, %c0_61] : memref<2x10x10x64xf32, #tpu.memory_space<vmem>>, vector<2x8x8x64xf32>
    %c7 = arith.constant 7 : index
    %c0_62 = arith.constant 0 : index
    %79 = vector.load %arg5[%c7, %c0_62] : memref<9x64xf32, #tpu.memory_space<vmem>>, vector<1x64xf32>
    %80 = vector.shape_cast %79 : vector<1x64xf32> to vector<64xf32>
    %81 = vector.shape_cast %80 : vector<64xf32> to vector<1x1x1x64xf32>
    %82 = vector.broadcast %81 : vector<1x1x1x64xf32> to vector<2x8x8x64xf32>
    %83 = arith.mulf %78, %82 : vector<2x8x8x64xf32>
    %84 = arith.addf %77, %83 : vector<2x8x8x64xf32>
    %c0_63 = arith.constant 0 : index
    %c2_64 = arith.constant 2 : index
    %c2_65 = arith.constant 2 : index
    %c0_66 = arith.constant 0 : index
    %85 = vector.load %arg23[%c0_63, %c2_64, %c2_65, %c0_66] : memref<2x10x10x64xf32, #tpu.memory_space<vmem>>, vector<2x8x8x64xf32>
    %c8 = arith.constant 8 : index
    %c0_67 = arith.constant 0 : index
    %86 = vector.load %arg5[%c8, %c0_67] : memref<9x64xf32, #tpu.memory_space<vmem>>, vector<1x64xf32>
    %87 = vector.shape_cast %86 : vector<1x64xf32> to vector<64xf32>
    %88 = vector.shape_cast %87 : vector<64xf32> to vector<1x1x1x64xf32>
    %89 = vector.broadcast %88 : vector<1x1x1x64xf32> to vector<2x8x8x64xf32>
    %90 = arith.mulf %85, %89 : vector<2x8x8x64xf32>
    %91 = arith.addf %84, %90 : vector<2x8x8x64xf32>
    %c0_68 = arith.constant 0 : index
    %c0_69 = arith.constant 0 : index
    %92 = vector.load %arg6[%c0_68, %c0_69] : memref<1x64xf32, #tpu.memory_space<vmem>>, vector<1x64xf32>
    %93 = vector.shape_cast %92 : vector<1x64xf32> to vector<1x1x1x64xf32>
    %94 = vector.broadcast %93 : vector<1x1x1x64xf32> to vector<2x8x8x64xf32>
    %95 = arith.mulf %91, %94 : vector<2x8x8x64xf32>
    %c0_70 = arith.constant 0 : index
    %c0_71 = arith.constant 0 : index
    %96 = vector.load %arg7[%c0_70, %c0_71] : memref<1x64xf32, #tpu.memory_space<vmem>>, vector<1x64xf32>
    %97 = vector.shape_cast %96 : vector<1x64xf32> to vector<1x1x1x64xf32>
    %98 = vector.broadcast %97 : vector<1x1x1x64xf32> to vector<2x8x8x64xf32>
    %99 = arith.addf %95, %98 : vector<2x8x8x64xf32>
    %100 = arith.negf %99 : vector<2x8x8x64xf32>
    %101 = math.exp %100 : vector<2x8x8x64xf32>
    %cst_72 = arith.constant 1.000000e+00 : f32
    %102 = vector.broadcast %cst_72 : f32 to vector<2x8x8x64xf32>
    %103 = arith.addf %102, %101 : vector<2x8x8x64xf32>
    %104 = arith.divf %102, %103 : vector<2x8x8x64xf32>
    %105 = arith.mulf %99, %104 : vector<2x8x8x64xf32>
    %cst_73 = arith.constant dense<0.000000e+00> : vector<2x64xf32>
    %106 = vector.multi_reduction <add>, %105, %cst_73 [1, 2] : vector<2x8x8x64xf32> to vector<2x64xf32>
    %cst_74 = arith.constant 1.562500e-02 : f32
    %107 = vector.broadcast %cst_74 : f32 to vector<2x64xf32>
    %108 = arith.mulf %106, %107 : vector<2x64xf32>
    %109 = arith.truncf %108 : vector<2x64xf32> to vector<2x64xbf16>
    %c0_75 = arith.constant 0 : index
    %c0_76 = arith.constant 0 : index
    %110 = vector.load %arg8[%c0_75, %c0_76] : memref<64x8xbf16, #tpu.memory_space<vmem>>, vector<64x8xbf16>
    %cst_77 = arith.constant dense<0.000000e+00> : vector<2x8xf32>
    %111 = tpu.matmul %109, %110, %cst_77 {dimension_numbers = #tpu.dot_dimension_numbers<[1], [0], [0], [1], [0, 0, 1, 1], [], []>} : vector<2x64xbf16>, vector<64x8xbf16>, vector<2x8xf32> -> vector<2x8xf32>
    %c0_78 = arith.constant 0 : index
    %c0_79 = arith.constant 0 : index
    %112 = vector.load %arg9[%c0_78, %c0_79] : memref<1x8xf32, #tpu.memory_space<vmem>>, vector<1x8xf32>
    %113 = vector.broadcast %112 : vector<1x8xf32> to vector<2x8xf32>
    %114 = arith.addf %111, %113 : vector<2x8xf32>
    %115 = arith.negf %114 : vector<2x8xf32>
    %116 = math.exp %115 : vector<2x8xf32>
    %cst_80 = arith.constant 1.000000e+00 : f32
    %117 = vector.broadcast %cst_80 : f32 to vector<2x8xf32>
    %118 = arith.addf %117, %116 : vector<2x8xf32>
    %119 = arith.divf %117, %118 : vector<2x8xf32>
    %120 = arith.mulf %114, %119 : vector<2x8xf32>
    %121 = arith.truncf %120 : vector<2x8xf32> to vector<2x8xbf16>
    %c0_81 = arith.constant 0 : index
    %c0_82 = arith.constant 0 : index
    %122 = vector.load %arg10[%c0_81, %c0_82] : memref<8x64xbf16, #tpu.memory_space<vmem>>, vector<8x64xbf16>
    %cst_83 = arith.constant dense<0.000000e+00> : vector<2x64xf32>
    %123 = tpu.matmul %121, %122, %cst_83 {dimension_numbers = #tpu.dot_dimension_numbers<[1], [0], [0], [1], [0, 0, 1, 1], [], []>} : vector<2x8xbf16>, vector<8x64xbf16>, vector<2x64xf32> -> vector<2x64xf32>
    %c0_84 = arith.constant 0 : index
    %c0_85 = arith.constant 0 : index
    %124 = vector.load %arg11[%c0_84, %c0_85] : memref<1x64xf32, #tpu.memory_space<vmem>>, vector<1x64xf32>
    %125 = vector.broadcast %124 : vector<1x64xf32> to vector<2x64xf32>
    %126 = arith.addf %123, %125 : vector<2x64xf32>
    %127 = arith.negf %126 : vector<2x64xf32>
    %128 = math.exp %127 : vector<2x64xf32>
    %cst_86 = arith.constant 1.000000e+00 : f32
    %129 = vector.broadcast %cst_86 : f32 to vector<2x64xf32>
    %130 = arith.addf %129, %128 : vector<2x64xf32>
    %131 = arith.divf %129, %130 : vector<2x64xf32>
    %132 = vector.shape_cast %131 : vector<2x64xf32> to vector<2x1x1x64xf32>
    %133 = vector.broadcast %132 : vector<2x1x1x64xf32> to vector<2x8x8x64xf32>
    %134 = arith.mulf %105, %133 : vector<2x8x8x64xf32>
    %135 = vector.shape_cast %134 : vector<2x8x8x64xf32> to vector<128x64xf32>
    %136 = arith.truncf %135 : vector<128x64xf32> to vector<128x64xbf16>
    %c0_87 = arith.constant 0 : index
    %c0_88 = arith.constant 0 : index
    %137 = vector.load %arg12[%c0_87, %c0_88] : memref<64x24xbf16, #tpu.memory_space<vmem>>, vector<64x24xbf16>
    %cst_89 = arith.constant dense<0.000000e+00> : vector<128x24xf32>
    %138 = tpu.matmul %136, %137, %cst_89 {dimension_numbers = #tpu.dot_dimension_numbers<[1], [0], [0], [1], [0, 0, 1, 1], [], []>} : vector<128x64xbf16>, vector<64x24xbf16>, vector<128x24xf32> -> vector<128x24xf32>
    %c0_90 = arith.constant 0 : index
    %c0_91 = arith.constant 0 : index
    %139 = vector.load %arg13[%c0_90, %c0_91] : memref<1x24xf32, #tpu.memory_space<vmem>>, vector<1x24xf32>
    %140 = vector.broadcast %139 : vector<1x24xf32> to vector<128x24xf32>
    %141 = arith.addf %138, %140 : vector<128x24xf32>
    %142 = arith.truncf %141 : vector<128x24xf32> to vector<128x24xbf16>
    %c0_92 = arith.constant 0 : index
    %c0_93 = arith.constant 0 : index
    %143 = vector.load %arg14[%c0_92, %c0_93] : memref<24x128xbf16, #tpu.memory_space<vmem>>, vector<24x128xbf16>
    %cst_94 = arith.constant dense<0.000000e+00> : vector<128x128xf32>
    %144 = tpu.matmul %142, %143, %cst_94 {dimension_numbers = #tpu.dot_dimension_numbers<[1], [0], [0], [1], [0, 0, 1, 1], [], []>} : vector<128x24xbf16>, vector<24x128xbf16>, vector<128x128xf32> -> vector<128x128xf32>
    %c0_95 = arith.constant 0 : index
    %c0_96 = arith.constant 0 : index
    %145 = vector.load %arg15[%c0_95, %c0_96] : memref<1x128xf32, #tpu.memory_space<vmem>>, vector<1x128xf32>
    %146 = vector.broadcast %145 : vector<1x128xf32> to vector<128x128xf32>
    %147 = arith.addf %144, %146 : vector<128x128xf32>
    %148 = arith.negf %147 : vector<128x128xf32>
    %149 = math.exp %148 : vector<128x128xf32>
    %cst_97 = arith.constant 1.000000e+00 : f32
    %150 = vector.broadcast %cst_97 : f32 to vector<128x128xf32>
    %151 = arith.addf %150, %149 : vector<128x128xf32>
    %152 = arith.divf %150, %151 : vector<128x128xf32>
    %153 = arith.mulf %147, %152 : vector<128x128xf32>
    %154 = vector.shape_cast %153 : vector<128x128xf32> to vector<2x64x128xf32>
    %cst_98 = arith.constant dense<0.000000e+00> : vector<2x128xf32>
    %155 = vector.multi_reduction <add>, %154, %cst_98 [1] : vector<2x64x128xf32> to vector<2x128xf32>
    %cst_99 = arith.constant 1.562500e-02 : f32
    %156 = vector.broadcast %cst_99 : f32 to vector<2x128xf32>
    %157 = arith.mulf %155, %156 : vector<2x128xf32>
    %c0_100 = arith.constant 0 : index
    %c0_101 = arith.constant 0 : index
    %158 = vector.load %arg18[%c0_100, %c0_101] : memref<1x128xf32, #tpu.memory_space<vmem>>, vector<1x128xf32>
    %159 = vector.broadcast %158 : vector<1x128xf32> to vector<2x128xf32>
    %160 = arith.subf %157, %159 : vector<2x128xf32>
    %c0_102 = arith.constant 0 : index
    %c0_103 = arith.constant 0 : index
    %161 = vector.load %arg19[%c0_102, %c0_103] : memref<1x128xf32, #tpu.memory_space<vmem>>, vector<1x128xf32>
    %cst_104 = arith.constant 9.99999974E-6 : f32
    %162 = vector.broadcast %cst_104 : f32 to vector<1x128xf32>
    %163 = arith.addf %161, %162 : vector<1x128xf32>
    %164 = math.rsqrt %163 : vector<1x128xf32>
    %165 = vector.broadcast %164 : vector<1x128xf32> to vector<2x128xf32>
    %166 = arith.mulf %160, %165 : vector<2x128xf32>
    %c0_105 = arith.constant 0 : index
    %c0_106 = arith.constant 0 : index
    %167 = vector.load %arg16[%c0_105, %c0_106] : memref<1x128xf32, #tpu.memory_space<vmem>>, vector<1x128xf32>
    %168 = vector.broadcast %167 : vector<1x128xf32> to vector<2x128xf32>
    %169 = arith.mulf %166, %168 : vector<2x128xf32>
    %c0_107 = arith.constant 0 : index
    %c0_108 = arith.constant 0 : index
    %170 = vector.load %arg17[%c0_107, %c0_108] : memref<1x128xf32, #tpu.memory_space<vmem>>, vector<1x128xf32>
    %171 = vector.broadcast %170 : vector<1x128xf32> to vector<2x128xf32>
    %172 = arith.addf %169, %171 : vector<2x128xf32>
    %173 = arith.truncf %172 : vector<2x128xf32> to vector<2x128xbf16>
    %c0_109 = arith.constant 0 : index
    %c0_110 = arith.constant 0 : index
    %174 = vector.load %arg20[%c0_109, %c0_110] : memref<128x128xbf16, #tpu.memory_space<vmem>>, vector<128x128xbf16>
    %cst_111 = arith.constant dense<0.000000e+00> : vector<2x128xf32>
    %175 = tpu.matmul %173, %174, %cst_111 {dimension_numbers = #tpu.dot_dimension_numbers<[1], [0], [0], [1], [0, 0, 1, 1], [], []>} : vector<2x128xbf16>, vector<128x128xbf16>, vector<2x128xf32> -> vector<2x128xf32>
    %c0_112 = arith.constant 0 : index
    %c0_113 = arith.constant 0 : index
    %176 = vector.load %arg21[%c0_112, %c0_113] : memref<1x128xf32, #tpu.memory_space<vmem>>, vector<1x128xf32>
    %177 = vector.broadcast %176 : vector<1x128xf32> to vector<2x128xf32>
    %178 = arith.addf %175, %177 : vector<2x128xf32>
    %c0_114 = arith.constant 0 : index
    %c0_115 = arith.constant 0 : index
    %179 = vector.load %arg22[%c0_114, %c0_115] : memref<2x128xf32, #tpu.memory_space<vmem>>, vector<2x128xf32>
    tpu.vector_store %arg22[%c0_114, %c0_115], %178 {strides = array<i32>} : memref<2x128xf32, #tpu.memory_space<vmem>>, vector<2x128xf32>,
    return
  }
}

</mosaic_0001>

<bundles_post_ra>
// kernel: efficientnet_vehicle_forward.1
= control target key start
LH: loop header
LB: loop body
LE: loop exit
PB: predicated region body
PF: predicated region fallthrough
CT: control target
= control target key end

     0   :  { %s5460_s0 = inlined_call_operand.vmem [shape: bf16[128,32], index: 0, kind: input, shape index: {}]   ;;  %s5461_s1 = inlined_call_operand.vmem [shape: bf16[32,16], index: 1, kind: input, shape index: {}]   ;;  %s5462_s2 = inlined_call_operand.vmem [shape: f32[1,16], index: 2, kind: input, shape index: {}]   ;;  %s5463_s3 = inlined_call_operand.vmem [shape: bf16[16,64], index: 3, kind: input, shape index: {}]   ;;  %s5464_s4 = inlined_call_operand.vmem [shape: f32[1,64], index: 4, kind: input, shape index: {}]   ;;  %s5465_s5 = inlined_call_operand.vmem [shape: f32[9,64], index: 5, kind: input, shape index: {}]   ;;  %s5466_s6 = inlined_call_operand.vmem [shape: f32[1,64], index: 6, kind: input, shape index: {}]   ;;  %s5467_s7 = inlined_call_operand.vmem [shape: f32[1,64], index: 7, kind: input, shape index: {}]   ;;  %s5468_s8 = inlined_call_operand.vmem [shape: bf16[64,8], index: 8, kind: input, shape index: {}]   ;;  %s5469_s9 = inlined_call_operand.vmem [shape: f32[1,8], index: 9, kind: input, shape index: {}]   ;;  %s5470_s10 = inlined_call_operand.vmem [shape: bf16[8,64], index: 10, kind: input, shape index: {}]   ;;  %s5471_s11 = inlined_call_operand.vmem [shape: f32[1,64], index: 11, kind: input, shape index: {}]   ;;  %s5472_s12 = inlined_call_operand.vmem [shape: bf16[64,24], index: 12, kind: input, shape index: {}]   ;;  %s5473_s13 = inlined_call_operand.vmem [shape: f32[1,24], index: 13, kind: input, shape index: {}]   ;;  %s5474_s14 = inlined_call_operand.vmem [shape: bf16[24,128], index: 14, kind: input, shape index: {}]   ;;  %s5475_s15 = inlined_call_operand.vmem [shape: f32[1,128], index: 15, kind: input, shape index: {}]   ;;  %s5476_s16 = inlined_call_operand.vmem [shape: f32[1,128], index: 16, kind: input, shape index: {}]   ;;  %s5477_s17 = inlined_call_operand.vmem [shape: f32[1,128], index: 17, kind: input, shape index: {}]   ;;  %s5478_s18 = inlined_call_operand.vmem [shape: f32[1,128], index: 18, kind: input, shape index: {}]   ;;  %s5479_s19 = inlined_call_operand.vmem [shape: f32[1,128], index: 19, kind: input, shape index: {}]   ;;  %s5480_s20 = inlined_call_operand.vmem [shape: bf16[128,128], index: 20, kind: input, shape index: {}]   ;;  %s5481_s21 = inlined_call_operand.vmem [shape: f32[1,128], index: 21, kind: input, shape index: {}]   ;;  %s5482_s22 = inlined_call_operand.hbm [shape: f32[2,128], index: 22, kind: output, shape index: {}]  }
   0x1   :  { %5489 = sst [smem:[#allocation7_spill]] %s5460_s0 }
   0x2   :  { %5490 = sst [smem:[#allocation8_spill]] %s5461_s1 }
   0x3   :  { %5491 = sst [smem:[#allocation9_spill]] %s5462_s2 }
   0x4   :  { %5492 = sst [smem:[#allocation10_spill]] %s5463_s3 }
   0x5   :  { %5493 = sst [smem:[#allocation11_spill]] %s5464_s4 }
   0x6   :  { %5494 = sst [smem:[#allocation12_spill]] %s5465_s5 }
   0x7   :  { %5495 = sst [smem:[#allocation13_spill]] %s5466_s6 }
   0x8   :  { %s5496_s29 = sld [smem:[#allocation8_spill]]  ;;  %vm149_vm0 = vcmask 261120  }
   0x9   :  { %s5497_s1 = sld [smem:[#allocation7_spill]] }
   0xe   :  { %v2950_v0 = vld [vmem:[%s5496_s29 + $0x8] sm:$0xff]  ;;  %v2949_v1 = vld [vmem:[%s5496_s29] sm:$0xff] }
   0xf   :  { %180 = vmatpush.bf16.msra.mxu0 %v2950_v0  ;;  %v2941_v2 = vld [vmem:[%s5497_s1] sm:$0xff] }
  0x13   :  { %181 = vmatpush.bf16.msra.mxu0 %v2949_v1 }
  0x14   :  { %27 = vsyncpa [#allocation4], 0  ;;  %v2942_v3 = vld [vmem:[%s5497_s1 + $0x8] sm:$0xff]  ;;  %v2943_v4 = vld [vmem:[%s5497_s1 + $0x10] sm:$0xff]  ;;  %s5498_s6 = sld [smem:[#allocation9_spill]]  ;;  %vm563_vm9 = vcmask 130048  }
  0x15   :  { %v2944_v5 = vld [vmem:[%s5497_s1 + $0x18] sm:$0xff]  ;;  %v2945_v6 = vld [vmem:[%s5497_s1 + $0x20] sm:$0xff]  ;;  %v2946_v7 = vld [vmem:[%s5497_s1 + $0x28] sm:$0xff]  ;;  %s5499_s2 = sld [smem:[#allocation10_spill]]  ;;  %s2720_s23 = sshll.u32 %s5482_s22, 4  ;;  %s2721_s23 = int_to_ptr.hbm [resolvable:$true] %s2720_s23 }
  0x16   :  { %2769 = vmatmul.msk.bf16.vlgmr.msra.gmra.mxu0 %vm149_vm0, %v2941_v2  ;;  %v2947_v8 = vld [vmem:[%s5497_s1 + $0x30] sm:$0xff]  ;;  %v2948_v9 = vld [vmem:[%s5497_s1 + $0x38] sm:$0xff]  ;;  %s5512_s3 = sld [smem:[#allocation11_spill]] }
  0x17   :  { %s5513_s30 = sld [smem:[#allocation12_spill]] }
  0x18   :  { %s5544_s0 = sld [smem:[#allocation13_spill]] }
  0x1a   :  { %v3451_v10 = vld [vmem:[%s5498_s6] ss:$0 sm:$0xff] }
  0x1b   :  { %v2951_v14 = vld [vmem:[%s5499_s2] sm:$0xff] }
  0x1c   :  { %595 = vmatpush.bf16.msra.mxu1 %v2951_v14 }
  0x26   :  { %2770 = vmatmul.msk.bf16.gmra.mxu0 %vm149_vm0, %v2942_v3 }
  0x36   :  { %2771 = vmatmul.msk.bf16.gmra.mxu0 %vm149_vm0, %v2943_v4 }
  0x46   :  { %2772 = vmatmul.msk.bf16.gmra.mxu0 %vm149_vm0, %v2944_v5 }
  0x56   :  { %2773 = vmatmul.msk.bf16.gmra.mxu0 %vm149_vm0, %v2945_v6 }
  0x66   :  { %2774 = vmatmul.msk.bf16.gmra.mxu0 %vm149_vm0, %v2946_v7 }
  0x76   :  { %2775 = vmatmul.msk.bf16.gmra.mxu0 %vm149_vm0, %v2947_v8 }
  0x86   :  { %2776 = vmatmul.msk.bf16.gmra.mxu0 %vm149_vm0, %v2948_v9 }
  0x93   :  { %v183_v11 = vpop.f32.mrf.mxu0 }
  0x94   :  { %v3454_v12 = vadd.f32 %v3451_v10, %v183_v11 }
  0x96   :  { %v2777_v13 = vmul.f32 -1.442695, %v3454_v12 }
  0x98   :  { %2992 = vpow2.f32 %v2777_v13 }
  0x9b   :  { %v185_v15 = vpop.f32.mrf.mxu0 }
  0x9c   :  { %v186_v16 = vadd.f32 %v3451_v10, %v185_v15 }
  0x9e   :  { %v2993_v17 = vpop.eup %2992  ;;  %v2778_v18 = vmul.f32 -1.442695, %v186_v16 }
  0x9f   :  { %v271_v19 = vadd.f32 1.0, %v2993_v17 }
  0xa0   :  { %2994 = vpow2.f32 %v2778_v18 }
  0xa1   :  { %2996 = vrcp.f32 %v271_v19  ;;  %v298_v37 = vand.u32 2147483648, %v271_v19  ;;  %vm292_vm2 = vweird.f32 %v271_v19  ;;  %v296_v38 = vand.u32 2147483647, %v271_v19 }
  0xa3   :  { %v188_v20 = vpop.f32.mrf.mxu0  ;;  %v299_v47 = vor.u32 1.1754944e-38, %v298_v37  ;;  %vm297_vm5 = vcmp.eq.f32.partialorder %v296_v38, 8.507059e+37 }
  0xa4   :  { %v3462_v21 = vadd.f32 %v3451_v10, %v188_v20 }
  0xa6   :  { %v2995_v22 = vpop.eup %2994  ;;  %v2779_v23 = vmul.f32 -1.442695, %v3462_v21 }
  0xa7   :  { %v2997_v24 = vpop.eup %2996  ;;  %v272_v25 = vadd.f32 1.0, %v2995_v22 }
  0xa8   :  { %v288_v26 = vmul.f32 %v2997_v24, %v271_v19  ;;  %2998 = vpow2.f32 %v2779_v23  ;;  %vm293_vm1 = vweird.f32 %v2997_v24 }
  0xa9   :  { %3000 = vrcp.f32 %v272_v25  ;;  %vm3472_vm3 = vmor %vm292_vm2, %vm293_vm1  ;;  %v311_v41 = vand.u32 2147483647, %v272_v25  ;;  %v313_v42 = vand.u32 2147483648, %v272_v25  ;;  %vm307_vm6 = vweird.f32 %v272_v25 }
  0xaa   :  { %v289_v27 = vsub.f32 1.0, %v288_v26 }
  0xab   :  { %v190_v28 = vpop.f32.mrf.mxu0  ;;  %v314_v53 = vor.u32 1.1754944e-38, %v313_v42  ;;  %vm312_vm8 = vcmp.eq.f32.partialorder %v311_v41, 8.507059e+37 }
  0xac   :  { %v290_v29 = vmul.f32 %v2997_v24, %v289_v27  ;;  %v3466_v30 = vadd.f32 %v3451_v10, %v190_v28 }
  0xae   :  { %v2999_v31 = vpop.eup %2998  ;;  %v2780_v32 = vmul.f32 -1.442695, %v3466_v30  ;;  %v291_v35 = vadd.f32 %v2997_v24, %v290_v29 }
  0xaf   :  { %v3001_v33 = vpop.eup %3000  ;;  %v3469_v34 = vadd.f32 1.0, %v2999_v31 }
  0xb0   :  { %v303_v36 = vmul.f32 %v3001_v33, %v272_v25  ;;  %3002 = vpow2.f32 %v2780_v32  ;;  %v295_v44 = vsel %vm3472_vm3, %v2997_v24, %v291_v35  ;;  %vm308_vm4 = vweird.f32 %v3001_v33 }
  0xb1   :  { %3004 = vrcp.f32 %v3469_v34  ;;  %v300_v52 = vsel %vm297_vm5, %v299_v47, %v295_v44  ;;  %vm309_vm7 = vmor %vm307_vm6, %vm308_vm4  ;;  %v328_v7 = vand.u32 2147483648, %v3469_v34  ;;  %vm322_vm11 = vweird.f32 %v3469_v34 }
  0xb2   :  { %v304_v39 = vsub.f32 1.0, %v303_v36  ;;  %v527_v58 = vmul.f32 %v300_v52, %v3454_v12  ;;  %v326_v8 = vand.u32 2147483647, %v3469_v34 }
  0xb3   :  { %v193_v43 = vpop.f32.mrf.mxu0  ;;  %v329_v18 = vor.u32 1.1754944e-38, %v328_v7 }
  0xb4   :  { %v305_v45 = vmul.f32 %v3001_v33, %v304_v39  ;;  %v3479_v46 = vadd.f32 %v3451_v10, %v193_v43  ;;  %vm327_vm14 = vcmp.eq.f32.partialorder %v326_v8, 8.507059e+37 }
  0xb6   :  { %v3003_v48 = vpop.eup %3002  ;;  %v306_v49 = vadd.f32 %v3001_v33, %v305_v45  ;;  %v2781_v50 = vmul.f32 -1.442695, %v3479_v46 }
  0xb7   :  { %v3005_v51 = vpop.eup %3004  ;;  %v274_v54 = vadd.f32 1.0, %v3003_v48 }
  0xb8   :  { %v310_v55 = vsel %vm309_vm7, %v3001_v33, %v306_v49  ;;  %v318_v56 = vmul.f32 %v3005_v51, %v3469_v34  ;;  %3006 = vpow2.f32 %v2781_v50  ;;  %vm323_vm10 = vweird.f32 %v3005_v51 }
  0xb9   :  { %v315_v57 = vsel %vm312_vm8, %v314_v53, %v310_v55  ;;  %3008 = vrcp.f32 %v274_v54  ;;  %vm3495_vm12 = vmor %vm322_vm11, %vm323_vm10  ;;  %v341_v12 = vand.u32 2147483647, %v274_v54  ;;  %v343_v13 = vand.u32 2147483648, %v274_v54 }
  0xba   :  { %v528_v59 = vmul.f32 %v315_v57, %v186_v16  ;;  %v319_v60 = vsub.f32 1.0, %v318_v56  ;;  %vm337_vm15 = vweird.f32 %v274_v54 }
  0xbb   :  { %v195_v61 = vpop.f32.mrf.mxu0  ;;  %v344_v25 = vor.u32 1.1754944e-38, %v343_v13  ;;  %vm342_vm1 = vcmp.eq.f32.partialorder %v341_v12, 8.507059e+37 }
  0xbc   :  { %v320_v62 = vmul.f32 %v3005_v51, %v319_v60  ;;  %v3485_v63 = vadd.f32 %v3451_v10, %v195_v61  ;;  %v543_v0 = vpack.c.bf16 %v528_v59, %v527_v58 }
  0xbe   :  { %v3007_v1 = vpop.eup %3006  ;;  %v2782_v2 = vmul.f32 -1.442695, %v3485_v63  ;;  %2797 = vmatmul.msk.bf16.vlgmr.msra.gmra.mxu1 %vm563_vm9, %v543_v0  ;;  %v321_v5 = vadd.f32 %v3005_v51, %v320_v62 }
  0xbf   :  { %v3009_v3 = vpop.eup %3008  ;;  %v3489_v4 = vadd.f32 1.0, %v3007_v1 }
  0xc0   :  { %v333_v6 = vmul.f32 %v3009_v3, %v274_v54  ;;  %3010 = vpow2.f32 %v2782_v2  ;;  %v325_v15 = vsel %vm3495_vm12, %v3005_v51, %v321_v5  ;;  %vm338_vm13 = vweird.f32 %v3009_v3 }
  0xc1   :  { %3012 = vrcp.f32 %v3489_v4  ;;  %v330_v24 = vsel %vm327_vm14, %v329_v18, %v325_v15  ;;  %vm339_vm0 = vmor %vm337_vm15, %vm338_vm13  ;;  %vm352_vm3 = vweird.f32 %v3489_v4  ;;  %v356_v43 = vand.u32 2147483647, %v3489_v4 }
  0xc2   :  { %v334_v9 = vsub.f32 1.0, %v333_v6  ;;  %v529_v31 = vmul.f32 %v330_v24, %v3462_v21 }
  0xc3   :  { %v198_v14 = vpop.f32.mrf.mxu0  ;;  %vm357_vm6 = vcmp.eq.f32.partialorder %v356_v43, 8.507059e+37 }
  0xc4   :  { %v335_v16 = vmul.f32 %v3009_v3, %v334_v9  ;;  %v3502_v17 = vadd.f32 %v3451_v10, %v198_v14 }
  0xc6   :  { %v3011_v19 = vpop.eup %3010  ;;  %v336_v20 = vadd.f32 %v3009_v3, %v335_v16  ;;  %v2783_v22 = vmul.f32 -1.442695, %v3502_v17 }
  0xc7   :  { %v3013_v23 = vpop.eup %3012  ;;  %v276_v26 = vadd.f32 1.0, %v3011_v19 }
  0xc8   :  { %v340_v27 = vsel %vm339_vm0, %v3009_v3, %v336_v20  ;;  %v348_v28 = vmul.f32 %v3013_v23, %v3489_v4  ;;  %3014 = vpow2.f32 %v2783_v22  ;;  %vm353_vm2 = vweird.f32 %v3013_v23 }
  0xc9   :  { %v345_v29 = vsel %vm342_vm1, %v344_v25, %v340_v27  ;;  %3016 = vrcp.f32 %v276_v26  ;;  %vm3519_vm4 = vmor %vm352_vm3, %vm353_vm2  ;;  %v371_v47 = vand.u32 2147483647, %v276_v26  ;;  %v373_v48 = vand.u32 2147483648, %v276_v26 }
  0xca   :  { %v530_v32 = vmul.f32 %v345_v29, %v3466_v30  ;;  %v349_v33 = vsub.f32 1.0, %v348_v28  ;;  %v358_v30 = vand.u32 2147483648, %v3489_v4  ;;  %vm367_vm7 = vweird.f32 %v276_v26 }
  0xcb   :  { %v200_v34 = vpop.f32.mrf.mxu0  ;;  %v374_v59 = vor.u32 1.1754944e-38, %v373_v48  ;;  %vm372_vm10 = vcmp.eq.f32.partialorder %v371_v47, 8.507059e+37 }
  0xcc   :  { %v350_v35 = vmul.f32 %v3013_v23, %v349_v33  ;;  %v3509_v36 = vadd.f32 %v3451_v10, %v200_v34  ;;  %v544_v37 = vpack.c.bf16 %v530_v32, %v529_v31  ;;  %v359_v53 = vor.u32 1.1754944e-38, %v358_v30 }
  0xce   :  { %v3015_v38 = vpop.eup %3014  ;;  %v2784_v39 = vmul.f32 -1.442695, %v3509_v36  ;;  %2798 = vmatmul.msk.bf16.gmra.mxu1 %vm563_vm9, %v544_v37  ;;  %v351_v42 = vadd.f32 %v3013_v23, %v350_v35 }
  0xcf   :  { %v3017_v40 = vpop.eup %3016  ;;  %v3513_v41 = vadd.f32 1.0, %v3015_v38 }
  0xd0   :  { %v363_v21 = vmul.f32 %v3017_v40, %v276_v26  ;;  %3018 = vpow2.f32 %v2784_v39  ;;  %v355_v50 = vsel %vm3519_vm4, %v3013_v23, %v351_v42  ;;  %vm368_vm5 = vweird.f32 %v3017_v40 }
  0xd1   :  { %3020 = vrcp.f32 %v3513_v41  ;;  %v360_v58 = vsel %vm357_vm6, %v359_v53, %v355_v50  ;;  %vm369_vm8 = vmor %vm367_vm7, %vm368_vm5  ;;  %vm382_vm12 = vweird.f32 %v3513_v41  ;;  %v386_v14 = vand.u32 2147483647, %v3513_v41 }
  0xd2   :  { %v364_v44 = vsub.f32 1.0, %v363_v21  ;;  %v531_v1 = vmul.f32 %v360_v58, %v3479_v46 }
  0xd3   :  { %v203_v49 = vpop.f32.mrf.mxu0  ;;  %vm387_vm15 = vcmp.eq.f32.partialorder %v386_v14, 8.507059e+37 }
  0xd4   :  { %v365_v51 = vmul.f32 %v3017_v40, %v364_v44  ;;  %v3526_v52 = vadd.f32 %v3451_v10, %v203_v49 }
  0xd6   :  { %v3019_v54 = vpop.eup %3018  ;;  %v366_v55 = vadd.f32 %v3017_v40, %v365_v51  ;;  %v2785_v56 = vmul.f32 -1.442695, %v3526_v52 }
  0xd7   :  { %v3021_v57 = vpop.eup %3020  ;;  %v278_v60 = vadd.f32 1.0, %v3019_v54 }
  0xd8   :  { %v370_v61 = vsel %vm369_vm8, %v3017_v40, %v366_v55  ;;  %v378_v62 = vmul.f32 %v3021_v57, %v3513_v41  ;;  %3022 = vpow2.f32 %v2785_v56  ;;  %vm383_vm11 = vweird.f32 %v3021_v57 }
  0xd9   :  { %v375_v0 = vsel %vm372_vm10, %v374_v59, %v370_v61  ;;  %3024 = vrcp.f32 %v278_v60  ;;  %vm3543_vm13 = vmor %vm382_vm12, %vm383_vm11  ;;  %v401_v18 = vand.u32 2147483647, %v278_v60  ;;  %v403_v19 = vand.u32 2147483648, %v278_v60 }
  0xda   :  { %v532_v2 = vmul.f32 %v375_v0, %v3485_v63  ;;  %v379_v3 = vsub.f32 1.0, %v378_v62  ;;  %v388_v63 = vand.u32 2147483648, %v3513_v41  ;;  %vm397_vm0 = vweird.f32 %v278_v60 }
  0xdb   :  { %v205_v4 = vpop.f32.mrf.mxu0  ;;  %v404_v32 = vor.u32 1.1754944e-38, %v403_v19  ;;  %vm402_vm2 = vcmp.eq.f32.partialorder %v401_v18, 8.507059e+37 }
  0xdc   :  { %v380_v5 = vmul.f32 %v3021_v57, %v379_v3  ;;  %v3533_v6 = vadd.f32 %v3451_v10, %v205_v4  ;;  %v545_v7 = vpack.c.bf16 %v532_v2, %v531_v1  ;;  %v389_v25 = vor.u32 1.1754944e-38, %v388_v63 }
  0xde   :  { %v3023_v8 = vpop.eup %3022  ;;  %v2786_v9 = vmul.f32 -1.442695, %v3533_v6  ;;  %2799 = vmatmul.msk.bf16.gmra.mxu1 %vm563_vm9, %v545_v7  ;;  %v381_v13 = vadd.f32 %v3021_v57, %v380_v5 }
  0xdf   :  { %v3025_v11 = vpop.eup %3024  ;;  %v3537_v12 = vadd.f32 1.0, %v3023_v8 }
  0xe0   :  { %v393_v46 = vmul.f32 %v3025_v11, %v278_v60  ;;  %3026 = vpow2.f32 %v2786_v9  ;;  %v385_v22 = vsel %vm3543_vm13, %v3021_v57, %v381_v13  ;;  %vm398_vm14 = vweird.f32 %v3025_v11 }
  0xe1   :  { %3028 = vrcp.f32 %v3537_v12  ;;  %v390_v31 = vsel %vm387_vm15, %v389_v25, %v385_v22  ;;  %vm399_vm1 = vmor %vm397_vm0, %vm398_vm14  ;;  %vm412_vm4 = vweird.f32 %v3537_v12  ;;  %v416_v49 = vand.u32 2147483647, %v3537_v12 }
  0xe2   :  { %v394_v15 = vsub.f32 1.0, %v393_v46  ;;  %v533_v38 = vmul.f32 %v390_v31, %v3502_v17 }
  0xe3   :  { %v208_v20 = vpop.f32.mrf.mxu0  ;;  %vm417_vm7 = vcmp.eq.f32.partialorder %v416_v49, 8.507059e+37 }
  0xe4   :  { %v395_v23 = vmul.f32 %v3025_v11, %v394_v15  ;;  %v3550_v24 = vadd.f32 %v3451_v10, %v208_v20 }
  0xe6   :  { %v3027_v26 = vpop.eup %3026  ;;  %v396_v27 = vadd.f32 %v3025_v11, %v395_v23  ;;  %v2787_v28 = vmul.f32 -1.442695, %v3550_v24 }
  0xe7   :  { %v3029_v29 = vpop.eup %3028  ;;  %v280_v33 = vadd.f32 1.0, %v3027_v26 }
  0xe8   :  { %v400_v34 = vsel %vm399_vm1, %v3025_v11, %v396_v27  ;;  %v408_v35 = vmul.f32 %v3029_v29, %v3537_v12  ;;  %3030 = vpow2.f32 %v2787_v28  ;;  %vm413_vm3 = vweird.f32 %v3029_v29 }
  0xe9   :  { %v405_v37 = vsel %vm402_vm2, %v404_v32, %v400_v34  ;;  %3032 = vrcp.f32 %v280_v33  ;;  %vm3567_vm5 = vmor %vm412_vm4, %vm413_vm3  ;;  %v431_v53 = vand.u32 2147483647, %v280_v33  ;;  %v433_v54 = vand.u32 2147483648, %v280_v33 }
  0xea   :  { %v534_v39 = vmul.f32 %v405_v37, %v3509_v36  ;;  %v409_v40 = vsub.f32 1.0, %v408_v35  ;;  %v418_v36 = vand.u32 2147483648, %v3537_v12  ;;  %vm427_vm8 = vweird.f32 %v280_v33 }
  0xeb   :  { %v210_v41 = vpop.f32.mrf.mxu0  ;;  %v434_v2 = vor.u32 1.1754944e-38, %v433_v54  ;;  %vm432_vm11 = vcmp.eq.f32.partialorder %v431_v53, 8.507059e+37 }
  0xec   :  { %v410_v42 = vmul.f32 %v3029_v29, %v409_v40  ;;  %v3557_v21 = vadd.f32 %v3451_v10, %v210_v41  ;;  %v546_v30 = vpack.c.bf16 %v534_v39, %v533_v38  ;;  %v419_v59 = vor.u32 1.1754944e-38, %v418_v36 }
  0xee   :  { %v3031_v43 = vpop.eup %3030  ;;  %v2788_v44 = vmul.f32 -1.442695, %v3557_v21  ;;  %2800 = vmatmul.msk.bf16.gmra.mxu1 %vm563_vm9, %v546_v30  ;;  %v411_v48 = vadd.f32 %v3029_v29, %v410_v42 }
  0xef   :  { %v3033_v45 = vpop.eup %3032  ;;  %v3561_v47 = vadd.f32 1.0, %v3031_v43 }
  0xf0   :  { %v423_v17 = vmul.f32 %v3033_v45, %v280_v33  ;;  %3034 = vpow2.f32 %v2788_v44  ;;  %v415_v56 = vsel %vm3567_vm5, %v3029_v29, %v411_v48  ;;  %vm428_vm6 = vweird.f32 %v3033_v45 }
  0xf1   :  { %3036 = vrcp.f32 %v3561_v47  ;;  %v420_v1 = vsel %vm417_vm7, %v419_v59, %v415_v56  ;;  %vm429_vm10 = vmor %vm427_vm8, %vm428_vm6  ;;  %vm442_vm13 = vweird.f32 %v3561_v47  ;;  %v446_v20 = vand.u32 2147483647, %v3561_v47 }
  0xf2   :  { %v424_v50 = vsub.f32 1.0, %v423_v17  ;;  %v535_v8 = vmul.f32 %v420_v1, %v3526_v52 }
  0xf3   :  { %v213_v55 = vpop.f32.mrf.mxu0  ;;  %vm447_vm0 = vcmp.eq.f32.partialorder %v446_v20, 8.507059e+37 }
  0xf4   :  { %v425_v57 = vmul.f32 %v3033_v45, %v424_v50  ;;  %v3574_v58 = vadd.f32 %v3451_v10, %v213_v55 }
  0xf6   :  { %v3035_v60 = vpop.eup %3034  ;;  %v426_v61 = vadd.f32 %v3033_v45, %v425_v57  ;;  %v2789_v62 = vmul.f32 -1.442695, %v3574_v58 }
  0xf7   :  { %v3037_v0 = vpop.eup %3036  ;;  %v282_v3 = vadd.f32 1.0, %v3035_v60 }
  0xf8   :  { %v430_v4 = vsel %vm429_vm10, %v3033_v45, %v426_v61  ;;  %v438_v5 = vmul.f32 %v3037_v0, %v3561_v47  ;;  %3038 = vpow2.f32 %v2789_v62  ;;  %vm443_vm12 = vweird.f32 %v3037_v0 }
  0xf9   :  { %v435_v7 = vsel %vm432_vm11, %v434_v2, %v430_v4  ;;  %3040 = vrcp.f32 %v282_v3  ;;  %vm3591_vm14 = vmor %vm442_vm13, %vm443_vm12  ;;  %v461_v25 = vand.u32 2147483647, %v282_v3  ;;  %v463_v26 = vand.u32 2147483648, %v282_v3 }
  0xfa   :  { %v536_v9 = vmul.f32 %v435_v7, %v3533_v6  ;;  %v439_v11 = vsub.f32 1.0, %v438_v5  ;;  %v448_v6 = vand.u32 2147483648, %v3561_v47  ;;  %vm457_vm1 = vweird.f32 %v282_v3 }
  0xfb   :  { %v215_v12 = vpop.f32.mrf.mxu0  ;;  %v464_v39 = vor.u32 1.1754944e-38, %v463_v26  ;;  %vm462_vm3 = vcmp.eq.f32.partialorder %v461_v25, 8.507059e+37 }
  0xfc   :  { %v440_v13 = vmul.f32 %v3037_v0, %v439_v11  ;;  %v3581_v46 = vadd.f32 %v3451_v10, %v215_v12  ;;  %v547_v63 = vpack.c.bf16 %v536_v9, %v535_v8  ;;  %v449_v32 = vor.u32 1.1754944e-38, %v448_v6 }
  0xfe   :  { %v3039_v14 = vpop.eup %3038  ;;  %v2790_v15 = vmul.f32 -1.442695, %v3581_v46  ;;  %2801 = vmatmul.msk.bf16.gmra.mxu1 %vm563_vm9, %v547_v63  ;;  %v441_v19 = vadd.f32 %v3037_v0, %v440_v13 }
  0xff   :  { %v3041_v16 = vpop.eup %3040  ;;  %v3585_v18 = vadd.f32 1.0, %v3039_v14 }
 0x100   :  { %v453_v52 = vmul.f32 %v3041_v16, %v282_v3  ;;  %3042 = vpow2.f32 %v2790_v15  ;;  %v445_v28 = vsel %vm3591_vm14, %v3037_v0, %v441_v19  ;;  %vm458_vm15 = vweird.f32 %v3041_v16 }
 0x101   :  { %3044 = vrcp.f32 %v3585_v18  ;;  %v450_v38 = vsel %vm447_vm0, %v449_v32, %v445_v28  ;;  %vm459_vm2 = vmor %vm457_vm1, %vm458_vm15  ;;  %vm472_vm5 = vweird.f32 %v3585_v18 }
 0x102   :  { %v454_v22 = vsub.f32 1.0, %v453_v52  ;;  %v537_v43 = vmul.f32 %v450_v38, %v3550_v24  ;;  %v478_v24 = vand.u32 2147483648, %v3585_v18 }
 0x103   :  { %v218_v27 = vpop.f32.mrf.mxu0 }
 0x104   :  { %v455_v29 = vmul.f32 %v3041_v16, %v454_v22  ;;  %v3598_v31 = vadd.f32 %v3451_v10, %v218_v27  ;;  %v479_v61 = vor.u32 1.1754944e-38, %v478_v24 }
 0x106   :  { %v3043_v33 = vpop.eup %3042  ;;  %v456_v34 = vadd.f32 %v3041_v16, %v455_v29  ;;  %v2791_v35 = vmul.f32 -1.442695, %v3598_v31 }
 0x107   :  { %v3045_v37 = vpop.eup %3044  ;;  %v284_v40 = vadd.f32 1.0, %v3043_v33 }
 0x108   :  { %v460_v41 = vsel %vm459_vm2, %v3041_v16, %v456_v34  ;;  %v468_v42 = vmul.f32 %v3045_v37, %v3585_v18  ;;  %3046 = vpow2.f32 %v2791_v35  ;;  %vm473_vm4 = vweird.f32 %v3045_v37  ;;  %v3621_v34 = vld [vmem:[%s5512_s3] ss:$0 sm:$0xff] }
 0x109   :  { %v465_v30 = vsel %vm462_vm3, %v464_v39, %v460_v41  ;;  %3048 = vrcp.f32 %v284_v40  ;;  %vm474_vm6 = vmor %vm472_vm5, %vm473_vm4  ;;  %v493_v56 = vand.u32 2147483648, %v284_v40  ;;  %v491_v60 = vand.u32 2147483647, %v284_v40 }
 0x10a   :  { %v538_v44 = vmul.f32 %v465_v30, %v3557_v21  ;;  %v469_v45 = vsub.f32 1.0, %v468_v42  ;;  %vm487_vm10 = vweird.f32 %v284_v40  ;;  %vm5488_vm5 = vcmask 523264  }
 0x10b   :  { %v220_v47 = vpop.f32.mrf.mxu0  ;;  %v494_v3 = vor.u32 1.1754944e-38, %v493_v56  ;;  %vm492_vm12 = vcmp.eq.f32.partialorder %v491_v60, 8.507059e+37  ;;  %v3293_v35 = vmov 0.0  }
 0x10c   :  { %v470_v48 = vmul.f32 %v3045_v37, %v469_v45  ;;  %v3605_v17 = vadd.f32 %v3451_v10, %v220_v47  ;;  %v548_v36 = vpack.c.bf16 %v538_v44, %v537_v43  ;;  %v476_v10 = vand.u32 2147483647, %v3585_v18  ;;  %958 = vst.msk [vmem:[#allocation2] sm:$0xff] %vm5488_vm5, %v3293_v35 }
 0x10d   :  { %961 = vst.msk [vmem:[#allocation2 + $0x10] sm:$0xff] %vm5488_vm5, %v3293_v35 }
 0x10e   :  { %v3047_v49 = vpop.eup %3046  ;;  %v2792_v50 = vmul.f32 -1.442695, %v3605_v17  ;;  %2802 = vmatmul.msk.bf16.gmra.mxu1 %vm563_vm9, %v548_v36  ;;  %v471_v54 = vadd.f32 %v3045_v37, %v470_v48  ;;  %vm477_vm8 = vcmp.eq.f32.partialorder %v476_v10, 8.507059e+37  ;;  %963 = vst.msk [vmem:[#allocation2 + $0x20] sm:$0xff] %vm5488_vm5, %v3293_v35 }
 0x10f   :  { %v3049_v51 = vpop.eup %3048  ;;  %v285_v53 = vadd.f32 1.0, %v3047_v49  ;;  %965 = vst.msk [vmem:[#allocation2 + $0x30] sm:$0xff] %vm5488_vm5, %v3293_v35 }
 0x110   :  { %v483_v55 = vmul.f32 %v3049_v51, %v284_v40  ;;  %3050 = vpow2.f32 %v2792_v50  ;;  %v475_v57 = vsel %vm474_vm6, %v3045_v37, %v471_v54  ;;  %vm488_vm7 = vweird.f32 %v3049_v51  ;;  %967 = vst.msk [vmem:[#allocation2 + $0x40] sm:$0xff] %vm5488_vm5, %v3293_v35 }
 0x111   :  { %3052 = vrcp.f32 %v285_v53  ;;  %v480_v2 = vsel %vm477_vm8, %v479_v61, %v475_v57  ;;  %vm489_vm11 = vmor %vm487_vm10, %vm488_vm7  ;;  %v508_v18 = vand.u32 2147483648, %v285_v53  ;;  %vm502_vm14 = vweird.f32 %v285_v53  ;;  %969 = vst.msk [vmem:[#allocation2 + $0x50] sm:$0xff] %vm5488_vm5, %v3293_v35 }
 0x112   :  { %v484_v21 = vsub.f32 1.0, %v483_v55  ;;  %v539_v9 = vmul.f32 %v480_v2, %v3574_v58  ;;  %v506_v19 = vand.u32 2147483647, %v285_v53  ;;  %vm959_vm6 = vcmask 517120   ;;  %971 = vst.msk [vmem:[#allocation2 + $0x60] sm:$0xff] %vm5488_vm5, %v3293_v35 }
 0x113   :  { %960 = vst.msk [vmem:[#allocation2 + $0x8] sm:$0x3] %vm959_vm6, %v3293_v35 }
 0x114   :  { %v485_v59 = vmul.f32 %v3049_v51, %v484_v21  ;;  %vm507_vm1 = vcmp.eq.f32.partialorder %v506_v19, 8.507059e+37  ;;  %962 = vst.msk [vmem:[#allocation2 + $0x18] sm:$0x3] %vm959_vm6, %v3293_v35 }
 0x115   :  { %964 = vst.msk [vmem:[#allocation2 + $0x28] sm:$0x3] %vm959_vm6, %v3293_v35 }
 0x116   :  { %v3051_v62 = vpop.eup %3050  ;;  %v486_v0 = vadd.f32 %v3049_v51, %v485_v59  ;;  %966 = vst.msk [vmem:[#allocation2 + $0x38] sm:$0x3] %vm959_vm6, %v3293_v35 }
 0x117   :  { %v3053_v1 = vpop.eup %3052  ;;  %v286_v4 = vadd.f32 1.0, %v3051_v62  ;;  %968 = vst.msk [vmem:[#allocation2 + $0x48] sm:$0x3] %vm959_vm6, %v3293_v35 }
 0x118   :  { %v490_v5 = vsel %vm489_vm11, %v3049_v51, %v486_v0  ;;  %v498_v7 = vmul.f32 %v3053_v1, %v285_v53  ;;  %vm503_vm13 = vweird.f32 %v3053_v1  ;;  %970 = vst.msk [vmem:[#allocation2 + $0x58] sm:$0x3] %vm959_vm6, %v3293_v35 }
 0x119   :  { %v495_v8 = vsel %vm492_vm12, %v494_v3, %v490_v5  ;;  %3054 = vrcp.f32 %v286_v4  ;;  %vm504_vm15 = vmor %vm502_vm14, %vm503_vm13  ;;  %v523_v6 = vand.u32 2147483648, %v286_v4  ;;  %v521_v58 = vand.u32 2147483647, %v286_v4  ;;  %972 = vst.msk [vmem:[#allocation2 + $0x68] sm:$0x3] %vm959_vm6, %v3293_v35 }
 0x11a   :  { %v540_v11 = vmul.f32 %v495_v8, %v3581_v46  ;;  %v499_v12 = vsub.f32 1.0, %v498_v7  ;;  %v509_v46 = vor.u32 1.1754944e-38, %v508_v18  ;;  %vm517_vm2 = vweird.f32 %v286_v4  ;;  %973 = vst.msk [vmem:[#allocation2 + $0x70] sm:$0xff] %vm5488_vm5, %v3293_v35  ;;  %v3721_v3 = vld [vmem:[%s5513_s30 + $0x1] ss:$0 sm:$0xff] }
 0x11b   :  { %v524_v26 = vor.u32 1.1754944e-38, %v523_v6  ;;  %vm522_vm4 = vcmp.eq.f32.partialorder %v521_v58, 8.507059e+37  ;;  %974 = vst.msk [vmem:[#allocation2 + $0x78] sm:$0x3] %vm959_vm6, %v3293_v35  ;;  %v1016_v7 = vld [vmem:[#allocation2] sm:$0xff] }
 0x11c   :  { %v500_v13 = vmul.f32 %v3053_v1, %v499_v12  ;;  %v549_v63 = vpack.c.bf16 %v540_v11, %v539_v9  ;;  %975 = vst.msk [vmem:[#allocation2 + $0x80] sm:$0xff] %vm5488_vm5, %v3293_v35  ;;  %v1066_v8 = vld [vmem:[#allocation2 + $0x1] sm:$0xff] }
 0x11d   :  { %976 = vst.msk [vmem:[#allocation2 + $0x88] sm:$0x3] %vm959_vm6, %v3293_v35  ;;  %v1084_v18 = vmul.f32 %v3721_v3, %v1066_v8  ;;  %v3746_v6 = vld [vmem:[%s5513_s30 + $0x2] ss:$0 sm:$0xff] }
 0x11e   :  { %2803 = vmatmul.msk.bf16.gmra.mxu1 %vm563_vm9, %v549_v63  ;;  %v501_v15 = vadd.f32 %v3053_v1, %v500_v13  ;;  %977 = vst.msk [vmem:[#allocation2 + $0x90] sm:$0xff] %vm5488_vm5, %v3293_v35  ;;  %v1116_v58 = vld [vmem:[#allocation2 + $0x2] sm:$0xff] }
 0x11f   :  { %v3055_v14 = vpop.eup %3054  ;;  %978 = vst.msk [vmem:[#allocation2 + $0x98] sm:$0x3] %vm959_vm6, %v3293_v35 }
 0x120   :  { %v513_v16 = vmul.f32 %v3055_v14, %v286_v4  ;;  %v505_v20 = vsel %vm504_vm15, %v3053_v1, %v501_v15  ;;  %vm518_vm0 = vweird.f32 %v3055_v14  ;;  %979 = vst.msk [vmem:[#allocation2 + $0xa0] sm:$0xff] %vm5488_vm5, %v3293_v35  ;;  %v3714_v1 = vld [vmem:[%s5513_s30] ss:$0 sm:$0xff] }
 0x121   :  { %v510_v25 = vsel %vm507_vm1, %v509_v46, %v505_v20  ;;  %vm519_vm3 = vmor %vm517_vm2, %vm518_vm0  ;;  %980 = vst.msk [vmem:[#allocation2 + $0xa8] sm:$0x3] %vm959_vm6, %v3293_v35 }
 0x122   :  { %v514_v52 = vsub.f32 1.0, %v513_v16  ;;  %v541_v29 = vmul.f32 %v510_v25, %v3598_v31  ;;  %981 = vst.msk [vmem:[#allocation2 + $0xb0] sm:$0xff] %vm5488_vm5, %v3293_v35  ;;  %v1034_v16 = vmul.f32 %v3714_v1, %v1016_v7 }
 0x123   :  { %982 = vst.msk [vmem:[#allocation2 + $0xb8] sm:$0x3] %vm959_vm6, %v3293_v35 }
 0x124   :  { %v515_v22 = vmul.f32 %v3055_v14, %v514_v52  ;;  %983 = vst.msk [vmem:[#allocation2 + $0xc0] sm:$0xff] %vm5488_vm5, %v3293_v35 }
 0x125   :  { %984 = vst.msk [vmem:[#allocation2 + $0xc8] sm:$0x3] %vm959_vm6, %v3293_v35 }
 0x126   :  { %v516_v23 = vadd.f32 %v3055_v14, %v515_v22  ;;  %985 = vst.msk [vmem:[#allocation2 + $0xd0] sm:$0xff] %vm5488_vm5, %v3293_v35 }
 0x127   :  { %986 = vst.msk [vmem:[#allocation2 + $0xd8] sm:$0x3] %vm959_vm6, %v3293_v35 }
 0x128   :  { %v520_v27 = vsel %vm519_vm3, %v3055_v14, %v516_v23  ;;  %987 = vst.msk [vmem:[#allocation2 + $0xe0] sm:$0xff] %vm5488_vm5, %v3293_v35 }
 0x129   :  { %v525_v28 = vsel %vm522_vm4, %v524_v26, %v520_v27  ;;  %988 = vst.msk [vmem:[#allocation2 + $0xe8] sm:$0x3] %vm959_vm6, %v3293_v35  ;;  %v1100_v27 = vadd.f32 %v1084_v18, %v1034_v16 }
 0x12a   :  { %v542_v32 = vmul.f32 %v525_v28, %v3605_v17  ;;  %989 = vst.msk [vmem:[#allocation2 + $0xf0] sm:$0xff] %vm5488_vm5, %v3293_v35  ;;  %v1134_v28 = vmul.f32 %v3746_v6, %v1116_v58 }
 0x12b   :  { %990 = vst.msk [vmem:[#allocation2 + $0xf8] sm:$0x3] %vm959_vm6, %v3293_v35 }
 0x12c   :  { %v550_v33 = vpack.c.bf16 %v542_v32, %v541_v29  ;;  %991 = vst.msk [vmem:[#allocation2 + $0x100] sm:$0xff] %vm5488_vm5, %v3293_v35 }
 0x12d   :  { %992 = vst.msk [vmem:[#allocation2 + $0x108] sm:$0x3] %vm959_vm6, %v3293_v35 }
 0x12e   :  { %2804 = vmatmul.msk.bf16.gmra.mxu1 %vm563_vm9, %v550_v33  ;;  %993 = vst.msk [vmem:[#allocation2 + $0x110] sm:$0xff] %vm5488_vm5, %v3293_v35 }
 0x12f   :  { %994 = vst.msk [vmem:[#allocation2 + $0x118] sm:$0x3] %vm959_vm6, %v3293_v35 }
 0x130   :  { %995 = vst.msk [vmem:[#allocation2 + $0x120] sm:$0xff] %vm5488_vm5, %v3293_v35 }
 0x131   :  { %996 = vst.msk [vmem:[#allocation2 + $0x128] sm:$0x3] %vm959_vm6, %v3293_v35 }
 0x132   :  { %997 = vst.msk [vmem:[#allocation2 + $0x130] sm:$0xff] %vm5488_vm5, %v3293_v35 }
 0x133   :  { %998 = vst.msk [vmem:[#allocation2 + $0x138] sm:$0x3] %vm959_vm6, %v3293_v35  ;;  %v3764_v35 = vld [vmem:[%s5513_s30 + $0x3] ss:$0 sm:$0xff] }
 0x13b   :  { %v597_v31 = vpop.f32.mrf.mxu1 }
 0x13c   :  { %v3630_v37 = vadd.f32 %v3621_v34, %v597_v31 }
 0x13e   :  { %v2805_v38 = vmul.f32 -1.442695, %v3630_v37 }
 0x140   :  { %3056 = vpow2.f32 %v2805_v38 }
 0x143   :  { %v599_v39 = vpop.f32.mrf.mxu1 }
 0x144   :  { %v3650_v40 = vadd.f32 %v3621_v34, %v599_v39 }
 0x146   :  { %v3057_v41 = vpop.eup %3056  ;;  %v2806_v42 = vmul.f32 -1.442695, %v3650_v40 }
 0x147   :  { %v685_v30 = vadd.f32 1.0, %v3057_v41 }
 0x148   :  { %3058 = vpow2.f32 %v2806_v42 }
 0x149   :  { %3060 = vrcp.f32 %v685_v30  ;;  %v712_v50 = vand.u32 2147483648, %v685_v30  ;;  %v710_v54 = vand.u32 2147483647, %v685_v30  ;;  %vm706_vm7 = vweird.f32 %v685_v30 }
 0x14b   :  { %v602_v43 = vpop.f32.mrf.mxu1  ;;  %v713_v57 = vor.u32 1.1754944e-38, %v712_v50  ;;  %vm711_vm10 = vcmp.eq.f32.partialorder %v710_v54, 8.507059e+37 }
 0x14c   :  { %v3670_v44 = vadd.f32 %v3621_v34, %v602_v43 }
 0x14e   :  { %v3059_v45 = vpop.eup %3058  ;;  %v2807_v47 = vmul.f32 -1.442695, %v3670_v44 }
 0x14f   :  { %v3061_v48 = vpop.eup %3060  ;;  %v3679_v17 = vadd.f32 1.0, %v3059_v45 }
 0x150   :  { %v702_v36 = vmul.f32 %v3061_v48, %v685_v30  ;;  %3062 = vpow2.f32 %v2807_v47  ;;  %vm707_vm9 = vweird.f32 %v3061_v48  ;;  %v1150_v30 = vadd.f32 %v1134_v28, %v1100_v27 }
 0x151   :  { %3064 = vrcp.f32 %v3679_v17  ;;  %vm708_vm8 = vmor %vm706_vm7, %vm707_vm9  ;;  %v727_v4 = vand.u32 2147483648, %v3679_v17  ;;  %v725_v11 = vand.u32 2147483647, %v3679_v17  ;;  %vm721_vm12 = vweird.f32 %v3679_v17 }
 0x152   :  { %v703_v49 = vsub.f32 1.0, %v702_v36 }
 0x153   :  { %v604_v51 = vpop.f32.mrf.mxu1  ;;  %v728_v19 = vor.u32 1.1754944e-38, %v727_v4  ;;  %vm726_vm14 = vcmp.eq.f32.partialorder %v725_v11, 8.507059e+37 }
 0x154   :  { %v704_v53 = vmul.f32 %v3061_v48, %v703_v49  ;;  %v3693_v55 = vadd.f32 %v3621_v34, %v604_v51 }
 0x156   :  { %v3063_v24 = vpop.eup %3062  ;;  %v705_v10 = vadd.f32 %v3061_v48, %v704_v53  ;;  %v2808_v21 = vmul.f32 -1.442695, %v3693_v55 }
 0x157   :  { %v3065_v56 = vpop.eup %3064  ;;  %v3702_v59 = vadd.f32 1.0, %v3063_v24 }
 0x158   :  { %v709_v60 = vsel %vm708_vm8, %v3061_v48, %v705_v10  ;;  %v717_v61 = vmul.f32 %v3065_v56, %v3679_v17  ;;  %3066 = vpow2.f32 %v2808_v21  ;;  %vm722_vm11 = vweird.f32 %v3065_v56  ;;  %v3782_v10 = vld [vmem:[%s5513_s30 + $0x4] ss:$0 sm:$0xff] }
 0x159   :  { %v714_v62 = vsel %vm711_vm10, %v713_v57, %v709_v60  ;;  %3068 = vrcp.f32 %v3702_v59  ;;  %vm723_vm13 = vmor %vm721_vm12, %vm722_vm11  ;;  %v742_v29 = vand.u32 2147483648, %v3702_v59  ;;  %v740_v33 = vand.u32 2147483647, %v3702_v59 }
 0x15a   :  { %v941_v0 = vmul.f32 %v714_v62, %v3630_v37  ;;  %v718_v2 = vsub.f32 1.0, %v717_v61  ;;  %vm736_vm0 = vweird.f32 %v3702_v59 }
 0x15b   :  { %v607_v5 = vpop.f32.mrf.mxu1  ;;  %v743_v43 = vor.u32 1.1754944e-38, %v742_v29  ;;  %vm741_vm2 = vcmp.eq.f32.partialorder %v740_v33, 8.507059e+37 }
 0x15c   :  { %1000 = vst.msk [vmem:[#allocation2 + $0x11] sm:$0xff] %vm5488_vm5, %v941_v0  ;;  %v719_v9 = vmul.f32 %v3065_v56, %v718_v2  ;;  %v3729_v12 = vadd.f32 %v3621_v34, %v607_v5 }
 0x15e   :  { %v3067_v13 = vpop.eup %3066  ;;  %v720_v63 = vadd.f32 %v3065_v56, %v719_v9  ;;  %v2809_v14 = vmul.f32 -1.442695, %v3729_v12 }
 0x15f   :  { %v3069_v15 = vpop.eup %3068  ;;  %v3741_v52 = vadd.f32 1.0, %v3067_v13 }
 0x160   :  { %v724_v20 = vsel %vm723_vm13, %v3065_v56, %v720_v63  ;;  %v732_v22 = vmul.f32 %v3069_v15, %v3702_v59  ;;  %3070 = vpow2.f32 %v2809_v14  ;;  %vm737_vm15 = vweird.f32 %v3069_v15  ;;  %v3790_v59 = vld [vmem:[%s5513_s30 + $0x5] ss:$0 sm:$0xff] }
 0x161   :  { %v729_v46 = vsel %vm726_vm14, %v728_v19, %v724_v20  ;;  %3072 = vrcp.f32 %v3741_v52  ;;  %vm738_vm1 = vmor %vm736_vm0, %vm737_vm15  ;;  %vm751_vm3 = vweird.f32 %v3741_v52  ;;  %v757_v60 = vand.u32 2147483648, %v3741_v52  ;;  %v3814_v20 = vld [vmem:[%s5513_s30 + $0x6] ss:$0 sm:$0xff] }
 0x162   :  { %v942_v23 = vmul.f32 %v729_v46, %v3650_v40  ;;  %v733_v25 = vsub.f32 1.0, %v732_v22 }
 0x163   :  { %v609_v26 = vpop.f32.mrf.mxu1  ;;  %v1017_v37 = vld [vmem:[#allocation2 + $0x10] sm:$0xff]  ;;  %v758_v14 = vor.u32 1.1754944e-38, %v757_v60 }
 0x164   :  { %1001 = vst.msk [vmem:[#allocation2 + $0x21] sm:$0xff] %vm5488_vm5, %v942_v23  ;;  %v734_v32 = vmul.f32 %v3069_v15, %v733_v25  ;;  %v1067_v39 = vld [vmem:[#allocation2 + $0x11] sm:$0xff]  ;;  %v3770_v42 = vadd.f32 %v3621_v34, %v609_v26  ;;  %v1035_v47 = vmul.f32 %v3714_v1, %v1017_v37  ;;  %v1184_v49 = vmul.f32 %v3764_v35, %v1017_v37 }
 0x165   :  { %v1085_v17 = vmul.f32 %v3721_v3, %v1067_v39  ;;  %v1117_v36 = vld [vmem:[#allocation2 + $0x12] sm:$0xff]  ;;  %v1234_v8 = vmul.f32 %v3782_v10, %v1067_v39 }
 0x166   :  { %v3071_v31 = vpop.eup %3070  ;;  %v735_v40 = vadd.f32 %v3069_v15, %v734_v32  ;;  %v2810_v54 = vmul.f32 -1.442695, %v3770_v42  ;;  %v1135_v57 = vmul.f32 %v3746_v6, %v1117_v36  ;;  %v1200_v62 = vadd.f32 %v1184_v49, %v1150_v30 }
 0x167   :  { %v3073_v38 = vpop.eup %3072  ;;  %v3767_v41 = vadd.f32 1.0, %v3071_v31  ;;  %v1101_v61 = vadd.f32 %v1085_v17, %v1035_v47  ;;  %v1284_v63 = vmul.f32 %v3790_v59, %v1117_v36  ;;  %v3835_v36 = vld [vmem:[%s5513_s30 + $0x7] ss:$0 sm:$0xff] }
 0x168   :  { %v747_v45 = vmul.f32 %v3073_v38, %v3741_v52  ;;  %v739_v48 = vsel %vm738_vm1, %v3069_v15, %v735_v40  ;;  %vm752_vm4 = vweird.f32 %v3073_v38  ;;  %v1250_v18 = vadd.f32 %v1234_v8, %v1200_v62 }
 0x169   :  { %3074 = vrcp.f32 %v3767_v41  ;;  %v744_v50 = vsel %vm741_vm2, %v743_v43, %v739_v48  ;;  %vm753_vm6 = vmor %vm751_vm3, %vm752_vm4  ;;  %v1151_v16 = vadd.f32 %v1135_v57, %v1101_v61  ;;  %v770_v39 = vand.u32 2147483647, %v3767_v41 }
 0x16a   :  { %v748_v51 = vsub.f32 1.0, %v747_v45  ;;  %v943_v53 = vmul.f32 %v744_v50, %v3670_v44  ;;  %v755_v44 = vand.u32 2147483647, %v3741_v52  ;;  %3076 = vpow2.f32 %v2810_v54 }
 0x16b   :  { %v612_v24 = vpop.f32.mrf.mxu1  ;;  %v1018_v21 = vld [vmem:[#allocation2 + $0x20] sm:$0xff]  ;;  %v772_v52 = vand.u32 2147483648, %v3767_v41  ;;  %v1300_v40 = vadd.f32 %v1284_v63, %v1250_v18  ;;  %vm766_vm8 = vweird.f32 %v3767_v41  ;;  %vm771_vm11 = vcmp.eq.f32.partialorder %v770_v39, 8.507059e+37 }
 0x16c   :  { %v3784_v56 = vld [vmem:[#allocation2 + $0x21] sm:$0xff]  ;;  %1002 = vst.msk [vmem:[#allocation2 + $0x31] sm:$0xff] %vm5488_vm5, %v943_v53  ;;  %v749_v0 = vmul.f32 %v3073_v38, %v748_v51  ;;  %v1036_v4 = vmul.f32 %v3714_v1, %v1018_v21  ;;  %v3800_v7 = vadd.f32 %v3621_v34, %v612_v24  ;;  %v1185_v9 = vmul.f32 %v3764_v35, %v1018_v21 }
 0x16d   :  { %v1086_v5 = vmul.f32 %v3721_v3, %v3784_v56  ;;  %vm756_vm9 = vcmp.eq.f32.partialorder %v755_v44, 8.507059e+37  ;;  %v3809_v19 = vld [vmem:[#allocation2 + $0x22] sm:$0xff]  ;;  %v1235_v30 = vmul.f32 %v3782_v10, %v3784_v56  ;;  %v773_v47 = vor.u32 1.1754944e-38, %v772_v52 }
 0x16e   :  { %v750_v11 = vadd.f32 %v3073_v38, %v749_v0  ;;  %v2811_v15 = vmul.f32 -1.442695, %v3800_v7  ;;  %v1201_v26 = vadd.f32 %v1185_v9, %v1151_v16  ;;  %v1136_v31 = vmul.f32 %v3746_v6, %v3809_v19 }
 0x16f   :  { %v3075_v2 = vpop.eup %3074  ;;  %v1102_v46 = vadd.f32 %v1086_v5, %v1036_v4  ;;  %v1285_v24 = vmul.f32 %v3790_v59, %v3809_v19  ;;  %v1385_v5 = vmul.f32 %v3835_v36, %v3784_v56 }
 0x170   :  { %v762_v13 = vmul.f32 %v3075_v2, %v3767_v41  ;;  %v754_v22 = vsel %vm753_vm6, %v3073_v38, %v750_v11  ;;  %3078 = vpow2.f32 %v2811_v15  ;;  %v3077_v33 = vpop.eup %3076  ;;  %vm767_vm7 = vweird.f32 %v3075_v2 }
 0x171   :  { %v759_v23 = vsel %vm756_vm9, %v758_v14, %v754_v22  ;;  %v1152_v43 = vadd.f32 %v1136_v31, %v1102_v46  ;;  %v3830_v48 = vadd.f32 1.0, %v3077_v33  ;;  %v1251_v17 = vadd.f32 %v1235_v30, %v1201_v26  ;;  %vm768_vm10 = vmor %vm766_vm8, %vm767_vm7 }
 0x172   :  { %v763_v58 = vsub.f32 1.0, %v762_v13  ;;  %v944_v28 = vmul.f32 %v759_v23, %v3693_v55  ;;  %v1335_v55 = vmul.f32 %v3814_v20, %v1018_v21 }
 0x173   :  { %v614_v25 = vpop.f32.mrf.mxu1  ;;  %v1019_v27 = vld [vmem:[#allocation2 + $0x30] sm:$0xff]  ;;  %3080 = vrcp.f32 %v3830_v48  ;;  %v1301_v4 = vadd.f32 %v1285_v24, %v1251_v17  ;;  %v785_v63 = vand.u32 2147483647, %v3830_v48  ;;  %v787_v15 = vand.u32 2147483648, %v3830_v48 }
 0x174   :  { %v764_v29 = vmul.f32 %v3075_v2, %v763_v58  ;;  %v3819_v32 = vadd.f32 %v3621_v34, %v614_v25  ;;  %v1069_v37 = vld [vmem:[#allocation2 + $0x31] sm:$0xff]  ;;  %v1186_v38 = vmul.f32 %v3764_v35, %v1019_v27  ;;  %1003 = vst.msk [vmem:[#allocation2 + $0x41] sm:$0xff] %vm5488_vm5, %v944_v28  ;;  %v1037_v49 = vmul.f32 %v3714_v1, %v1019_v27 }
 0x175   :  { %v1087_v50 = vmul.f32 %v3721_v3, %v1069_v37  ;;  %v1336_v21 = vmul.f32 %v3814_v20, %v1019_v27  ;;  %v1351_v44 = vadd.f32 %v1335_v55, %v1300_v40  ;;  %v3845_v60 = vld [vmem:[#allocation2 + $0x32] sm:$0xff]  ;;  %v1236_v61 = vmul.f32 %v3782_v10, %v1069_v37 }
 0x176   :  { %v765_v45 = vadd.f32 %v3075_v2, %v764_v29  ;;  %v2812_v51 = vmul.f32 -1.442695, %v3819_v32  ;;  %v3079_v41 = vpop.eup %3078  ;;  %v1202_v53 = vadd.f32 %v1186_v38, %v1152_v43  ;;  %v1137_v14 = vmul.f32 %v3746_v6, %v3845_v60 }
 0x177   :  { %v3849_v0 = vadd.f32 1.0, %v3079_v41  ;;  %v1103_v8 = vadd.f32 %v1087_v50, %v1037_v49  ;;  %v1352_v16 = vadd.f32 %v1336_v21, %v1301_v4  ;;  %v1286_v18 = vmul.f32 %v3790_v59, %v3845_v60 }
 0x178   :  { %v769_v54 = vsel %vm768_vm10, %v3075_v2, %v765_v45  ;;  %3082 = vpow2.f32 %v2812_v51  ;;  %v1252_v9 = vadd.f32 %v1236_v61, %v1202_v53  ;;  %v3866_v46 = vadd.f32 %v1385_v5, %v1351_v44 }
 0x179   :  { %v774_v57 = vsel %vm771_vm11, %v773_v47, %v769_v54  ;;  %3084 = vrcp.f32 %v3849_v0  ;;  %v3081_v56 = vpop.eup %3080  ;;  %v1153_v23 = vadd.f32 %v1137_v14, %v1103_v8  ;;  %v1386_v52 = vmul.f32 %v3835_v36, %v1069_v37 }
 0x17a   :  { %v945_v62 = vmul.f32 %v774_v57, %v3729_v12  ;;  %v777_v25 = vmul.f32 %v3081_v56, %v3830_v48  ;;  %vm781_vm12 = vweird.f32 %v3830_v48  ;;  %vm3872_vm13 = vcmp.eq.f32.partialorder %v785_v63, 8.507059e+37  ;;  %v3913_v48 = vld [vmem:[%s5513_s30 + $0x8] ss:$0 sm:$0xff] }
 0x17b   :  { %v617_v2 = vpop.f32.mrf.mxu1  ;;  %v1020_v11 = vld [vmem:[#allocation2 + $0x40] sm:$0xff]  ;;  %v1302_v33 = vadd.f32 %v1286_v18, %v1252_v9  ;;  %v788_v39 = vor.u32 1.1754944e-38, %v787_v15  ;;  %v3879_v37 = vadd.f32 %v1386_v52, %v1352_v16  ;;  %v800_v45 = vand.u32 2147483647, %v3849_v0 }
 0x17c   :  { %v1070_v13 = vld [vmem:[#allocation2 + $0x41] sm:$0xff]  ;;  %1004 = vst.msk [vmem:[#allocation2 + $0x51] sm:$0xff] %vm5488_vm5, %v945_v62  ;;  %v3857_v12 = vadd.f32 %v3621_v34, %v617_v2  ;;  %v1038_v22 = vmul.f32 %v3714_v1, %v1020_v11  ;;  %v1187_v27 = vmul.f32 %v3764_v35, %v1020_v11  ;;  %v778_v38 = vsub.f32 1.0, %v777_v25 }
 0x17d   :  { %v1088_v58 = vmul.f32 %v3721_v3, %v1070_v13  ;;  %v1120_v31 = vld [vmem:[#allocation2 + $0x42] sm:$0xff]  ;;  %v1337_v43 = vmul.f32 %v3814_v20, %v1020_v11  ;;  %vm782_vm14 = vweird.f32 %v3081_v56  ;;  %v1237_v41 = vmul.f32 %v3782_v10, %v1070_v13 }
 0x17e   :  { %v3083_v26 = vpop.eup %3082  ;;  %v2813_v29 = vmul.f32 -1.442695, %v3857_v12  ;;  %v779_v17 = vmul.f32 %v3081_v56, %v778_v38  ;;  %v1138_v50 = vmul.f32 %v3746_v6, %v1120_v31  ;;  %v1203_v51 = vadd.f32 %v1187_v27, %v1153_v23  ;;  %vm783_vm0 = vmor %vm781_vm12, %vm782_vm14  ;;  %v1024_v9 = vld [vmem:[#allocation2 + $0xa0] sm:$0xff] }
 0x17f   :  { %v3877_v40 = vadd.f32 1.0, %v3083_v26  ;;  %v3085_v30 = vpop.eup %3084  ;;  %v1104_v55 = vadd.f32 %v1088_v58, %v1038_v22  ;;  %vm796_vm15 = vweird.f32 %v3849_v0  ;;  %v3889_v53 = vmul.f32 %v3790_v59, %v1120_v31  ;;  %v1074_v11 = vld [vmem:[#allocation2 + $0xa1] sm:$0xff] }
 0x180   :  { %3086 = vpow2.f32 %v2813_v29  ;;  %v792_v49 = vmul.f32 %v3085_v30, %v3849_v0  ;;  %v780_v21 = vadd.f32 %v3081_v56, %v779_v17  ;;  %v802_v44 = vand.u32 2147483648, %v3849_v0  ;;  %v1124_v31 = vld [vmem:[#allocation2 + $0xa2] sm:$0xff] }
 0x181   :  { %3088 = vrcp.f32 %v3877_v40  ;;  %v1154_v61 = vadd.f32 %v1138_v50, %v1104_v55  ;;  %vm3898_vm1 = vcmp.eq.f32.partialorder %v800_v45, 8.507059e+37  ;;  %v3902_v2 = vadd.f32 %v1337_v43, %v1302_v33 }
 0x182   :  { %v793_v57 = vsub.f32 1.0, %v792_v49  ;;  %v3905_v4 = vmul.f32 %v3835_v36, %v1070_v13  ;;  %v784_v5 = vsel %vm783_vm0, %v3081_v56, %v780_v21  ;;  %vm797_vm2 = vweird.f32 %v3085_v30 }
 0x183   :  { %v619_v47 = vpop.f32.mrf.mxu1  ;;  %v3891_v54 = vld [vmem:[#allocation2 + $0x50] sm:$0xff]  ;;  %v789_v16 = vsel %vm3872_vm13, %v788_v39, %v784_v5  ;;  %v1253_v56 = vadd.f32 %v1237_v41, %v1203_v51  ;;  %v803_v23 = vor.u32 1.1754944e-38, %v802_v44  ;;  %vm798_vm3 = vmor %vm796_vm15, %vm797_vm2  ;;  %v1042_v26 = vmul.f32 %v3714_v1, %v1024_v9 }
 0x184   :  { %v3893_v24 = vld [vmem:[#allocation2 + $0x51] sm:$0xff]  ;;  %v794_v8 = vmul.f32 %v3085_v30, %v793_v57  ;;  %v3908_v63 = vadd.f32 %v3621_v34, %v619_v47  ;;  %v1039_v15 = vmul.f32 %v3714_v1, %v3891_v54  ;;  %v946_v22 = vmul.f32 %v789_v16, %v3770_v42 }
 0x185   :  { %v1089_v13 = vmul.f32 %v3721_v3, %v3893_v24  ;;  %v1092_v27 = vmul.f32 %v3721_v3, %v1074_v11  ;;  %v1188_v42 = vmul.f32 %v3764_v35, %v3891_v54  ;;  %v3937_v0 = vmul.f32 %v3913_v48, %v3809_v19  ;;  %v1121_v39 = vld [vmem:[#allocation2 + $0x52] sm:$0xff] }
 0x186   :  { %v3087_v14 = vpop.eup %3086  ;;  %v795_v58 = vadd.f32 %v3085_v30, %v794_v8  ;;  %v2814_v28 = vmul.f32 -1.442695, %v3908_v63  ;;  %1005 = vst.msk [vmem:[#allocation2 + $0x61] sm:$0xff] %vm5488_vm5, %v946_v22  ;;  %v815_v45 = vand.u32 2147483647, %v3877_v40  ;;  %v817_v17 = vand.u32 2147483648, %v3877_v40 }
 0x187   :  { %v3089_v18 = vpop.eup %3088  ;;  %v3922_v52 = vadd.f32 1.0, %v3087_v14  ;;  %v1105_v38 = vadd.f32 %v1089_v13, %v1039_v15  ;;  %v1108_v19 = vadd.f32 %v1092_v27, %v1042_v26  ;;  %v1142_v50 = vmul.f32 %v3746_v6, %v1124_v31 }
 0x188   :  { %v807_v25 = vmul.f32 %v3089_v18, %v3877_v40  ;;  %v799_v33 = vsel %vm798_vm3, %v3085_v30, %v795_v58  ;;  %vm812_vm4 = vweird.f32 %v3089_v18  ;;  %v1139_v51 = vmul.f32 %v3746_v6, %v1121_v39 }
 0x189   :  { %3090 = vrcp.f32 %v3922_v52  ;;  %v804_v55 = vsel %vm3898_vm1, %v803_v23, %v799_v33  ;;  %v830_v41 = vand.u32 2147483647, %v3922_v52  ;;  %v832_v21 = vand.u32 2147483648, %v3922_v52 }
 0x18a   :  { %v808_v43 = vsub.f32 1.0, %v807_v25  ;;  %v947_v47 = vmul.f32 %v804_v55, %v3800_v7  ;;  %3092 = vpow2.f32 %v2814_v28  ;;  %v1238_v57 = vmul.f32 %v3782_v10, %v3893_v24 }
 0x18b   :  { %v622_v29 = vpop.f32.mrf.mxu1  ;;  %vm811_vm6 = vweird.f32 %v3877_v40  ;;  %vm3956_vm9 = vcmp.eq.f32.partialorder %v815_v45, 8.507059e+37  ;;  %v818_v9 = vor.u32 1.1754944e-38, %v817_v17  ;;  %v1155_v11 = vadd.f32 %v1139_v51, %v1105_v38 }
 0x18c   :  { %v3945_v30 = vadd.f32 %v3621_v34, %v622_v29  ;;  %v809_v49 = vmul.f32 %v3089_v18, %v808_v43  ;;  %1006 = vst.msk [vmem:[#allocation2 + $0x71] sm:$0xff] %vm5488_vm5, %v947_v47  ;;  %vm3960_vm7 = vmor %vm811_vm6, %vm812_vm4  ;;  %v1204_v14 = vadd.f32 %v1188_v42, %v1154_v61  ;;  %vm826_vm8 = vweird.f32 %v3922_v52 }
 0x18d   :  { %v3968_v40 = vadd.f32 %v1142_v50, %v1108_v19  ;;  %v3970_v58 = vld [vmem:[#allocation2 + $0x60] sm:$0xff]  ;;  %vm3974_vm10 = vcmp.eq.f32.partialorder %v830_v41, 8.507059e+37  ;;  %v833_v61 = vor.u32 1.1754944e-38, %v832_v21  ;;  %v1288_v26 = vmul.f32 %v3790_v59, %v1121_v39 }
 0x18e   :  { %v2815_v7 = vmul.f32 -1.442695, %v3945_v30  ;;  %v810_v44 = vadd.f32 %v3089_v18, %v809_v49  ;;  %v3972_v23 = vld [vmem:[#allocation2 + $0x61] sm:$0xff]  ;;  %v1254_v31 = vadd.f32 %v1238_v57, %v1204_v14  ;;  %v1338_v38 = vmul.f32 %v3814_v20, %v3891_v54 }
 0x18f   :  { %v3091_v5 = vpop.eup %3090  ;;  %v1040_v39 = vmul.f32 %v3714_v1, %v3970_v58  ;;  %v1189_v47 = vmul.f32 %v3764_v35, %v3970_v58  ;;  %v4007_v17 = vmul.f32 %v3835_v36, %v3893_v24  ;;  %v4011_v49 = vadd.f32 %v3905_v4, %v3902_v2 }
 0x190   :  { %3094 = vpow2.f32 %v2815_v7  ;;  %v814_v15 = vsel %vm3960_vm7, %v3089_v18, %v810_v44  ;;  %v822_v13 = vmul.f32 %v3091_v5, %v3922_v52  ;;  %v3093_v22 = vpop.eup %3092  ;;  %v1303_v18 = vadd.f32 %v3889_v53, %v1253_v56 }
 0x191   :  { %v819_v27 = vsel %vm3956_vm9, %v818_v9, %v814_v15  ;;  %v3982_v29 = vadd.f32 1.0, %v3093_v22  ;;  %vm827_vm11 = vweird.f32 %v3091_v5  ;;  %v1090_v53 = vmul.f32 %v3721_v3, %v3972_v23  ;;  %5524 = vst [vmem:[#allocation6_spill] sm:$0xff] %v4011_v49 }
 0x192   :  { %v823_v28 = vsub.f32 1.0, %v822_v13  ;;  %v948_v33 = vmul.f32 %v819_v27, %v3819_v32  ;;  %v3999_v32 = vld [vmem:[#allocation2 + $0x62] sm:$0xff]  ;;  %vm828_vm12 = vmor %vm826_vm8, %vm827_vm11  ;;  %v4022_v24 = vadd.f32 %v1288_v26, %v1254_v31  ;;  %v4024_v21 = vadd.f32 %v1338_v38, %v1303_v18 }
 0x193   :  { %v624_v16 = vpop.f32.mrf.mxu1  ;;  %v3994_v56 = vld [vmem:[#allocation2 + $0x70] sm:$0xff]  ;;  %3096 = vrcp.f32 %v3982_v29  ;;  %v4028_v2 = vmul.f32 %v3913_v48, %v3845_v60  ;;  %v1140_v4 = vmul.f32 %v3746_v6, %v3999_v32  ;;  %v1106_v44 = vadd.f32 %v1090_v53, %v1040_v39 }
 0x194   :  { %v3985_v42 = vadd.f32 %v3621_v34, %v624_v16  ;;  %v3996_v55 = vld [vmem:[#allocation2 + $0x71] sm:$0xff]  ;;  %v824_v43 = vmul.f32 %v3091_v5, %v823_v28  ;;  %1007 = vst.msk [vmem:[#allocation2 + $0x81] sm:$0xff] %vm5488_vm5, %v948_v33  ;;  %v1041_v19 = vmul.f32 %v3714_v1, %v3994_v56  ;;  %v845_v8 = vand.u32 2147483647, %v3982_v29 }
 0x195   :  { %v1091_v50 = vmul.f32 %v3721_v3, %v3996_v55  ;;  %v4033_v62 = vld [vmem:[#allocation2 + $0x72] sm:$0xff]  ;;  %v847_v9 = vand.u32 2147483648, %v3982_v29  ;;  %v1190_v13 = vmul.f32 %v3764_v35, %v3994_v56  ;;  %v1205_v16 = vadd.f32 %v1189_v47, %v1155_v11 }
 0x196   :  { %v3095_v45 = vpop.eup %3094  ;;  %v2816_v54 = vmul.f32 -1.442695, %v3985_v42  ;;  %v825_v51 = vadd.f32 %v3091_v5, %v824_v43  ;;  %v1239_v26 = vmul.f32 %v3782_v10, %v3972_v23  ;;  %vm841_vm13 = vweird.f32 %v3982_v29 }
 0x197   :  { %v4017_v41 = vadd.f32 1.0, %v3095_v45  ;;  %v1141_v18 = vmul.f32 %v3746_v6, %v4033_v62  ;;  %v1156_v27 = vadd.f32 %v1140_v4, %v1106_v44  ;;  %vm4055_vm14 = vcmp.eq.f32.partialorder %v845_v8, 8.507059e+37 }
 0x198   :  { %3098 = vpow2.f32 %v2816_v54  ;;  %v829_v7 = vsel %vm828_vm12, %v3091_v5, %v825_v51  ;;  %v1107_v5 = vadd.f32 %v1091_v50, %v1041_v19  ;;  %v848_v31 = vor.u32 1.1754944e-38, %v847_v9 }
 0x199   :  { %3100 = vrcp.f32 %v4017_v41  ;;  %v834_v52 = vsel %vm3974_vm10, %v833_v61, %v829_v7  ;;  %v3097_v14 = vpop.eup %3096  ;;  %v860_v25 = vand.u32 2147483647, %v4017_v41  ;;  %vm856_vm15 = vweird.f32 %v4017_v41 }
 0x19a   :  { %v949_v15 = vmul.f32 %v834_v52, %v3857_v12  ;;  %v837_v22 = vmul.f32 %v3097_v14, %v3982_v29  ;;  %v862_v12 = vand.u32 2147483648, %v4017_v41  ;;  %v1157_v43 = vadd.f32 %v1141_v18, %v1107_v5 }
 0x19b   :  { %v627_v57 = vpop.f32.mrf.mxu1  ;;  %v4059_v38 = vld [vmem:[#allocation2 + $0x80] sm:$0xff]  ;;  %v1206_v45 = vadd.f32 %v1190_v13, %v1156_v27  ;;  %vm842_vm0 = vweird.f32 %v3097_v14  ;;  %vm4065_vm1 = vcmp.eq.f32.partialorder %v860_v25, 8.507059e+37  ;;  %v1255_v9 = vadd.f32 %v1239_v26, %v1205_v16 }
 0x19c   :  { %v4040_v60 = vadd.f32 %v3621_v34, %v627_v57  ;;  %1008 = vst.msk [vmem:[#allocation2 + $0xb1] sm:$0xff] %vm5488_vm5, %v949_v15  ;;  %v838_v28 = vsub.f32 1.0, %v837_v22  ;;  %v4069_v50 = vld [vmem:[#allocation2 + $0x81] sm:$0xff]  ;;  %v863_v51 = vor.u32 1.1754944e-38, %v862_v12  ;;  %v1191_v7 = vmul.f32 %v3764_v35, %v4059_v38  ;;  %vm4083_vm2 = vmor %vm841_vm13, %vm842_vm0 }
 0x19d   :  { %v1240_v57 = vmul.f32 %v3782_v10, %v3996_v55  ;;  %v4079_v15 = vld [vmem:[#allocation2 + $0x82] sm:$0xff]  ;;  %v1241_v13 = vmul.f32 %v3782_v10, %v4069_v50  ;;  %v1289_v25 = vmul.f32 %v3790_v59, %v3999_v32 }
 0x19e   :  { %v2817_v61 = vmul.f32 -1.442695, %v4040_v60  ;;  %v3099_v11 = vpop.eup %3098  ;;  %v839_v47 = vmul.f32 %v3097_v14, %v838_v28 }
 0x19f   :  { %v3101_v39 = vpop.eup %3100  ;;  %v4062_v53 = vadd.f32 1.0, %v3099_v11  ;;  %v4089_v22 = vadd.f32 %v1240_v57, %v1206_v45  ;;  %v1207_v45 = vadd.f32 %v1191_v7, %v1157_v43 }
 0x1a0   :  { %3102 = vpow2.f32 %v2817_v61  ;;  %v852_v54 = vmul.f32 %v3101_v39, %v4017_v41  ;;  %v840_v44 = vadd.f32 %v3097_v14, %v839_v47  ;;  %v1290_v61 = vmul.f32 %v3790_v59, %v4033_v62 }
 0x1a1   :  { %3104 = vrcp.f32 %v4062_v53  ;;  %vm857_vm3 = vweird.f32 %v3101_v39  ;;  %v875_v28 = vand.u32 2147483647, %v4062_v53  ;;  %v1291_v47 = vmul.f32 %v3790_v59, %v4079_v15 }
 0x1a2   :  { %v853_v52 = vsub.f32 1.0, %v852_v54  ;;  %v844_v29 = vsel %vm4083_vm2, %v3097_v14, %v840_v44  ;;  %v877_v14 = vand.u32 2147483648, %v4062_v53  ;;  %vm858_vm4 = vmor %vm856_vm15, %vm857_vm3  ;;  %v1257_v41 = vadd.f32 %v1241_v13, %v1207_v45 }
 0x1a3   :  { %v629_v4 = vpop.f32.mrf.mxu1  ;;  %v1025_v26 = vld [vmem:[#allocation2 + $0xb0] sm:$0xff]  ;;  %vm871_vm6 = vweird.f32 %v4062_v53  ;;  %vm4124_vm9 = vcmp.eq.f32.partialorder %v875_v28, 8.507059e+37 }
 0x1a4   :  { %v4077_v8 = vadd.f32 %v3621_v34, %v629_v4  ;;  %v1075_v12 = vld [vmem:[#allocation2 + $0xb1] sm:$0xff]  ;;  %v854_v18 = vmul.f32 %v3101_v39, %v853_v52  ;;  %v1192_v11 = vmul.f32 %v3764_v35, %v1025_v26  ;;  %v1043_v54 = vmul.f32 %v3714_v1, %v1025_v26 }
 0x1a5   :  { %v849_v4 = vsel %vm4055_vm14, %v848_v31, %v844_v29  ;;  %v1093_v52 = vmul.f32 %v3721_v3, %v1075_v12  ;;  %v1305_v31 = vadd.f32 %v1289_v25, %v1255_v9  ;;  %v1242_v26 = vmul.f32 %v3782_v10, %v1075_v12  ;;  %v1125_v29 = vld [vmem:[#allocation2 + $0xb2] sm:$0xff] }
 0x1a6   :  { %v3103_v16 = vpop.eup %3102  ;;  %v2818_v27 = vmul.f32 -1.442695, %v4077_v8  ;;  %v855_v57 = vadd.f32 %v3101_v39, %v854_v18  ;;  %v1208_v5 = vadd.f32 %v1192_v11, %v3968_v40  ;;  %v950_v49 = vmul.f32 %v849_v4, %v3908_v63 }
 0x1a7   :  { %v4106_v44 = vpop.eup %3104  ;;  %v4113_v43 = vadd.f32 1.0, %v3103_v16  ;;  %v1109_v9 = vadd.f32 %v1093_v52, %v1043_v54  ;;  %v1339_v12 = vmul.f32 %v3814_v20, %v3970_v58  ;;  %v1292_v11 = vmul.f32 %v3790_v59, %v1125_v29 }
 0x1a8   :  { %v859_v7 = vsel %vm858_vm4, %v3101_v39, %v855_v57  ;;  %v867_v33 = vmul.f32 %v4106_v44, %v4062_v53  ;;  %3106 = vpow2.f32 %v2818_v27  ;;  %1009 = vst.msk [vmem:[#allocation2 + $0xc1] sm:$0xff] %vm5488_vm5, %v950_v49  ;;  %v1258_v25 = vadd.f32 %v1242_v26, %v1208_v5 }
 0x1a9   :  { %v864_v40 = vsel %vm4065_vm1, %v863_v51, %v859_v7  ;;  %3108 = vrcp.f32 %v4113_v43  ;;  %v878_v49 = vor.u32 1.1754944e-38, %v877_v14  ;;  %v1324_v51 = vld [vmem:[#allocation2 + $0x90] sm:$0xff]  ;;  %vm872_vm7 = vweird.f32 %v4106_v44 }
 0x1aa   :  { %v951_v16 = vmul.f32 %v864_v40, %v3945_v30  ;;  %v868_v39 = vsub.f32 1.0, %v867_v33  ;;  %v892_v30 = vand.u32 2147483648, %v4113_v43  ;;  %v1143_v27 = vmul.f32 %v3746_v6, %v1125_v29  ;;  %vm4154_vm8 = vmor %vm871_vm6, %vm872_vm7 }
 0x1ab   :  { %v632_v63 = vpop.f32.mrf.mxu1  ;;  %v1340_v4 = vmul.f32 %v3814_v20, %v3994_v56  ;;  %v1341_v57 = vmul.f32 %v3814_v20, %v4059_v38  ;;  %v1342_v14 = vmul.f32 %v3814_v20, %v1324_v51  ;;  %v4148_v5 = vadd.f32 %v1292_v11, %v1258_v25 }
 0x1ac   :  { %v4129_v19 = vadd.f32 %v3621_v34, %v632_v63  ;;  %1010 = vst.msk [vmem:[#allocation2 + $0xd1] sm:$0xff] %vm5488_vm5, %v951_v16  ;;  %v869_v13 = vmul.f32 %v4106_v44, %v868_v39  ;;  %v1307_v34 = vadd.f32 %v1291_v47, %v1257_v41  ;;  %v1159_v58 = vadd.f32 %v1143_v27, %v1109_v9 }
 0x1ad   :  { %v890_v56 = vand.u32 2147483647, %v4113_v43  ;;  %v1306_v7 = vadd.f32 %v1290_v61, %v4089_v22  ;;  %v893_v53 = vor.u32 1.1754944e-38, %v892_v30  ;;  %vm886_vm10 = vweird.f32 %v4113_v43 }
 0x1ae   :  { %v2819_v28 = vmul.f32 -1.442695, %v4129_v19  ;;  %v3107_v45 = vpop.eup %3106  ;;  %v870_v54 = vadd.f32 %v4106_v44, %v869_v13  ;;  %v4172_v22 = vadd.f32 %v1339_v12, %v4022_v24  ;;  %v4176_v39 = vadd.f32 %v1340_v4, %v1305_v31  ;;  %v1374_v31 = vld [vmem:[#allocation2 + $0x91] sm:$0xff] }
 0x1af   :  { %v4146_v52 = vpop.eup %3108  ;;  %v1026_v38 = vld [vmem:[#allocation2 + $0xc0] sm:$0xff]  ;;  %v4174_v61 = vadd.f32 1.0, %v3107_v45  ;;  %v4180_v9 = vadd.f32 %v1342_v14, %v1307_v34  ;;  %vm4186_vm11 = vcmp.eq.f32.partialorder %v890_v56, 8.507059e+37  ;;  %v1389_v18 = vmul.f32 %v3835_v36, %v3972_v23 }
 0x1b0   :  { %v1076_v33 = vld [vmem:[#allocation2 + $0xc1] sm:$0xff]  ;;  %v874_v40 = vsel %vm4154_vm8, %v4106_v44, %v870_v54  ;;  %v882_v63 = vmul.f32 %v4146_v52, %v4113_v43  ;;  %3110 = vpow2.f32 %v2819_v28  ;;  %v1044_v41 = vmul.f32 %v3714_v1, %v1026_v38  ;;  %v2955_v54 = vld [vmem:[%s5468_s8 + $0x18] sm:$0xff] }
 0x1b1   :  { %v4160_v26 = vld [vmem:[#allocation2 + $0xc2] sm:$0xff]  ;;  %v1094_v29 = vmul.f32 %v3721_v3, %v1076_v33  ;;  %v1193_v16 = vmul.f32 %v3764_v35, %v1026_v38  ;;  %v4178_v44 = vadd.f32 %v1341_v57, %v1306_v7  ;;  %v879_v27 = vsel %vm4124_vm9, %v878_v49, %v874_v40  ;;  %1923 = vmatpush.bf16.msrb.mxu0 %v2955_v54  ;;  %v2954_v54 = vld [vmem:[%s5468_s8 + $0x10] sm:$0xff] }
 0x1b2   :  { %v1144_v51 = vmul.f32 %v3746_v6, %v4160_v26  ;;  %v883_v11 = vsub.f32 1.0, %v882_v63  ;;  %v4200_v49 = vmul.f32 %v3835_v36, %v3996_v55  ;;  %v4204_v57 = vmul.f32 %v3835_v36, %v4069_v50 }
 0x1b3   :  { %v1110_v25 = vadd.f32 %v1094_v29, %v1044_v41  ;;  %v1027_v13 = vld [vmem:[#allocation2 + $0xd0] sm:$0xff]  ;;  %v1209_v12 = vadd.f32 %v1193_v16, %v1159_v58  ;;  %v1243_v58 = vmul.f32 %v3782_v10, %v1076_v33  ;;  %v952_v47 = vmul.f32 %v879_v27, %v3985_v42  ;;  %v634_v56 = vpop.f32.mrf.mxu1  ;;  %v3258_v27 = vld [vmem:[%s5512_s3] ss:$0 sm:$0xff] }
 0x1b4   :  { %v1077_v30 = vld [vmem:[#allocation2 + $0xd1] sm:$0xff]  ;;  %v1045_v28 = vmul.f32 %v3714_v1, %v1027_v13  ;;  %v1194_v45 = vmul.f32 %v3764_v35, %v1027_v13  ;;  %vm887_vm12 = vweird.f32 %v4146_v52  ;;  %v4210_v7 = vmul.f32 %v3835_v36, %v1374_v31 }
 0x1b5   :  { %v1095_v34 = vmul.f32 %v3721_v3, %v1077_v30  ;;  %v1160_v4 = vadd.f32 %v1144_v51, %v1110_v25  ;;  %v1293_v23 = vmul.f32 %v3790_v59, %v4160_v26  ;;  %v4214_v55 = vld [vmem:[#allocation2 + $0xd2] sm:$0xff]  ;;  %v884_v50 = vmul.f32 %v4146_v52, %v883_v11  ;;  %1011 = vst.msk [vmem:[#allocation2 + $0xe1] sm:$0xff] %vm5488_vm5, %v952_v47  ;;  %vm888_vm13 = vmor %vm886_vm10, %vm887_vm12 }
 0x1b6   :  { %v3111_v14 = vpop.eup %3110  ;;  %3112 = vrcp.f32 %v4174_v61  ;;  %v1259_v63 = vadd.f32 %v1243_v58, %v1209_v12  ;;  %v1343_v42 = vmul.f32 %v3814_v20, %v1026_v38  ;;  %v1244_v29 = vmul.f32 %v3782_v10, %v1077_v30  ;;  %1924 = vmatpush.bf16.msrb.mxu0 %v2954_v54  ;;  %v1424_v54 = vld [vmem:[#allocation2 + $0x92] sm:$0xff] }
 0x1b7   :  { %v1210_v40 = vadd.f32 %v1194_v45, %v1160_v4  ;;  %v1111_v41 = vadd.f32 %v1095_v34, %v1045_v28  ;;  %v885_v16 = vadd.f32 %v4146_v52, %v884_v50  ;;  %v907_v25 = vand.u32 2147483648, %v4174_v61 }
 0x1b8   :  { %v4223_v51 = vadd.f32 1.0, %v3111_v14  ;;  %v4228_v11 = vadd.f32 %v3258_v27, %v634_v56  ;;  %v4231_v31 = vmul.f32 %v3835_v36, %v1076_v33  ;;  %v1145_v38 = vmul.f32 %v3746_v6, %v4214_v55 }
 0x1b9   :  { %v1294_v12 = vmul.f32 %v3790_v59, %v4214_v55  ;;  %v1344_v28 = vmul.f32 %v3814_v20, %v1027_v13  ;;  %v1260_v34 = vadd.f32 %v1244_v29, %v1210_v40  ;;  %v4243_v45 = vmul.f32 %v3835_v36, %v1077_v30 }
 0x1ba   :  { %v889_v33 = vsel %vm888_vm13, %v4146_v52, %v885_v16  ;;  %3114 = vrcp.f32 %v4223_v51  ;;  %v1309_v4 = vadd.f32 %v1293_v23, %v1259_v63  ;;  %v905_v14 = vand.u32 2147483647, %v4174_v61  ;;  %v2953_v23 = vld [vmem:[%s5468_s8 + $0x8] sm:$0xff] }
 0x1bb   :  { %v894_v13 = vsel %vm4186_vm11, %v893_v53, %v889_v33  ;;  %v2820_v43 = vmul.f32 -1.442695, %v4228_v11  ;;  %v1161_v30 = vadd.f32 %v1145_v38, %v1111_v41  ;;  %v4257_v52 = vor.u32 1.1754944e-38, %v907_v25  ;;  %1925 = vmatpush.bf16.msrb.mxu0 %v2953_v23 }
 0x1bc   :  { %v4254_v58 = vpop.eup %3112  ;;  %v953_v47 = vmul.f32 %v894_v13, %v4040_v60  ;;  %v922_v56 = vand.u32 2147483648, %v4223_v51  ;;  %vm901_vm14 = vweird.f32 %v4174_v61  ;;  %v920_v24 = vand.u32 2147483647, %v4223_v51  ;;  %v1028_v60 = vld [vmem:[#allocation2 + $0xe0] sm:$0xff] }
 0x1bd   :  { %v897_v53 = vmul.f32 %v4254_v58, %v4174_v61  ;;  %3116 = vpow2.f32 %v2820_v43  ;;  %v1359_v40 = vadd.f32 %v1343_v42, %v4148_v5  ;;  %v1078_v50 = vld [vmem:[#allocation2 + $0xe1] sm:$0xff]  ;;  %v1310_v63 = vadd.f32 %v1294_v12, %v1260_v34 }
 0x1be   :  { %1012 = vst.msk [vmem:[#allocation2 + $0xf1] sm:$0xff] %vm5488_vm5, %v953_v47  ;;  %v4269_v41 = vadd.f32 %v1344_v28, %v1309_v4  ;;  %v4273_v29 = vadd.f32 %v4007_v17, %v4024_v21  ;;  %v4276_v16 = vadd.f32 %v1389_v18, %v4172_v22  ;;  %v1046_v25 = vmul.f32 %v3714_v1, %v1028_v60  ;;  %v4280_v38 = vld [vmem:[#allocation2 + $0xe2] sm:$0xff] }
 0x1bf   :  { %v1096_v27 = vmul.f32 %v3721_v3, %v1078_v50  ;;  %v1195_v5 = vmul.f32 %v3764_v35, %v1028_v60  ;;  %vm902_vm15 = vweird.f32 %v4254_v58  ;;  %vm4284_vm0 = vcmp.eq.f32.partialorder %v905_v14, 8.507059e+37  ;;  %v1419_v17 = vld [vmem:[#allocation2 + $0x42] sm:$0xff] }
 0x1c0   :  { %vm916_vm1 = vweird.f32 %v4223_v51  ;;  %v3115_v21 = vpop.eup %3114  ;;  %v1345_v22 = vmul.f32 %v3814_v20, %v1028_v60  ;;  %v898_v18 = vsub.f32 1.0, %v897_v53  ;;  %v923_v1 = vor.u32 1.1754944e-38, %v922_v56  ;;  %v2952_v3 = vld [vmem:[%s5468_s8] sm:$0xff]  ;;  %vm903_vm4 = vmor %vm901_vm14, %vm902_vm15 }
 0x1c1   :  { %v4295_v12 = vadd.f32 %v4200_v49, %v4176_v39  ;;  %v1112_v28 = vadd.f32 %v1096_v27, %v1046_v25  ;;  %v1211_v34 = vadd.f32 %v1195_v5, %v1161_v30  ;;  %v912_v33 = vmul.f32 %v3115_v21, %v4223_v51  ;;  %v1420_v49 = vld [vmem:[#allocation2 + $0x52] sm:$0xff]  ;;  %1926 = vmatpush.bf16.msrb.mxu0 %v2952_v3  ;;  %v4329_v5 = vld [vmem:[%s5513_s30] ss:$0 sm:$0xff] }
 0x1c2   :  { %vm4298_vm2 = vcmp.eq.f32.partialorder %v920_v24, 8.507059e+37  ;;  %v4304_v4 = vadd.f32 %v4204_v57, %v4178_v44  ;;  %v1146_v13 = vmul.f32 %v3746_v6, %v4280_v38  ;;  %v899_v14 = vmul.f32 %v4254_v58, %v898_v18 }
 0x1c3   :  { %v4311_v39 = vadd.f32 %v4210_v7, %v4180_v9  ;;  %v4314_v43 = vmul.f32 %v3913_v48, %v1419_v17  ;;  %v3117_v30 = vpop.eup %3116  ;;  %v1245_v47 = vmul.f32 %v3782_v10, %v1078_v50  ;;  %v1295_v44 = vmul.f32 %v3790_v59, %v4280_v38 }
 0x1c4   :  { %v913_v57 = vsub.f32 1.0, %v912_v33  ;;  %vm917_vm3 = vweird.f32 %v3115_v21  ;;  %v900_v6 = vadd.f32 %v4254_v58, %v899_v14  ;;  %v4320_v56 = vadd.f32 1.0, %v3117_v30 }
 0x1c5   :  { %v1361_v23 = vadd.f32 %v1345_v22, %v1310_v63  ;;  %v1395_v9 = vmul.f32 %v3835_v36, %v1078_v50  ;;  %v1162_v7 = vadd.f32 %v1146_v13, %v1112_v28  ;;  %v1029_v53 = vld [vmem:[#allocation2 + $0xf0] sm:$0xff]  ;;  %v1261_v25 = vadd.f32 %v1245_v47, %v1211_v34  ;;  %v4335_v63 = vld [vmem:[%s5513_s30 + $0x1] ss:$0 sm:$0xff]  ;;  %vm918_vm6 = vmor %vm916_vm1, %vm917_vm3 }
 0x1c6   :  { %v1079_v24 = vld [vmem:[#allocation2 + $0xf1] sm:$0xff]  ;;  %v914_v60 = vmul.f32 %v3115_v21, %v913_v57  ;;  %v4324_v27 = vmul.f32 %v3913_v48, %v1420_v49  ;;  %v1047_v17 = vmul.f32 %v4329_v5, %v1029_v53  ;;  %v1196_v22 = vmul.f32 %v3764_v35, %v1029_v53 }
 0x1c7   :  { %v1097_v50 = vmul.f32 %v4335_v63, %v1079_v24  ;;  %v1439_v18 = vmul.f32 %v3913_v48, %v3999_v32  ;;  %v1129_v3 = vld [vmem:[#allocation2 + $0xf2] sm:$0xff]  ;;  %v904_v28 = vsel %vm903_vm4, %v4254_v58, %v900_v6  ;;  %3118 = vrcp.f32 %v4320_v56 }
 0x1c8   :  { %v915_v34 = vadd.f32 %v3115_v21, %v914_v60  ;;  %v4348_v33 = vadd.f32 %v4231_v31, %v1359_v40  ;;  %v1246_v35 = vmul.f32 %v3782_v10, %v1079_v24  ;;  %v909_v61 = vsel %vm4284_vm0, %v4257_v52, %v904_v28  ;;  %v4364_v10 = vld [vmem:[%s5513_s30 + $0x2] ss:$0 sm:$0xff]  ;;  %v1382_v47 = vld [vmem:[#allocation2 + $0x131] sm:$0xff] }
 0x1c9   :  { %v1113_v13 = vadd.f32 %v1097_v50, %v1047_v17  ;;  %v1440_v32 = vmul.f32 %v3913_v48, %v4033_v62  ;;  %v954_v58 = vmul.f32 %v909_v61, %v4077_v8  ;;  %v937_v31 = vand.u32 2147483648, %v4320_v56  ;;  %v1332_v62 = vld [vmem:[#allocation2 + $0x130] sm:$0xff] }
 0x1ca   :  { %v919_v14 = vsel %vm918_vm6, %v3115_v21, %v915_v34  ;;  %v1212_v40 = vadd.f32 %v1196_v22, %v1162_v7  ;;  %v1147_v52 = vmul.f32 %v4364_v10, %v1129_v3  ;;  %v935_v42 = vand.u32 2147483647, %v4320_v56  ;;  %v1432_v50 = vld [vmem:[#allocation2 + $0x132] sm:$0xff] }
 0x1cb   :  { %v924_v51 = vsel %vm4298_vm2, %v923_v1, %v919_v14  ;;  %v1311_v49 = vadd.f32 %v1295_v44, %v1261_v25  ;;  %1013 = vst.msk [vmem:[#allocation2 + $0x101] sm:$0xff] %vm5488_vm5, %v954_v58  ;;  %v1346_v30 = vmul.f32 %v3814_v20, %v1029_v53  ;;  %v1441_v57 = vmul.f32 %v3913_v48, %v4079_v15 }
 0x1cc   :  { %v955_v8 = vmul.f32 %v924_v51, %v4129_v19  ;;  %v1262_v21 = vadd.f32 %v1246_v35, %v1212_v40  ;;  %vm931_vm9 = vweird.f32 %v4320_v56  ;;  %v1163_v6 = vadd.f32 %v1147_v52, %v1113_v13 }
 0x1cd   :  { %v1296_v1 = vmul.f32 %v3790_v59, %v1129_v3  ;;  %v4379_v44 = vadd.f32 %v3937_v0, %v3866_v46  ;;  %v3119_v7 = vpop.eup %3118  ;;  %v938_v19 = vor.u32 1.1754944e-38, %v937_v31  ;;  %v4383_v53 = vmul.f32 %v3814_v20, %v1332_v62 }
 0x1ce   :  { %1014 = vst.msk [vmem:[#allocation2 + $0x111] sm:$0xff] %vm5488_vm5, %v955_v8  ;;  %v1362_v60 = vadd.f32 %v1346_v30, %v1311_v49  ;;  %v1396_v15 = vmul.f32 %v3835_v36, %v1079_v24  ;;  %v927_v25 = vmul.f32 %v3119_v7, %v4320_v56  ;;  %vm4387_vm7 = vcmp.eq.f32.partialorder %v935_v42, 8.507059e+37  ;;  %v3265_v56 = vld [vmem:[%s5513_s30 + $0x5] ss:$0 sm:$0xff] }
 0x1cf   :  { %v1312_v59 = vadd.f32 %v1296_v1, %v1262_v21  ;;  %v4392_v46 = vmul.f32 %v3835_v36, %v1382_v47  ;;  %v1410_v0 = vadd.f32 %v4243_v45, %v4269_v41  ;;  %vm932_vm8 = vweird.f32 %v3119_v7 }
 0x1d0   :  { %v1411_v20 = vadd.f32 %v1395_v9, %v1361_v23  ;;  %v1442_v22 = vmul.f32 %v3913_v48, %v1424_v54  ;;  %v1443_v24 = vmul.f32 %v3913_v48, %v4160_v26  ;;  %v928_v28 = vsub.f32 1.0, %v927_v25  ;;  %v5543_v23 = vld [vmem:[#allocation6_spill] sm:$0xff]  ;;  %vm933_vm10 = vmor %vm931_vm9, %vm932_vm8 }
 0x1d1   :  { %v4399_v34 = vadd.f32 %v1396_v15, %v1362_v60  ;;  %v1444_v13 = vmul.f32 %v3913_v48, %v4214_v55  ;;  %v1445_v36 = vmul.f32 %v3913_v48, %v4280_v38  ;;  %v1446_v35 = vmul.f32 %v3913_v48, %v1129_v3 }
 0x1d2   :  { %v4407_v45 = vmul.f32 %v3913_v48, %v1432_v50  ;;  %v1452_v41 = vadd.f32 %v4028_v2, %v3879_v37  ;;  %v1453_v26 = vadd.f32 %v4314_v43, %v5543_v23  ;;  %v1030_v9 = vld [vmem:[#allocation2 + $0x100] sm:$0xff]  ;;  %v929_v14 = vmul.f32 %v3119_v7, %v928_v28 }
 0x1d3   :  { %v1080_v61 = vld [vmem:[#allocation2 + $0x101] sm:$0xff]  ;;  %v1454_v55 = vadd.f32 %v4324_v27, %v4273_v29  ;;  %v1455_v38 = vadd.f32 %v1439_v18, %v4276_v16  ;;  %v1456_v3 = vadd.f32 %v1440_v32, %v4295_v12  ;;  %v1048_v31 = vmul.f32 %v4329_v5, %v1030_v9  ;;  %v4458_v50 = vld [vmem:[%s5544_s0] ss:$0 sm:$0xff] }
 0x1d4   :  { %v1130_v58 = vld [vmem:[#allocation2 + $0x102] sm:$0xff]  ;;  %v1098_v40 = vmul.f32 %v4335_v63, %v1080_v61  ;;  %v1457_v43 = vadd.f32 %v1441_v57, %v4304_v4  ;;  %v930_v29 = vadd.f32 %v3119_v7, %v929_v14  ;;  %v1458_v27 = vadd.f32 %v1442_v22, %v4311_v39 }
 0x1d5   :  { %v4422_v37 = vld [vmem:[%s5513_s30 + $0x3] ss:$0 sm:$0xff]  ;;  %v1031_v52 = vld [vmem:[#allocation2 + $0x110] sm:$0xff]  ;;  %v4429_v16 = vld [vmem:[%s5513_s30 + $0x6] ss:$0 sm:$0xff]  ;;  %v1459_v18 = vadd.f32 %v1443_v24, %v4348_v33  ;;  %v1148_v32 = vmul.f32 %v4364_v10, %v1130_v58  ;;  %v1297_v57 = vmul.f32 %v3265_v56, %v1130_v58  ;;  %v1460_v24 = vadd.f32 %v1444_v13, %v1410_v0 }
 0x1d6   :  { %v1197_v2 = vmul.f32 %v4422_v37, %v1030_v9  ;;  %v1081_v51 = vld [vmem:[#allocation2 + $0x111] sm:$0xff]  ;;  %v1347_v12 = vmul.f32 %v4429_v16, %v1030_v9  ;;  %v1049_v42 = vmul.f32 %v4329_v5, %v1031_v52  ;;  %v1114_v49 = vadd.f32 %v1098_v40, %v1048_v31  ;;  %v3264_v39 = vld [vmem:[%s5513_s30 + $0x4] ss:$0 sm:$0xff] }
 0x1d7   :  { %v1099_v4 = vmul.f32 %v4335_v63, %v1081_v51  ;;  %v1131_v62 = vld [vmem:[#allocation2 + $0x112] sm:$0xff]  ;;  %v934_v8 = vsel %vm933_vm10, %v3119_v7, %v930_v29  ;;  %v1198_v21 = vmul.f32 %v4422_v37, %v1031_v52  ;;  %v1247_v33 = vmul.f32 %v3264_v39, %v1080_v61 }
 0x1d8   :  { %v1213_v30 = vadd.f32 %v1197_v2, %v1163_v6  ;;  %v939_v5 = vsel %vm4387_vm7, %v938_v19, %v934_v8  ;;  %v1164_v63 = vadd.f32 %v1148_v32, %v1114_v49  ;;  %v1348_v6 = vmul.f32 %v4429_v16, %v1031_v52  ;;  %v3266_v19 = vld [vmem:[%s5513_s30 + $0x7] ss:$0 sm:$0xff] }
 0x1d9   :  { %v1115_v47 = vadd.f32 %v1099_v4, %v1049_v42  ;;  %v956_v1 = vmul.f32 %v939_v5, %v4228_v11  ;;  %v1363_v7 = vadd.f32 %v1347_v12, %v1312_v59  ;;  %v1149_v60 = vmul.f32 %v4364_v10, %v1131_v62 }
 0x1da   :  { %v1263_v54 = vadd.f32 %v1247_v33, %v1213_v30  ;;  %v1214_v15 = vadd.f32 %v1198_v21, %v1164_v63  ;;  %v1248_v25 = vmul.f32 %v3264_v39, %v1081_v51  ;;  %v1397_v17 = vmul.f32 %v3266_v19, %v1080_v61 }
 0x1db   :  { %1015 = vst.msk [vmem:[#allocation2 + $0x121] sm:$0xff] %vm5488_vm5, %v956_v1  ;;  %v1298_v11 = vmul.f32 %v3265_v56, %v1131_v62  ;;  %v1461_v59 = vadd.f32 %v1445_v36, %v1411_v20  ;;  %v1165_v28 = vadd.f32 %v1149_v60, %v1115_v47  ;;  %v1447_v9 = vmul.f32 %v3913_v48, %v1130_v58  ;;  %v4471_v20 = vld [vmem:[%s5467_s7] ss:$0 sm:$0xff] }
 0x1dc   :  { %v1313_v22 = vadd.f32 %v1297_v57, %v1263_v54  ;;  %v1264_v10 = vadd.f32 %v1248_v25, %v1214_v15  ;;  %v1413_v23 = vadd.f32 %v1397_v17, %v1363_v7  ;;  %v1398_v31 = vmul.f32 %v3266_v19, %v1081_v51 }
 0x1dd   :  { %v1448_v61 = vmul.f32 %v3913_v48, %v1131_v62  ;;  %v1462_v40 = vadd.f32 %v1446_v35, %v4399_v34  ;;  %v1471_v52 = vmul.f32 %v4458_v50, %v4379_v44  ;;  %v1472_v29 = vmul.f32 %v4458_v50, %v1452_v41 }
 0x1de   :  { %v1364_v14 = vadd.f32 %v1348_v6, %v1313_v22  ;;  %v1463_v2 = vadd.f32 %v1447_v9, %v1413_v23  ;;  %v1473_v0 = vmul.f32 %v4458_v50, %v1453_v26  ;;  %v1314_v13 = vadd.f32 %v1298_v11, %v1264_v10 }
 0x1df   :  { %v1474_v58 = vmul.f32 %v4458_v50, %v1454_v55  ;;  %v1475_v51 = vmul.f32 %v4458_v50, %v1455_v38  ;;  %v1476_v34 = vmul.f32 %v4458_v50, %v1456_v3  ;;  %v1477_v35 = vmul.f32 %v4458_v50, %v1457_v43 }
 0x1e0   :  { %v1414_v36 = vadd.f32 %v1398_v31, %v1364_v14  ;;  %v1478_v44 = vmul.f32 %v4458_v50, %v1458_v27  ;;  %v1479_v41 = vmul.f32 %v4458_v50, %v1459_v18  ;;  %v1480_v26 = vmul.f32 %v4458_v50, %v1460_v24 }
 0x1e1   :  { %v1481_v12 = vmul.f32 %v4458_v50, %v1461_v59  ;;  %v1482_v32 = vmul.f32 %v4458_v50, %v1462_v40  ;;  %v1483_v42 = vmul.f32 %v4458_v50, %v1463_v2  ;;  %v4484_v3 = vadd.f32 %v4471_v20, %v1471_v52 }
 0x1e2   :  { %v1181_v4 = vld [vmem:[#allocation2 + $0x120] sm:$0xff]  ;;  %v1464_v38 = vadd.f32 %v1448_v61, %v1414_v36  ;;  %v4487_v43 = vadd.f32 %v4471_v20, %v1472_v29  ;;  %v4490_v27 = vadd.f32 %v4471_v20, %v1473_v0  ;;  %v4495_v8 = vadd.f32 %v4471_v20, %v1474_v58 }
 0x1e3   :  { %v1231_v55 = vld [vmem:[#allocation2 + $0x121] sm:$0xff]  ;;  %v1199_v18 = vmul.f32 %v4422_v37, %v1181_v4  ;;  %v1349_v62 = vmul.f32 %v4429_v16, %v1181_v4  ;;  %v4498_v21 = vadd.f32 %v4471_v20, %v1475_v51  ;;  %v4501_v33 = vadd.f32 %v4471_v20, %v1476_v34 }
 0x1e4   :  { %v1281_v49 = vld [vmem:[#allocation2 + $0x122] sm:$0xff]  ;;  %v1249_v30 = vmul.f32 %v3264_v39, %v1231_v55  ;;  %v4504_v5 = vadd.f32 %v4471_v20, %v1477_v35  ;;  %v4507_v47 = vadd.f32 %v4471_v20, %v1478_v44  ;;  %v1399_v16 = vmul.f32 %v3266_v19, %v1231_v55 }
 0x1e5   :  { %v1215_v63 = vadd.f32 %v1199_v18, %v1165_v28  ;;  %v1299_v37 = vmul.f32 %v3265_v56, %v1281_v49  ;;  %v1365_v57 = vadd.f32 %v1349_v62, %v1314_v13  ;;  %v1449_v1 = vmul.f32 %v3913_v48, %v1281_v49 }
 0x1e6   :  { %v1484_v54 = vmul.f32 %v4458_v50, %v1464_v38  ;;  %v4512_v6 = vadd.f32 %v4471_v20, %v1479_v41  ;;  %v2821_v39 = vmul.f32 -1.442695, %v4484_v3  ;;  %v2822_v15 = vmul.f32 -1.442695, %v4487_v43 }
 0x1e7   :  { %v1265_v7 = vadd.f32 %v1249_v30, %v1215_v63  ;;  %v1415_v60 = vadd.f32 %v1399_v16, %v1365_v57  ;;  %v2823_v25 = vmul.f32 -1.442695, %v4490_v27  ;;  %v4518_v17 = vadd.f32 %v4471_v20, %v1480_v26 }
 0x1e8   :  { %3120 = vpow2.f32 %v2821_v39  ;;  %v2824_v56 = vmul.f32 -1.442695, %v4495_v8  ;;  %v2825_v48 = vmul.f32 -1.442695, %v4498_v21  ;;  %v2826_v22 = vmul.f32 -1.442695, %v4501_v33 }
 0x1e9   :  { %v1315_v19 = vadd.f32 %v1299_v37, %v1265_v7  ;;  %v1465_v11 = vadd.f32 %v1449_v1, %v1415_v60  ;;  %3122 = vpow2.f32 %v2822_v15  ;;  %v4524_v24 = vadd.f32 %v4471_v20, %v1481_v12 }
 0x1ea   :  { %v4527_v59 = vadd.f32 %v4471_v20, %v1482_v32  ;;  %3124 = vpow2.f32 %v2823_v25  ;;  %v2827_v28 = vmul.f32 -1.442695, %v4504_v5  ;;  %v2828_v9 = vmul.f32 -1.442695, %v4507_v47 }
 0x1eb   :  { %v1366_v10 = vadd.f32 %v4383_v53, %v1315_v19  ;;  %v1485_v23 = vmul.f32 %v4458_v50, %v1465_v11  ;;  %3126 = vpow2.f32 %v2824_v56  ;;  %v4534_v14 = vadd.f32 %v4471_v20, %v1483_v42 }
 0x1ec   :  { %3128 = vpow2.f32 %v2825_v48  ;;  %v2829_v31 = vmul.f32 -1.442695, %v4512_v6  ;;  %v4539_v40 = vadd.f32 %v4471_v20, %v1484_v54  ;;  %v2830_v2 = vmul.f32 -1.442695, %v4518_v17 }
 0x1ed   :  { %v1416_v61 = vadd.f32 %v4392_v46, %v1366_v10  ;;  %3130 = vpow2.f32 %v2826_v22  ;;  %v4543_v52 = vadd.f32 %v4471_v20, %v1485_v23  ;;  %v2831_v29 = vmul.f32 -1.442695, %v4524_v24 }
 0x1ee   :  { %v3121_v53 = vpop.eup %3120  ;;  %3132 = vpow2.f32 %v2827_v28  ;;  %v2832_v36 = vmul.f32 -1.442695, %v4527_v59  ;;  %v2833_v58 = vmul.f32 -1.442695, %v4534_v14  ;;  %v2834_v35 = vmul.f32 -1.442695, %v4539_v40 }
 0x1ef   :  { %v3123_v0 = vpop.eup %3122  ;;  %v1466_v13 = vadd.f32 %v4407_v45, %v1416_v61  ;;  %3134 = vpow2.f32 %v2828_v9  ;;  %v2835_v41 = vmul.f32 -1.442695, %v4543_v52  ;;  %v4555_v32 = vadd.f32 1.0, %v3121_v53 }
 0x1f0   :  { %v3125_v46 = vpop.eup %3124  ;;  %3136 = vpow2.f32 %v2829_v31  ;;  %v4558_v4 = vadd.f32 1.0, %v3123_v0 }
 0x1f1   :  { %v3127_v51 = vpop.eup %3126  ;;  %v1486_v34 = vmul.f32 %v4458_v50, %v1466_v13  ;;  %3138 = vpow2.f32 %v2830_v2  ;;  %v4560_v49 = vadd.f32 1.0, %v3125_v46  ;;  %v1582_v57 = vand.u32 2147483648, %v4555_v32 }
 0x1f2   :  { %v3129_v44 = vpop.eup %3128  ;;  %3140 = vpow2.f32 %v2831_v29  ;;  %v4562_v18 = vadd.f32 1.0, %v3127_v51  ;;  %v1597_v1 = vand.u32 2147483648, %v4558_v4  ;;  %v1580_v60 = vand.u32 2147483647, %v4555_v32 }
 0x1f3   :  { %v3131_v26 = vpop.eup %3130  ;;  %v4553_v45 = vadd.f32 %v4471_v20, %v1486_v34  ;;  %3142 = vpow2.f32 %v2832_v36  ;;  %v4564_v62 = vadd.f32 1.0, %v3129_v44  ;;  %v1612_v15 = vand.u32 2147483648, %v4560_v49 }
 0x1f4   :  { %v3133_v12 = vpop.eup %3132  ;;  %3144 = vpow2.f32 %v2833_v58  ;;  %v4567_v63 = vadd.f32 1.0, %v3131_v26  ;;  %v4586_v19 = vor.u32 1.1754944e-38, %v1582_v57  ;;  %v1595_v11 = vand.u32 2147483647, %v4558_v4 }
 0x1f5   :  { %5545 = vst [vmem:[#allocation6_spill] sm:$0xff] %v4553_v45  ;;  %v3135_v42 = vpop.eup %3134  ;;  %3146 = vpow2.f32 %v2834_v35  ;;  %v2836_v50 = vmul.f32 -1.442695, %v4553_v45  ;;  %v4574_v39 = vadd.f32 1.0, %v3133_v12  ;;  %v4595_v23 = vor.u32 1.1754944e-38, %v1597_v1 }
 0x1f6   :  { %v3137_v55 = vpop.eup %3136  ;;  %3148 = vpow2.f32 %v2835_v41  ;;  %v4582_v56 = vadd.f32 1.0, %v3135_v42  ;;  %v1610_v9 = vand.u32 2147483647, %v4560_v49  ;;  %v1627_v53 = vand.u32 2147483648, %v4562_v18 }
 0x1f7   :  { %v3139_v38 = vpop.eup %3138  ;;  %3150 = vpow2.f32 %v2836_v50  ;;  %v4584_v48 = vadd.f32 1.0, %v3137_v55  ;;  %vm1576_vm11 = vweird.f32 %v4555_v32  ;;  %v4613_v46 = vor.u32 1.1754944e-38, %v1612_v15 }
 0x1f8   :  { %v3141_v20 = vpop.eup %3140  ;;  %3152 = vrcp.f32 %v4555_v32  ;;  %v4591_v28 = vadd.f32 1.0, %v3139_v38  ;;  %vm1591_vm12 = vweird.f32 %v4558_v4  ;;  %v1625_v44 = vand.u32 2147483647, %v4562_v18 }
 0x1f9   :  { %v3143_v30 = vpop.eup %3142  ;;  %3154 = vrcp.f32 %v4558_v4  ;;  %v4600_v61 = vadd.f32 1.0, %v3141_v20  ;;  %vm1606_vm13 = vweird.f32 %v4560_v49  ;;  %v1640_v50 = vand.u32 2147483647, %v4564_v62 }
 0x1fa   :  { %v3145_v37 = vpop.eup %3144  ;;  %3156 = vrcp.f32 %v4560_v49  ;;  %v4608_v0 = vadd.f32 1.0, %v3143_v30  ;;  %vm1621_vm14 = vweird.f32 %v4562_v18  ;;  %v4634_v20 = vor.u32 1.1754944e-38, %v1627_v53 }
 0x1fb   :  { %v3147_v16 = vpop.eup %3146  ;;  %3158 = vrcp.f32 %v4562_v18  ;;  %v4617_v51 = vadd.f32 1.0, %v3145_v37  ;;  %vm4649_vm1 = vcmp.eq.f32.partialorder %v1580_v60, 8.507059e+37  ;;  %vm4653_vm2 = vcmp.eq.f32.partialorder %v1595_v11, 8.507059e+37 }
 0x1fc   :  { %v3149_v54 = vpop.eup %3148  ;;  %3160 = vrcp.f32 %v4564_v62  ;;  %v4625_v26 = vadd.f32 1.0, %v3147_v16  ;;  %vm4657_vm3 = vcmp.eq.f32.partialorder %v1610_v9, 8.507059e+37  ;;  %vm4667_vm9 = vcmp.eq.f32.partialorder %v1625_v44, 8.507059e+37 }
 0x1fd   :  { %v3151_v7 = vpop.eup %3150  ;;  %3162 = vrcp.f32 %v4567_v63  ;;  %v4631_v55 = vadd.f32 1.0, %v3149_v54  ;;  %v1657_v9 = vand.u32 2147483648, %v4567_v63  ;;  %vm4676_vm7 = vcmp.eq.f32.partialorder %v1640_v50, 8.507059e+37 }
 0x1fe   :  { %v4580_v25 = vpop.eup %3152  ;;  %3164 = vrcp.f32 %v4574_v39  ;;  %v4644_v54 = vadd.f32 1.0, %v3151_v7 }
 0x1ff   :  { %v4589_v22 = vpop.eup %3154  ;;  %v1572_v10 = vmul.f32 %v4580_v25, %v4555_v32  ;;  %vm1577_vm0 = vweird.f32 %v4580_v25  ;;  %3166 = vrcp.f32 %v4582_v56 }
 0x200   :  { %v4598_v31 = vpop.eup %3156  ;;  %v1587_v2 = vmul.f32 %v4589_v22, %v4558_v4  ;;  %vm1592_vm4 = vweird.f32 %v4589_v22  ;;  %vm4684_vm8 = vmor %vm1576_vm11, %vm1577_vm0  ;;  %3168 = vrcp.f32 %v4584_v48  ;;  %v1715_v4 = vand.u32 2147483647, %v4591_v28 }
 0x201   :  { %v4606_v29 = vpop.eup %3158  ;;  %v1573_v13 = vsub.f32 1.0, %v1572_v10  ;;  %v1602_v36 = vmul.f32 %v4598_v31, %v4560_v49  ;;  %vm1607_vm6 = vweird.f32 %v4598_v31  ;;  %vm4695_vm15 = vmor %vm1591_vm12, %vm1592_vm4  ;;  %3170 = vrcp.f32 %v4591_v28 }
 0x202   :  { %v4615_v58 = vpop.eup %3160  ;;  %v1588_v34 = vsub.f32 1.0, %v1587_v2  ;;  %v1617_v35 = vmul.f32 %v4606_v29, %v4562_v18  ;;  %v1642_v2 = vand.u32 2147483648, %v4564_v62  ;;  %vm1622_vm10 = vweird.f32 %v4606_v29  ;;  %vm4710_vm5 = vmor %vm1606_vm13, %vm1607_vm6 }
 0x203   :  { %v4623_v41 = vpop.eup %3162  ;;  %v1603_v12 = vsub.f32 1.0, %v1602_v36  ;;  %v1632_v42 = vmul.f32 %v4615_v58, %v4564_v62  ;;  %v1574_v37 = vmul.f32 %v4580_v25, %v1573_v13  ;;  %vm1637_vm11 = vweird.f32 %v4615_v58  ;;  %vm4730_vm13 = vmor %vm1621_vm14, %vm1622_vm10 }
 0x204   :  { %v1618_v38 = vsub.f32 1.0, %v1617_v35  ;;  %v1647_v30 = vmul.f32 %v4623_v41, %v4567_v63  ;;  %v1589_v57 = vmul.f32 %v4589_v22, %v1588_v34  ;;  %v4642_v15 = vpop.eup %3164  ;;  %v1655_v35 = vand.u32 2147483647, %v4567_v63 }
 0x205   :  { %v1604_v16 = vmul.f32 %v4598_v31, %v1603_v12  ;;  %v1633_v1 = vsub.f32 1.0, %v1632_v42  ;;  %v1662_v12 = vmul.f32 %v4642_v15, %v4574_v39  ;;  %v1575_v42 = vadd.f32 %v4580_v25, %v1574_v37  ;;  %v4792_v36 = vpop.eup %3166 }
 0x206   :  { %v1619_v10 = vmul.f32 %v4606_v29, %v1618_v38  ;;  %v1648_v53 = vsub.f32 1.0, %v1647_v30  ;;  %v1590_v38 = vadd.f32 %v4589_v22, %v1589_v57  ;;  %v1643_v37 = vor.u32 1.1754944e-38, %v1642_v2 }
 0x207   :  { %v1634_v7 = vmul.f32 %v4615_v58, %v1633_v1  ;;  %v1605_v30 = vadd.f32 %v4598_v31, %v1604_v16  ;;  %v1663_v45 = vsub.f32 1.0, %v1662_v12  ;;  %vm4701_vm0 = vcmp.eq.f32.partialorder %v1655_v35, 8.507059e+37 }
 0x208   :  { %v1649_v11 = vmul.f32 %v4623_v41, %v1648_v53  ;;  %v1620_v53 = vadd.f32 %v4606_v29, %v1619_v10  ;;  %vm1652_vm12 = vweird.f32 %v4623_v41  ;;  %v1658_v2 = vor.u32 1.1754944e-38, %v1657_v9 }
 0x209   :  { %v1635_v32 = vadd.f32 %v4615_v58, %v1634_v7  ;;  %v1664_v16 = vmul.f32 %v4642_v15, %v1663_v45  ;;  %v1579_v7 = vsel %vm4684_vm8, %v4580_v25, %v1575_v42  ;;  %v1594_v45 = vsel %vm4695_vm15, %v4589_v22, %v1590_v38 }
 0x20a   :  { %v1650_v10 = vadd.f32 %v4623_v41, %v1649_v11  ;;  %v1609_v49 = vsel %vm4710_vm5, %v4598_v31, %v1605_v30  ;;  %v1670_v12 = vand.u32 2147483647, %v4574_v39  ;;  %v1624_v25 = vsel %vm4730_vm13, %v4606_v29, %v1620_v53  ;;  %v4810_v30 = vpop.eup %3168 }
 0x20b   :  { %vm5566_vm15 = vweird.f32 %v4564_v62  ;;  %v1665_v31 = vadd.f32 %v4642_v15, %v1664_v16  ;;  %vm1667_vm5 = vweird.f32 %v4642_v15  ;;  %vm5569_vm14 = vweird.f32 %v4567_v63  ;;  %v4816_v44 = vpop.eup %3170 }
 0x20c   :  { %vm4740_vm4 = vmor %vm5566_vm15, %vm1637_vm11  ;;  %vm1666_vm8 = vweird.f32 %v4574_v39  ;;  %v1672_v62 = vand.u32 2147483648, %v4574_v39  ;;  %v4762_v11 = vsel %vm4649_vm1, %v4586_v19, %v1579_v7  ;;  %v4772_v63 = vsel %vm4657_vm3, %v4613_v46, %v1609_v49 }
 0x20d   :  { %v1639_v18 = vsel %vm4740_vm4, %v4615_v58, %v1635_v32  ;;  %vm4752_vm6 = vmor %vm5569_vm14, %vm1652_vm12  ;;  %v4767_v58 = vsel %vm4653_vm2, %v4595_v23, %v1594_v45  ;;  %v4780_v13 = vsel %vm4667_vm9, %v4634_v20, %v1624_v25  ;;  %vm4786_vm2 = vcmp.eq.f32.partialorder %v1670_v12, 8.507059e+37 }
 0x20e   :  { %v1654_v39 = vsel %vm4752_vm6, %v4623_v41, %v1650_v10  ;;  %vm4782_vm1 = vmor %vm1666_vm8, %vm1667_vm5  ;;  %v1687_v46 = vand.u32 2147483648, %v4582_v56  ;;  %3172 = vrcp.f32 %v4600_v61  ;;  %v4796_v41 = vsel %vm4676_vm7, %v1643_v37, %v1639_v18 }
 0x20f   :  { %v1669_v20 = vsel %vm4782_vm1, %v4642_v15, %v1665_v31  ;;  %v1702_v34 = vand.u32 2147483648, %v4584_v48  ;;  %3174 = vrcp.f32 %v4608_v0  ;;  %v4805_v60 = vsel %vm4701_vm0, %v1658_v2, %v1654_v39 }
 0x210   :  { %v1673_v9 = vor.u32 1.1754944e-38, %v1672_v62  ;;  %v1677_v42 = vmul.f32 %v4792_v36, %v4582_v56  ;;  %v1685_v38 = vand.u32 2147483647, %v4582_v56  ;;  %vm1681_vm3 = vweird.f32 %v4582_v56 }
 0x211   :  { %vm1696_vm9 = vweird.f32 %v4584_v48  ;;  %v1700_v15 = vand.u32 2147483647, %v4584_v48  ;;  %v1717_v1 = vand.u32 2147483648, %v4591_v28  ;;  %v1688_v50 = vor.u32 1.1754944e-38, %v1687_v46 }
 0x212   :  { %v4820_v53 = vsel %vm4786_vm2, %v1673_v9, %v1669_v20  ;;  %v1678_v37 = vsub.f32 1.0, %v1677_v42  ;;  %v1692_v32 = vmul.f32 %v4810_v30, %v4584_v48  ;;  %v1703_v57 = vor.u32 1.1754944e-38, %v1702_v34 }
 0x213   :  { %v1707_v16 = vmul.f32 %v4816_v44, %v4591_v28  ;;  %3176 = vrcp.f32 %v4617_v51  ;;  %vm4831_vm7 = vcmp.eq.f32.partialorder %v1685_v38, 8.507059e+37  ;;  %v1730_v49 = vand.u32 2147483647, %v4600_v61 }
 0x214   :  { %v4828_v10 = vpop.eup %3172  ;;  %v1679_v2 = vmul.f32 %v4792_v36, %v1678_v37  ;;  %v1693_v45 = vsub.f32 1.0, %v1692_v32  ;;  %v1732_v35 = vand.u32 2147483648, %v4600_v61  ;;  %vm1682_vm10 = vweird.f32 %v4792_v36 }
 0x215   :  { %v4837_v12 = vpop.eup %3174  ;;  %vm4840_vm11 = vcmp.eq.f32.partialorder %v1700_v15, 8.507059e+37  ;;  %v1708_v22 = vsub.f32 1.0, %v1707_v16  ;;  %vm1711_vm0 = vweird.f32 %v4591_v28  ;;  %v4845_v31 = vor.u32 1.1754944e-38, %v1717_v1  ;;  %vm4864_vm15 = vmor %vm1681_vm3, %vm1682_vm10 }
 0x216   :  { %v1722_v18 = vmul.f32 %v4828_v10, %v4600_v61  ;;  %v1680_v29 = vadd.f32 %v4792_v36, %v1679_v2  ;;  %v1694_v62 = vmul.f32 %v4810_v30, %v1693_v45  ;;  %vm1726_vm12 = vweird.f32 %v4600_v61 }
 0x217   :  { %v1737_v39 = vmul.f32 %v4837_v12, %v4608_v0  ;;  %v1745_v19 = vand.u32 2147483647, %v4608_v0  ;;  %vm1697_vm13 = vweird.f32 %v4810_v30  ;;  %v1709_v23 = vmul.f32 %v4816_v44, %v1708_v22 }
 0x218   :  { %v1723_v46 = vsub.f32 1.0, %v1722_v18  ;;  %v1747_v20 = vand.u32 2147483648, %v4608_v0  ;;  %v1695_v34 = vadd.f32 %v4810_v30, %v1694_v62  ;;  %v1733_v9 = vor.u32 1.1754944e-38, %v1732_v35  ;;  %vm4883_vm6 = vmor %vm1696_vm9, %vm1697_vm13 }
 0x219   :  { %v1738_v42 = vsub.f32 1.0, %v1737_v39  ;;  %3178 = vrcp.f32 %v4625_v26  ;;  %v3177_v38 = vpop.eup %3176  ;;  %vm1712_vm4 = vweird.f32 %v4816_v44  ;;  %vm4869_vm5 = vcmp.eq.f32.partialorder %v1715_v4, 8.507059e+37 }
 0x21a   :  { %v1724_v37 = vmul.f32 %v4828_v10, %v1723_v46  ;;  %vm1741_vm14 = vweird.f32 %v4608_v0  ;;  %v1760_v32 = vand.u32 2147483647, %v4617_v51  ;;  %v1684_v56 = vsel %vm4864_vm15, %v4792_v36, %v1680_v29  ;;  %vm4924_vm13 = vmor %vm1711_vm0, %vm1712_vm4 }
 0x21b   :  { %vm4887_vm8 = vcmp.eq.f32.partialorder %v1730_v49, 8.507059e+37  ;;  %v1739_v2 = vmul.f32 %v4837_v12, %v1738_v42  ;;  %v1752_v45 = vmul.f32 %v3177_v38, %v4617_v51  ;;  %v1762_v35 = vand.u32 2147483648, %v4617_v51 }
 0x21c   :  { %v1699_v36 = vsel %vm4883_vm6, %v4810_v30, %v1695_v34  ;;  %v1710_v48 = vadd.f32 %v4816_v44, %v1709_v23  ;;  %vm4898_vm1 = vcmp.eq.f32.partialorder %v1745_v19, 8.507059e+37  ;;  %v1748_v49 = vor.u32 1.1754944e-38, %v1747_v20 }
 0x21d   :  { %vm1756_vm2 = vweird.f32 %v4617_v51  ;;  %v1725_v18 = vadd.f32 %v4828_v10, %v1724_v37  ;;  %vm1727_vm3 = vweird.f32 %v4828_v10  ;;  %vm1742_vm9 = vweird.f32 %v4837_v12 }
 0x21e   :  { %v1753_v29 = vsub.f32 1.0, %v1752_v45  ;;  %v4908_v62 = vsel %vm4831_vm7, %v1688_v50, %v1684_v56  ;;  %v1740_v30 = vadd.f32 %v4837_v12, %v1739_v2  ;;  %vm4911_vm10 = vcmp.eq.f32.partialorder %v1760_v32, 8.507059e+37  ;;  %vm4933_vm15 = vmor %vm1726_vm12, %vm1727_vm3 }
 0x21f   :  { %3180 = vrcp.f32 %v4631_v55  ;;  %v4916_v19 = vpop.eup %3178  ;;  %v1704_v23 = vsel %vm4840_vm11, %v1703_v57, %v1699_v36  ;;  %vm1757_vm7 = vweird.f32 %v3177_v38  ;;  %v1763_v46 = vor.u32 1.1754944e-38, %v1762_v35  ;;  %vm4948_vm0 = vmor %vm1741_vm14, %vm1742_vm9 }
 0x220   :  { %v1754_v7 = vmul.f32 %v3177_v38, %v1753_v29  ;;  %v1714_v20 = vsel %vm4924_vm13, %v4816_v44, %v1710_v48  ;;  %v1767_v28 = vmul.f32 %v4916_v19, %v4625_v26  ;;  %vm1771_vm11 = vweird.f32 %v4625_v26  ;;  %vm4959_vm12 = vmor %vm1756_vm2, %vm1757_vm7 }
 0x221   :  { %v1775_v57 = vand.u32 2147483647, %v4625_v26  ;;  %v1729_v34 = vsel %vm4933_vm15, %v4828_v10, %v1725_v18  ;;  %v1777_v42 = vand.u32 2147483648, %v4625_v26  ;;  %3182 = vrcp.f32 %v4644_v54 }
 0x222   :  { %v1755_v44 = vadd.f32 %v3177_v38, %v1754_v7  ;;  %v1744_v15 = vsel %vm4948_vm0, %v4837_v12, %v1740_v30  ;;  %v1768_v0 = vsub.f32 1.0, %v1767_v28  ;;  %v1790_v37 = vand.u32 2147483647, %v4631_v55 }
 0x223   :  { %v1792_v32 = vand.u32 2147483648, %v4631_v55  ;;  %v1719_v56 = vsel %vm4869_vm5, %v4845_v31, %v1714_v20  ;;  %vm1786_vm4 = vweird.f32 %v4631_v55  ;;  %v1807_v51 = vand.u32 2147483648, %v4644_v54 }
 0x224   :  { %v1759_v16 = vsel %vm4959_vm12, %v3177_v38, %v1755_v44  ;;  %v1734_v2 = vsel %vm4887_vm8, %v1733_v9, %v1729_v34  ;;  %v1769_v45 = vmul.f32 %v4916_v19, %v1768_v0  ;;  %vm4975_vm14 = vcmp.eq.f32.partialorder %v1775_v57, 8.507059e+37 }
 0x225   :  { %v3181_v12 = vpop.eup %3180  ;;  %v1805_v1 = vand.u32 2147483647, %v4644_v54  ;;  %v1749_v31 = vsel %vm4898_vm1, %v1748_v49, %v1744_v15  ;;  %vm1772_vm5 = vweird.f32 %v4916_v19  ;;  %v1778_v38 = vor.u32 1.1754944e-38, %v1777_v42 }
 0x226   :  { %v1782_v36 = vmul.f32 %v3181_v12, %v4631_v55  ;;  %v1764_v4 = vsel %vm4911_vm10, %v1763_v46, %v1759_v16  ;;  %v1770_v9 = vadd.f32 %v4916_v19, %v1769_v45  ;;  %vm4987_vm6 = vcmp.eq.f32.partialorder %v1790_v37, 8.507059e+37  ;;  %vm5021_vm3 = vmor %vm1771_vm11, %vm1772_vm5  ;;  %v5620_v45 = vld [vmem:[#allocation6_spill] sm:$0xff] }
 0x227   :  { %v1793_v18 = vor.u32 1.1754944e-38, %v1792_v32  ;;  %vm1801_vm8 = vweird.f32 %v4644_v54  ;;  %v4994_v22 = vmul.f32 %v4762_v11, %v4484_v3  ;;  %v3183_v49 = vpop.eup %3182  ;;  %v1808_v30 = vor.u32 1.1754944e-38, %v1807_v51 }
 0x228   :  { %v1783_v29 = vsub.f32 1.0, %v1782_v36  ;;  %v4998_v39 = vmul.f32 %v4767_v58, %v4487_v43  ;;  %v5002_v50 = vmul.f32 %v4772_v63, %v4490_v27  ;;  %vm1787_vm1 = vweird.f32 %v3181_v12 }
 0x229   :  { %v1797_v7 = vmul.f32 %v3183_v49, %v4644_v54  ;;  %vm5005_vm2 = vcmp.eq.f32.partialorder %v1805_v1, 8.507059e+37  ;;  %v5011_v3 = vmul.f32 %v4780_v13, %v4495_v8  ;;  %v5015_v11 = vmul.f32 %v4796_v41, %v4498_v21  ;;  %vm1788_vm7 = vmor %vm1786_vm4, %vm1787_vm1 }
 0x22a   :  { %v1784_v27 = vmul.f32 %v3181_v12, %v1783_v29  ;;  %v5027_v58 = vmul.f32 %v4805_v60, %v4501_v33  ;;  %v5031_v8 = vmul.f32 %v4820_v53, %v4504_v5  ;;  %v5034_v21 = vmul.f32 %v1704_v23, %v4512_v6 }
 0x22b   :  { %v1774_v26 = vsel %vm5021_vm3, %v4916_v19, %v1770_v9  ;;  %v1798_v63 = vsub.f32 1.0, %v1797_v7  ;;  %v5040_v13 = vmul.f32 %v1719_v56, %v4518_v17  ;;  %v5043_v41 = vmul.f32 %v1734_v2, %v4524_v24 }
 0x22c   :  { %v1785_v33 = vadd.f32 %v3181_v12, %v1784_v27  ;;  %vm5608_vm9 = vcmask 523264   ;;  %vm1802_vm15 = vweird.f32 %v3183_v49  ;;  %v5055_v17 = vmul.f32 %v1749_v31, %v4527_v59 }
 0x22d   :  { %v1827_v60 = vsel %vm5608_vm9, %v4994_v22, 0.0  ;;  %vm5609_vm10 = vmmov %vm5608_vm9  ;;  %v1799_v53 = vmul.f32 %v3183_v49, %v1798_v63  ;;  %v1779_v19 = vsel %vm4975_vm14, %v1778_v38, %v1774_v26  ;;  %v5060_v20 = vmul.f32 %v1764_v4, %v4534_v14 }
 0x22e   :  { %v1828_v5 = vsel %vm5609_vm10, %v4998_v39, 0.0  ;;  %vm5610_vm13 = vmmov %vm5608_vm9  ;;  %v1789_v23 = vsel %vm1788_vm7, %v3181_v12, %v1785_v33  ;;  %v5077_v15 = vmul.f32 %v1779_v19, %v4539_v40  ;;  %v5085_v54 = vmul.f32 %v4908_v62, %v4507_v47 }
 0x22f   :  { %v1830_v6 = vsel %vm5610_vm13, %v5002_v50, 0.0  ;;  %v1829_v24 = vadd.f32 %v1828_v5, %v1827_v60  ;;  %vm5611_vm11 = vmmov %vm5608_vm9  ;;  %v1800_v28 = vadd.f32 %v3183_v49, %v1799_v53  ;;  %v1794_v34 = vsel %vm4987_vm6, %v1793_v18, %v1789_v23 }
 0x230   :  { %v1832_v25 = vsel %vm5611_vm11, %v5011_v3, 0.0  ;;  %vm5612_vm0 = vmmov %vm5608_vm9  ;;  %v5090_v16 = vmul.f32 %v1794_v34, %v4543_v52  ;;  %vm1889_vm7 = vcmask 1041409   ;;  %vm1962_vm11 = vcmask 1043456  }
 0x231   :  { %v1831_v57 = vadd.f32 %v1830_v6, %v1829_v24  ;;  %v1848_v55 = vsel %vm5612_vm0, %v5034_v21, 0.0  ;;  %vm5613_vm12 = vmmov %vm5612_vm0 }
 0x232   :  { %v1849_v59 = vsel %vm5613_vm12, %v5040_v13, 0.0  ;;  %vm1803_vm4 = vmor %vm1801_vm8, %vm1802_vm15 }
 0x233   :  { %vm5614_vm14 = vmmov %vm5612_vm0  ;;  %v1850_v61 = vadd.f32 %v1849_v59, %v1848_v55  ;;  %v1804_v42 = vsel %vm1803_vm4, %v3183_v49, %v1800_v28  ;;  %v1833_v10 = vadd.f32 %v1832_v25, %v1831_v57  ;;  %v2984_v55 = vld [vmem:[%s5469_s9] ss:$0 sm:$0xff] }
 0x234   :  { %v1834_v14 = vsel %vm5614_vm14, %v5015_v11, 0.0  ;;  %vm5615_vm5 = vmmov %vm5612_vm0  ;;  %v1809_v37 = vsel %vm5005_vm2, %v1808_v30, %v1804_v42 }
 0x235   :  { %v1851_v44 = vsel %vm5615_vm5, %v5043_v41, 0.0  ;;  %vm5616_vm1 = vmmov %vm5612_vm0  ;;  %v1835_v40 = vadd.f32 %v1834_v14, %v1833_v10  ;;  %v5097_v35 = vmul.f32 %v1809_v37, %v5620_v45  ;;  %v1953_v14 = vld [vmem:[%s5470_s10] sm:$0xf]  ;;  %vm1958_vm5 = vcmask 64512  }
 0x236   :  { %v1853_v0 = vsel %vm5616_vm1, %v5055_v17, 0.0  ;;  %vm5617_vm6 = vmmov %vm5612_vm0  ;;  %v1852_v56 = vadd.f32 %v1851_v44, %v1850_v61  ;;  %v1964_v61 = vsel %vm1962_vm11, %v1953_v14, 0 }
 0x237   :  { %v1836_v32 = vsel %vm5617_vm6, %v5027_v58, 0.0  ;;  %vm5618_vm8 = vmmov %vm5612_vm0  ;;  %1973 = vmatpush.bf16.msra.mxu3 %v1964_v61 }
 0x238   :  { %v1855_v51 = vsel %vm5618_vm8, %v5060_v20, 0.0  ;;  %vm5619_vm3 = vmmov %vm5612_vm0  ;;  %v1854_v2 = vadd.f32 %v1853_v0, %v1852_v56  ;;  %v1837_v47 = vadd.f32 %v1836_v32, %v1835_v40 }
 0x239   :  { %v1838_v12 = vsel %vm5619_vm3, %v5031_v8, 0.0  ;;  %vm5621_vm2 = vmmov %vm5612_vm0 }
 0x23a   :  { %v1857_v62 = vsel %vm5621_vm2, %v5077_v15, 0.0  ;;  %vm5622_vm9 = vmmov %vm5612_vm0  ;;  %v1856_v52 = vadd.f32 %v1855_v51, %v1854_v2  ;;  %v1839_v31 = vadd.f32 %v1838_v12, %v1837_v47 }
 0x23b   :  { %v1840_v1 = vsel %vm5622_vm9, %v5085_v54, 0.0  ;;  %vm5623_vm10 = vmmov %vm5612_vm0 }
 0x23c   :  { %v1859_v38 = vsel %vm5623_vm10, %v5090_v16, 0.0  ;;  %v1858_v36 = vadd.f32 %v1857_v62, %v1856_v52  ;;  %v1841_v4 = vadd.f32 %v1840_v1, %v1839_v31  ;;  %vm5624_vm13 = vmmov %vm5612_vm0  ;;  %v2985_v31 = vld [vmem:[%s5471_s11] ss:$0 sm:$0xff] }
 0x23d   :  { %v1861_v9 = vsel %vm5624_vm13, %v5097_v35, 0.0  ;;  %vm5625_vm15 = vmmov %vm5612_vm0 }
 0x23e   :  { %v1860_v48 = vadd.f32 %v1859_v38, %v1858_v36  ;;  %v1842_v18 = vrot.slane %v1841_v4, 4  ;;  %vm5626_vm9 = vmmov %vm5621_vm2 }
 0x23f   :  { %vm5627_vm10 = vmmov %vm5621_vm2 }
 0x240   :  { %v1862_v49 = vadd.f32 %v1861_v9, %v1860_v48  ;;  %v1843_v29 = vadd.f32 %v1842_v18, %v1841_v4  ;;  %v2959_v4 = vld [vmem:[%s5472_s12 + $0x18] sm:$0xff]  ;;  %v2958_v48 = vld [vmem:[%s5472_s12 + $0x10] sm:$0xff]  ;;  %v2957_v18 = vld [vmem:[%s5472_s12 + $0x8] sm:$0xff] }
 0x241   :  { %2092 = vmatpush.bf16.msrb.mxu3 %v2959_v4  ;;  %vm5628_vm13 = vmmov %vm5621_vm2 }
 0x242   :  { %v1863_v30 = vrot.slane %v1862_v49, 4  ;;  %v1844_v7 = vrot.slane %v1843_v29, 2 }
 0x244   :  { %v1864_v46 = vadd.f32 %v1863_v30, %v1862_v49  ;;  %v1845_v43 = vadd.f32 %v1844_v7, %v1843_v29  ;;  %v2956_v30 = vld [vmem:[%s5472_s12] sm:$0xff] }
 0x245   :  { %2093 = vmatpush.bf16.msrb.mxu3 %v2958_v48 }
 0x246   :  { %v1865_v27 = vrot.slane %v1864_v46, 2  ;;  %v1846_v26 = vrot.slane %v1845_v43, 1 }
 0x248   :  { %v1866_v63 = vadd.f32 %v1865_v27, %v1864_v46  ;;  %v1847_v33 = vadd.f32 %v1846_v26, %v1845_v43 }
 0x249   :  { %2094 = vmatpush.bf16.msrb.mxu3 %v2957_v18 }
 0x24a   :  { %v1867_v60 = vrot.slane %v1866_v63, 1  ;;  %v1869_v5 = vmul.f32 0.015625, %v1847_v33 }
 0x24c   :  { %v1868_v6 = vadd.f32 %v1867_v60, %v1866_v63  ;;  %v1871_v24 = vpack.c.bf16 %v1869_v5, %v1869_v5 }
 0x24d   :  { %2095 = vmatpush.bf16.msrb.mxu3 %v2956_v30 }
 0x24e   :  { %v1870_v53 = vmul.f32 0.015625, %v1868_v6  ;;  %v1887_v23 = vunpack.c.l.b16 %v1871_v24 }
 0x250   :  { %v1872_v19 = vpack.c.bf16 %v1870_v53, %v1870_v53 }
 0x252   :  { %v1888_v25 = vunpack.c.l.b16 %v1872_v19 }
 0x254   :  { %v1890_v28 = vsel %vm1889_vm7, %v1888_v25, %v1887_v23 }
 0x255   :  { %v1891_v57 = vpack.c.b16 %v1890_v28, %v1890_v28 }
 0x257   :  { %2853 = vmatmul.msk.bf16.vlgmr.msrb.gmra.mxu0 %vm5625_vm15, %v1891_v57  ;;  %vm5629_vm15 = vmmov %vm5621_vm2 }
 0x2d4   :  { %v1928_v59 = vpop.f32.mrf.mxu0 }
 0x2d5   :  { %v1929_v34 = vadd.f32 %v2984_v55, %v1928_v59 }
 0x2d7   :  { %v2854_v44 = vmul.f32 -1.442695, %v1929_v34 }
 0x2d9   :  { %3184 = vpow2.f32 %v2854_v44 }
 0x2dc   :  { %v1930_v42 = vpop.f32.mrf.mxu0 }
 0x2df   :  { %v3185_v10 = vpop.eup %3184 }
 0x2e0   :  { %v1935_v0 = vadd.f32 1.0, %v3185_v10 }
 0x2e2   :  { %3186 = vrcp.f32 %v1935_v0  ;;  %v1947_v40 = vand.u32 2147483648, %v1935_v0  ;;  %v1945_v12 = vand.u32 2147483647, %v1935_v0  ;;  %vm1941_vm12 = vweird.f32 %v1935_v0 }
 0x2e4   :  { %v1948_v45 = vor.u32 1.1754944e-38, %v1947_v40  ;;  %vm1946_vm14 = vcmp.eq.f32.partialorder %v1945_v12, 8.507059e+37 }
 0x2e8   :  { %v3187_v37 = vpop.eup %3186 }
 0x2e9   :  { %v1937_v32 = vmul.f32 %v3187_v37, %v1935_v0  ;;  %vm1942_vm0 = vweird.f32 %v3187_v37 }
 0x2ea   :  { %vm1943_vm4 = vmor %vm1941_vm12, %vm1942_vm0 }
 0x2eb   :  { %v1938_v56 = vsub.f32 1.0, %v1937_v32  ;;  %vm5630_vm0 = vmmov %vm5621_vm2 }
 0x2ec   :  { %vm5631_vm12 = vmmov %vm5630_vm0 }
 0x2ed   :  { %v1939_v51 = vmul.f32 %v3187_v37, %v1938_v56 }
 0x2ef   :  { %v1940_v2 = vadd.f32 %v3187_v37, %v1939_v51  ;;  %v2986_v51 = vld [vmem:[%s5473_s13] ss:$0 sm:$0xff]  ;;  %s3294_s13 = smov [#allocation3]  }
 0x2f1   :  { %v1944_v47 = vsel %vm1943_vm4, %v3187_v37, %v1940_v2  ;;  %vm5632_vm4 = vmmov %vm5630_vm0 }
 0x2f2   :  { %v1949_v62 = vsel %vm1946_vm14, %v1948_v45, %v1944_v47 }
 0x2f3   :  { %v1951_v1 = vmul.f32 %v1949_v62, %v1929_v34 }
 0x2f5   :  { %v1952_v52 = vpack.c.bf16 %v1951_v1, %v1951_v1 }
 0x2f7   :  { %2855 = vmatmul.msk.bf16.vlgmr.msra.gmra.mxu3 %vm1958_vm5, %v1952_v52 }
 0x37a   :  { %v1975_v38 = vpop.f32.mrf.mxu3 }
 0x37b   :  { %v1976_v36 = vadd.f32 %v2985_v31, %v1975_v38 }
 0x37d   :  { %v2856_v9 = vmul.f32 -1.442695, %v1976_v36 }
 0x37f   :  { %3188 = vpow2.f32 %v2856_v9 }
 0x382   :  { %v1977_v49 = vpop.f32.mrf.mxu3 }
 0x385   :  { %v3189_v29 = vpop.eup %3188 }
 0x386   :  { %v1982_v7 = vadd.f32 1.0, %v3189_v29 }
 0x388   :  { %3190 = vrcp.f32 %v1982_v7  ;;  %v1994_v26 = vand.u32 2147483648, %v1982_v7  ;;  %v1992_v33 = vand.u32 2147483647, %v1982_v7  ;;  %vm1988_vm6 = vweird.f32 %v1982_v7 }
 0x38a   :  { %v1995_v5 = vor.u32 1.1754944e-38, %v1994_v26  ;;  %vm1993_vm3 = vcmp.eq.f32.partialorder %v1992_v33, 8.507059e+37 }
 0x38e   :  { %v3191_v46 = vpop.eup %3190 }
 0x38f   :  { %v1984_v43 = vmul.f32 %v3191_v46, %v1982_v7  ;;  %vm1989_vm1 = vweird.f32 %v3191_v46 }
 0x390   :  { %vm1990_vm8 = vmor %vm1988_vm6, %vm1989_vm1 }
 0x391   :  { %v1985_v27 = vsub.f32 1.0, %v1984_v43 }
 0x393   :  { %v1986_v63 = vmul.f32 %v3191_v46, %v1985_v27 }
 0x395   :  { %v1987_v60 = vadd.f32 %v3191_v46, %v1986_v63 }
 0x397   :  { %v1991_v6 = vsel %vm1990_vm8, %v3191_v46, %v1987_v60 }
 0x398   :  { %v1996_v53 = vsel %vm1993_vm3, %v1995_v5, %v1991_v6 }
 0x399   :  { %v2000_v24 = vperm.slane %v1996_v53, 0 }
 0x39b   :  { %v2004_v19 = vmul.f32 %v2000_v24, %v4994_v22  ;;  %v2005_v23 = vmul.f32 %v2000_v24, %v4998_v39  ;;  %v2006_v28 = vmul.f32 %v2000_v24, %v5002_v50  ;;  %v2007_v57 = vmul.f32 %v2000_v24, %v5011_v3 }
 0x39c   :  { %v2008_v59 = vmul.f32 %v2000_v24, %v5015_v11  ;;  %v2009_v34 = vmul.f32 %v2000_v24, %v5027_v58  ;;  %v2010_v22 = vmul.f32 %v2000_v24, %v5031_v8  ;;  %v2011_v39 = vmul.f32 %v2000_v24, %v5085_v54 }
 0x39d   :  { %v2020_v25 = vpack.c.bf16 %v2005_v23, %v2004_v19  ;;  %v2021_v55 = vpack.c.bf16 %v2007_v57, %v2006_v28  ;;  %v1999_v50 = vrot.slane %v1996_v53, 1 }
 0x39e   :  { %v2022_v14 = vpack.c.bf16 %v2009_v34, %v2008_v59  ;;  %v2023_v61 = vpack.c.bf16 %v2011_v39, %v2010_v22 }
 0x39f   :  { %2873 = vmatmul.msk.bf16.vlgmr.msrb.gmra.mxu3 %vm5621_vm2, %v2020_v25  ;;  %v2001_v44 = vperm.slane %v1999_v50, 0 }
 0x3a1   :  { %v2012_v3 = vmul.f32 %v2001_v44, %v5034_v21  ;;  %v2013_v42 = vmul.f32 %v2001_v44, %v5040_v13  ;;  %v2014_v11 = vmul.f32 %v2001_v44, %v5043_v41  ;;  %v2015_v58 = vmul.f32 %v2001_v44, %v5055_v17  ;;  %v2147_v21 = vld [vmem:[%s5474_s14 + $0x8] sm:$0xf] }
 0x3a2   :  { %v2016_v8 = vmul.f32 %v2001_v44, %v5060_v20  ;;  %v2017_v54 = vmul.f32 %v2001_v44, %v5077_v15  ;;  %v2157_v13 = vunpack.c.l.b16 %v2147_v21  ;;  %v2018_v17 = vmul.f32 %v2001_v44, %v5090_v16  ;;  %v2960_v20 = vld [vmem:[%s5474_s14] sm:$0xff]  ;;  %s2718_s14 = sshll.u32 %s3294_s13, 4  ;;  %s2719_s14 = int_to_ptr.vmem [resolvable:$true] %s2718_s14 }
 0x3a3   :  { %v2024_v10 = vpack.c.bf16 %v2013_v42, %v2012_v3  ;;  %v2025_v0 = vpack.c.bf16 %v2015_v58, %v2014_v11  ;;  %v2019_v56 = vmul.f32 %v2001_v44, %v5097_v35 }
 0x3a4   :  { %v2026_v37 = vpack.c.bf16 %v2017_v54, %v2016_v8  ;;  %v2159_v32 = vpack.c.b16 %v2157_v13, %v2157_v13 }
 0x3a5   :  { %v2027_v40 = vpack.c.bf16 %v2019_v56, %v2018_v17 }
 0x3a6   :  { %v2187_v41 = vsel %vm1962_vm11, %v2159_v32, 0  ;;  %vm2161_vm11 = vcmask 195584  }
 0x3a7   :  { %2195 = vmatpush.bf16.msra.mxu2 %v2187_v41 }
 0x3ab   :  { %2196 = vmatpush.bf16.msra.mxu2 %v2960_v20 }
 0x3af   :  { %2874 = vmatmul.msk.bf16.gmra.mxu3 %vm5626_vm9, %v2021_v55 }
 0x3bf   :  { %2875 = vmatmul.msk.bf16.gmra.mxu3 %vm5627_vm10, %v2022_v14  ;;  %v5176_v14 = vld [vmem:[%s5475_s15] ss:$0 sm:$0xff] }
 0x3cf   :  { %2876 = vmatmul.msk.bf16.gmra.mxu3 %vm5628_vm13, %v2023_v61 }
 0x3df   :  { %2877 = vmatmul.msk.bf16.gmra.mxu3 %vm5629_vm15, %v2024_v10 }
 0x3ef   :  { %2878 = vmatmul.msk.bf16.gmra.mxu3 %vm5630_vm0, %v2025_v0 }
 0x3ff   :  { %2879 = vmatmul.msk.bf16.gmra.mxu3 %vm5631_vm12, %v2026_v37 }
 0x40f   :  { %2880 = vmatmul.msk.bf16.gmra.mxu3 %vm5632_vm4, %v2027_v40 }
 0x422   :  { %v2097_v15 = vpop.f32.mrf.mxu3 }
 0x423   :  { %v2098_v2 = vadd.f32 %v2986_v51, %v2097_v15 }
 0x42a   :  { %v2099_v12 = vpop.f32.mrf.mxu3 }
 0x42b   :  { %v2100_v45 = vadd.f32 %v2986_v51, %v2099_v12 }
 0x42d   :  { %v2137_v16 = vpack.c.bf16 %v2100_v45, %v2098_v2 }
 0x42f   :  { %2885 = vmatmul.msk.bf16.vlgmr.msra.gmra.mxu2 %vm2161_vm11, %v2137_v16 }
 0x432   :  { %v2102_v35 = vpop.f32.mrf.mxu3 }
 0x433   :  { %v2103_v62 = vadd.f32 %v2986_v51, %v2102_v35 }
 0x43a   :  { %v2104_v47 = vpop.f32.mrf.mxu3 }
 0x43b   :  { %v2105_v1 = vadd.f32 %v2986_v51, %v2104_v47 }
 0x43d   :  { %v2138_v52 = vpack.c.bf16 %v2105_v1, %v2103_v62 }
 0x43f   :  { %2886 = vmatmul.msk.bf16.gmra.mxu2 %vm2161_vm11, %v2138_v52 }
 0x442   :  { %v2107_v31 = vpop.f32.mrf.mxu3 }
 0x443   :  { %v2108_v36 = vadd.f32 %v2986_v51, %v2107_v31 }
 0x44a   :  { %v2109_v38 = vpop.f32.mrf.mxu3 }
 0x44b   :  { %v2110_v4 = vadd.f32 %v2986_v51, %v2109_v38 }
 0x44d   :  { %v2139_v9 = vpack.c.bf16 %v2110_v4, %v2108_v36 }
 0x44f   :  { %2887 = vmatmul.msk.bf16.gmra.mxu2 %vm2161_vm11, %v2139_v9 }
 0x452   :  { %v2112_v48 = vpop.f32.mrf.mxu3 }
 0x453   :  { %v2113_v49 = vadd.f32 %v2986_v51, %v2112_v48 }
 0x45a   :  { %v2114_v18 = vpop.f32.mrf.mxu3 }
 0x45b   :  { %v2115_v29 = vadd.f32 %v2986_v51, %v2114_v18 }
 0x45d   :  { %v2140_v30 = vpack.c.bf16 %v2115_v29, %v2113_v49 }
 0x45f   :  { %2888 = vmatmul.msk.bf16.gmra.mxu2 %vm2161_vm11, %v2140_v30 }
 0x462   :  { %v2117_v7 = vpop.f32.mrf.mxu3 }
 0x463   :  { %v2118_v43 = vadd.f32 %v2986_v51, %v2117_v7 }
 0x46a   :  { %v2119_v46 = vpop.f32.mrf.mxu3 }
 0x46b   :  { %v2120_v27 = vadd.f32 %v2986_v51, %v2119_v46 }
 0x46d   :  { %v2141_v26 = vpack.c.bf16 %v2120_v27, %v2118_v43 }
 0x46f   :  { %2889 = vmatmul.msk.bf16.gmra.mxu2 %vm2161_vm11, %v2141_v26 }
 0x472   :  { %v2122_v63 = vpop.f32.mrf.mxu3 }
 0x473   :  { %v2123_v60 = vadd.f32 %v2986_v51, %v2122_v63 }
 0x47a   :  { %v2124_v33 = vpop.f32.mrf.mxu3 }
 0x47b   :  { %v2125_v5 = vadd.f32 %v2986_v51, %v2124_v33 }
 0x47d   :  { %v2142_v6 = vpack.c.bf16 %v2125_v5, %v2123_v60 }
 0x47f   :  { %2890 = vmatmul.msk.bf16.gmra.mxu2 %vm2161_vm11, %v2142_v6 }
 0x482   :  { %v2127_v53 = vpop.f32.mrf.mxu3 }
 0x483   :  { %v2128_v19 = vadd.f32 %v2986_v51, %v2127_v53 }
 0x48a   :  { %v2129_v24 = vpop.f32.mrf.mxu3 }
 0x48b   :  { %v2130_v23 = vadd.f32 %v2986_v51, %v2129_v24 }
 0x48d   :  { %v2143_v25 = vpack.c.bf16 %v2130_v23, %v2128_v19 }
 0x48f   :  { %2891 = vmatmul.msk.bf16.gmra.mxu2 %vm2161_vm11, %v2143_v25 }
 0x492   :  { %v2132_v28 = vpop.f32.mrf.mxu3 }
 0x493   :  { %v2133_v55 = vadd.f32 %v2986_v51, %v2132_v28 }
 0x49a   :  { %v2134_v57 = vpop.f32.mrf.mxu3 }
 0x49b   :  { %v2135_v59 = vadd.f32 %v2986_v51, %v2134_v57 }
 0x49d   :  { %v2144_v34 = vpack.c.bf16 %v2135_v59, %v2133_v55 }
 0x49f   :  { %2892 = vmatmul.msk.bf16.gmra.mxu2 %vm2161_vm11, %v2144_v34 }
 0x4b2   :  { %v2198_v22 = vpop.f32.mrf.mxu2 }
 0x4b3   :  { %v2199_v39 = vadd.f32 %v5176_v14, %v2198_v22 }
 0x4b5   :  { %v2893_v61 = vmul.f32 -1.442695, %v2199_v39 }
 0x4b7   :  { %3192 = vpow2.f32 %v2893_v61 }
 0x4ba   :  { %v2200_v50 = vpop.f32.mrf.mxu2 }
 0x4bb   :  { %v2201_v44 = vadd.f32 %v5176_v14, %v2200_v50 }
 0x4bd   :  { %v3193_v3 = vpop.eup %3192  ;;  %v2894_v42 = vmul.f32 -1.442695, %v2201_v44 }
 0x4be   :  { %v2286_v10 = vadd.f32 1.0, %v3193_v3 }
 0x4bf   :  { %3194 = vpow2.f32 %v2894_v42 }
 0x4c0   :  { %3196 = vrcp.f32 %v2286_v10  ;;  %v2313_v2 = vand.u32 2147483648, %v2286_v10  ;;  %vm2307_vm5 = vweird.f32 %v2286_v10  ;;  %v2311_v45 = vand.u32 2147483647, %v2286_v10 }
 0x4c2   :  { %v2203_v11 = vpop.f32.mrf.mxu2  ;;  %v2314_v36 = vor.u32 1.1754944e-38, %v2313_v2  ;;  %vm2312_vm8 = vcmp.eq.f32.partialorder %v2311_v45, 8.507059e+37 }
 0x4c3   :  { %v5181_v58 = vadd.f32 %v5176_v14, %v2203_v11 }
 0x4c5   :  { %v3195_v0 = vpop.eup %3194  ;;  %v2895_v8 = vmul.f32 -1.442695, %v5181_v58 }
 0x4c6   :  { %v3197_v54 = vpop.eup %3196  ;;  %v2287_v37 = vadd.f32 1.0, %v3195_v0 }
 0x4c7   :  { %v2303_v21 = vmul.f32 %v3197_v54, %v2286_v10  ;;  %3198 = vpow2.f32 %v2895_v8  ;;  %vm2308_vm14 = vweird.f32 %v3197_v54 }
 0x4c8   :  { %3200 = vrcp.f32 %v2287_v37  ;;  %vm5188_vm1 = vmor %vm2307_vm5, %vm2308_vm14  ;;  %v2326_v47 = vand.u32 2147483647, %v2287_v37  ;;  %v2328_v62 = vand.u32 2147483648, %v2287_v37  ;;  %vm2322_vm3 = vweird.f32 %v2287_v37 }
 0x4c9   :  { %v2304_v13 = vsub.f32 1.0, %v2303_v21 }
 0x4ca   :  { %v2205_v32 = vpop.f32.mrf.mxu2  ;;  %v2329_v29 = vor.u32 1.1754944e-38, %v2328_v62  ;;  %vm2327_vm9 = vcmp.eq.f32.partialorder %v2326_v47, 8.507059e+37 }
 0x4cb   :  { %v2305_v41 = vmul.f32 %v3197_v54, %v2304_v13  ;;  %v5185_v17 = vadd.f32 %v5176_v14, %v2205_v32 }
 0x4cd   :  { %v3199_v56 = vpop.eup %3198  ;;  %v2896_v40 = vmul.f32 -1.442695, %v5185_v17  ;;  %v2306_v51 = vadd.f32 %v3197_v54, %v2305_v41 }
 0x4ce   :  { %v3201_v20 = vpop.eup %3200  ;;  %v2288_v15 = vadd.f32 1.0, %v3199_v56 }
 0x4cf   :  { %v2318_v12 = vmul.f32 %v3201_v20, %v2287_v37  ;;  %3202 = vpow2.f32 %v2896_v40  ;;  %v2310_v52 = vsel %vm5188_vm1, %v3197_v54, %v2306_v51  ;;  %vm2323_vm6 = vweird.f32 %v3201_v20 }
 0x4d0   :  { %3204 = vrcp.f32 %v2288_v15  ;;  %v2315_v49 = vsel %vm2312_vm8, %v2314_v36, %v2310_v52  ;;  %vm2324_vm2 = vmor %vm2322_vm3, %vm2323_vm6  ;;  %v2341_v33 = vand.u32 2147483647, %v2288_v15  ;;  %v2343_v60 = vand.u32 2147483648, %v2288_v15 }
 0x4d1   :  { %v2319_v16 = vsub.f32 1.0, %v2318_v12  ;;  %v2542_v27 = vmul.f32 %v2315_v49, %v2199_v39  ;;  %vm2337_vm13 = vweird.f32 %v2288_v15 }
 0x4d2   :  { %v2208_v1 = vpop.f32.mrf.mxu2  ;;  %v2344_v57 = vor.u32 1.1754944e-38, %v2343_v60  ;;  %vm2342_vm0 = vcmp.eq.f32.partialorder %v2341_v33, 8.507059e+37 }
 0x4d3   :  { %v2320_v31 = vmul.f32 %v3201_v20, %v2319_v16  ;;  %v5195_v38 = vadd.f32 %v5176_v14, %v2208_v1 }
 0x4d5   :  { %v3203_v4 = vpop.eup %3202  ;;  %v2321_v9 = vadd.f32 %v3201_v20, %v2320_v31  ;;  %v2897_v48 = vmul.f32 -1.442695, %v5195_v38 }
 0x4d6   :  { %v3205_v18 = vpop.eup %3204  ;;  %v2289_v30 = vadd.f32 1.0, %v3203_v4 }
 0x4d7   :  { %v2325_v7 = vsel %vm2324_vm2, %v3201_v20, %v2321_v9  ;;  %v2333_v46 = vmul.f32 %v3205_v18, %v2288_v15  ;;  %3206 = vpow2.f32 %v2897_v48  ;;  %vm2338_vm10 = vweird.f32 %v3205_v18 }
 0x4d8   :  { %v2330_v43 = vsel %vm2327_vm9, %v2329_v29, %v2325_v7  ;;  %3208 = vrcp.f32 %v2289_v30  ;;  %vm2339_vm15 = vmor %vm2337_vm13, %vm2338_vm10  ;;  %v2356_v50 = vand.u32 2147483647, %v2289_v30  ;;  %vm2352_vm4 = vweird.f32 %v2289_v30 }
 0x4d9   :  { %v2543_v26 = vmul.f32 %v2330_v43, %v2201_v44  ;;  %v2334_v63 = vsub.f32 1.0, %v2333_v46  ;;  %v2358_v44 = vand.u32 2147483648, %v2289_v30 }
 0x4da   :  { %v2210_v5 = vpop.f32.mrf.mxu2  ;;  %vm2357_vm14 = vcmp.eq.f32.partialorder %v2356_v50, 8.507059e+37 }
 0x4db   :  { %v2558_v6 = vadd.f32 %v2543_v26, %v2542_v27  ;;  %v2335_v53 = vmul.f32 %v3205_v18, %v2334_v63  ;;  %v5199_v24 = vadd.f32 %v5176_v14, %v2210_v5  ;;  %v2359_v21 = vor.u32 1.1754944e-38, %v2358_v44 }
 0x4dd   :  { %v3207_v19 = vpop.eup %3206  ;;  %v2336_v23 = vadd.f32 %v3205_v18, %v2335_v53  ;;  %v2898_v25 = vmul.f32 -1.442695, %v5199_v24 }
 0x4de   :  { %v3209_v28 = vpop.eup %3208  ;;  %v2290_v55 = vadd.f32 1.0, %v3207_v19 }
 0x4df   :  { %v2340_v59 = vsel %vm2339_vm15, %v3205_v18, %v2336_v23  ;;  %v2348_v34 = vmul.f32 %v3209_v28, %v2289_v30  ;;  %3210 = vpow2.f32 %v2898_v25  ;;  %vm2353_vm12 = vweird.f32 %v3209_v28  ;;  %v2968_v23 = vld [vmem:[%s5480_s20 + $0x38] sm:$0xff] }
 0x4e0   :  { %v2345_v22 = vsel %vm2342_vm0, %v2344_v57, %v2340_v59  ;;  %3212 = vrcp.f32 %v2290_v55  ;;  %vm2354_vm11 = vmor %vm2352_vm4, %vm2353_vm12  ;;  %v2371_v20 = vand.u32 2147483647, %v2290_v55  ;;  %v2373_v15 = vand.u32 2147483648, %v2290_v55  ;;  %2699 = vmatpush.bf16.msrb.mxu1 %v2968_v23 }
 0x4e1   :  { %v2544_v39 = vmul.f32 %v2345_v22, %v5181_v58  ;;  %v2349_v61 = vsub.f32 1.0, %v2348_v34  ;;  %vm2367_vm1 = vweird.f32 %v2290_v55 }
 0x4e2   :  { %v2213_v3 = vpop.f32.mrf.mxu2  ;;  %v2374_v1 = vor.u32 1.1754944e-38, %v2373_v15  ;;  %vm2372_vm8 = vcmp.eq.f32.partialorder %v2371_v20, 8.507059e+37 }
 0x4e3   :  { %v2559_v42 = vadd.f32 %v2558_v6, %v2544_v39  ;;  %v2350_v10 = vmul.f32 %v3209_v28, %v2349_v61  ;;  %v5204_v11 = vadd.f32 %v5176_v14, %v2213_v3 }
 0x4e5   :  { %v3211_v0 = vpop.eup %3210  ;;  %v2351_v8 = vadd.f32 %v3209_v28, %v2350_v10  ;;  %v2899_v54 = vmul.f32 -1.442695, %v5204_v11  ;;  %v2967_v10 = vld [vmem:[%s5480_s20 + $0x30] sm:$0xff] }
 0x4e6   :  { %v3213_v37 = vpop.eup %3212  ;;  %v2291_v13 = vadd.f32 1.0, %v3211_v0  ;;  %2700 = vmatpush.bf16.msrb.mxu1 %v2967_v10 }
 0x4e7   :  { %v2355_v58 = vsel %vm2354_vm11, %v3209_v28, %v2351_v8  ;;  %v2363_v32 = vmul.f32 %v3213_v37, %v2290_v55  ;;  %3214 = vpow2.f32 %v2899_v54  ;;  %vm2368_vm5 = vweird.f32 %v3213_v37 }
 0x4e8   :  { %v2360_v41 = vsel %vm2357_vm14, %v2359_v21, %v2355_v58  ;;  %3216 = vrcp.f32 %v2291_v13  ;;  %vm2369_vm6 = vmor %vm2367_vm1, %vm2368_vm5  ;;  %v2388_v48 = vand.u32 2147483648, %v2291_v13  ;;  %v2386_v29 = vand.u32 2147483647, %v2291_v13 }
 0x4e9   :  { %v2545_v56 = vmul.f32 %v2360_v41, %v5185_v17  ;;  %v2364_v40 = vsub.f32 1.0, %v2363_v32  ;;  %vm2382_vm2 = vweird.f32 %v2291_v13 }
 0x4ea   :  { %v2215_v51 = vpop.f32.mrf.mxu2  ;;  %v2389_v43 = vor.u32 1.1754944e-38, %v2388_v48  ;;  %vm2387_vm10 = vcmp.eq.f32.partialorder %v2386_v29, 8.507059e+37  ;;  %v2965_v29 = vld [vmem:[%s5480_s20 + $0x20] sm:$0xff] }
 0x4eb   :  { %v2560_v12 = vadd.f32 %v2559_v42, %v2545_v56  ;;  %v2365_v2 = vmul.f32 %v3213_v37, %v2364_v40  ;;  %v5209_v45 = vadd.f32 %v5176_v14, %v2215_v51 }
 0x4ed   :  { %v3215_v16 = vpop.eup %3214  ;;  %v2366_v35 = vadd.f32 %v3213_v37, %v2365_v2  ;;  %v2900_v47 = vmul.f32 -1.442695, %v5209_v45 }
 0x4ee   :  { %v3217_v62 = vpop.eup %3216  ;;  %v2292_v52 = vadd.f32 1.0, %v3215_v16 }
 0x4ef   :  { %v2370_v17 = vsel %vm2369_vm6, %v3213_v37, %v2366_v35  ;;  %v2378_v31 = vmul.f32 %v3217_v62, %v2291_v13  ;;  %3218 = vpow2.f32 %v2900_v47  ;;  %vm2383_vm3 = vweird.f32 %v3217_v62 }
 0x4f0   :  { %v2375_v36 = vsel %vm2372_vm8, %v2374_v1, %v2370_v17  ;;  %3220 = vrcp.f32 %v2292_v52  ;;  %vm2384_vm9 = vmor %vm2382_vm2, %vm2383_vm3  ;;  %v2403_v5 = vand.u32 2147483648, %v2292_v52  ;;  %v2401_v19 = vand.u32 2147483647, %v2292_v52 }
 0x4f1   :  { %v2546_v4 = vmul.f32 %v2375_v36, %v5195_v38  ;;  %v2379_v9 = vsub.f32 1.0, %v2378_v31  ;;  %vm2397_vm15 = vweird.f32 %v2292_v52 }
 0x4f2   :  { %v2218_v25 = vpop.f32.mrf.mxu2  ;;  %v2404_v55 = vor.u32 1.1754944e-38, %v2403_v5  ;;  %vm2402_vm12 = vcmp.eq.f32.partialorder %v2401_v19, 8.507059e+37 }
 0x4f3   :  { %v2561_v18 = vadd.f32 %v2560_v12, %v2546_v4  ;;  %v2380_v49 = vmul.f32 %v3217_v62, %v2379_v9  ;;  %v2966_v12 = vld [vmem:[%s5480_s20 + $0x28] sm:$0xff] }
 0x4f4   :  { %2701 = vmatpush.bf16.msrb.mxu1 %v2966_v12 }
 0x4f5   :  { %v3219_v30 = vpop.eup %3218  ;;  %v2381_v7 = vadd.f32 %v3217_v62, %v2380_v49 }
 0x4f6   :  { %v3221_v46 = vpop.eup %3220  ;;  %v2293_v27 = vadd.f32 1.0, %v3219_v30 }
 0x4f7   :  { %v2385_v26 = vsel %vm2384_vm9, %v3217_v62, %v2381_v7  ;;  %v2393_v63 = vmul.f32 %v3221_v46, %v2292_v52  ;;  %vm2398_vm13 = vweird.f32 %v3221_v46 }
 0x4f8   :  { %v2390_v33 = vsel %vm2387_vm10, %v2389_v43, %v2385_v26  ;;  %3222 = vrcp.f32 %v2293_v27  ;;  %vm2399_vm0 = vmor %vm2397_vm15, %vm2398_vm13  ;;  %v2418_v61 = vand.u32 2147483648, %v2293_v27  ;;  %v2416_v3 = vand.u32 2147483647, %v2293_v27  ;;  %2702 = vmatpush.bf16.msrb.mxu1 %v2965_v29 }
 0x4f9   :  { %v2547_v38 = vmul.f32 %v2390_v33, %v5199_v24  ;;  %v2394_v60 = vsub.f32 1.0, %v2393_v63  ;;  %vm2412_vm11 = vweird.f32 %v2293_v27 }
 0x4fa   :  { %v2220_v42 = vpop.f32.mrf.mxu2  ;;  %v2419_v8 = vor.u32 1.1754944e-38, %v2418_v61  ;;  %vm2417_vm5 = vcmp.eq.f32.partialorder %v2416_v3, 8.507059e+37 }
 0x4fb   :  { %v2562_v6 = vadd.f32 %v2561_v18, %v2547_v38  ;;  %v2395_v53 = vmul.f32 %v3221_v46, %v2394_v60  ;;  %v5226_v13 = vadd.f32 %v5176_v14, %v2220_v42 }
 0x4fd   :  { %v2396_v28 = vadd.f32 %v3221_v46, %v2395_v53  ;;  %v2902_v56 = vmul.f32 -1.442695, %v5226_v13 }
 0x4fe   :  { %v3223_v57 = vpop.eup %3222 }
 0x4ff   :  { %v2400_v59 = vsel %vm2399_vm0, %v3221_v46, %v2396_v28  ;;  %v2408_v24 = vmul.f32 %v3223_v57, %v2293_v27  ;;  %vm2413_vm4 = vweird.f32 %v3223_v57 }
 0x500   :  { %v2405_v34 = vsel %vm2402_vm12, %v2404_v55, %v2400_v59  ;;  %vm2414_vm14 = vmor %vm2412_vm11, %vm2413_vm4 }
 0x501   :  { %v2548_v22 = vmul.f32 %v2405_v34, %v5204_v11  ;;  %v2409_v39 = vsub.f32 1.0, %v2408_v24  ;;  %v5222_v11 = vadd.f32 %v5176_v14, %v2218_v25 }
 0x502   :  { %v2223_v32 = vpop.f32.mrf.mxu2 }
 0x503   :  { %v2563_v50 = vadd.f32 %v2562_v6, %v2548_v22  ;;  %v2410_v44 = vmul.f32 %v3223_v57, %v2409_v39  ;;  %v2901_v41 = vmul.f32 -1.442695, %v5222_v11  ;;  %v5233_v40 = vadd.f32 %v5176_v14, %v2223_v32 }
 0x505   :  { %v2411_v0 = vadd.f32 %v3223_v57, %v2410_v44  ;;  %3224 = vpow2.f32 %v2901_v41  ;;  %v2903_v20 = vmul.f32 -1.442695, %v5233_v40 }
 0x506   :  { %3226 = vpow2.f32 %v2902_v56 }
 0x507   :  { %v2415_v54 = vsel %vm2414_vm14, %v3223_v57, %v2411_v0  ;;  %3228 = vpow2.f32 %v2903_v20 }
 0x508   :  { %v2420_v37 = vsel %vm2417_vm5, %v2419_v8, %v2415_v54 }
 0x509   :  { %v2549_v21 = vmul.f32 %v2420_v37, %v5209_v45 }
 0x50a   :  { %v2225_v15 = vpop.f32.mrf.mxu2 }
 0x50b   :  { %v5228_v58 = vadd.f32 %v2563_v50, %v2549_v21  ;;  %v5237_v51 = vadd.f32 %v5176_v14, %v2225_v15  ;;  %v3225_v2 = vpop.eup %3224 }
 0x50c   :  { %v3227_v16 = vpop.eup %3226  ;;  %v5243_v35 = vadd.f32 1.0, %v3225_v2 }
 0x50d   :  { %v2904_v45 = vmul.f32 -1.442695, %v5237_v51  ;;  %v5245_v47 = vadd.f32 1.0, %v3227_v16  ;;  %v3229_v62 = vpop.eup %3228  ;;  %v2565_v10 = vrot.slane %v5228_v58, 4 }
 0x50e   :  { %v5252_v17 = vadd.f32 1.0, %v3229_v62  ;;  %v2431_v24 = vand.u32 2147483647, %v5243_v35  ;;  %v2433_v22 = vand.u32 2147483648, %v5243_v35  ;;  %vm2427_vm8 = vweird.f32 %v5243_v35 }
 0x50f   :  { %3230 = vpow2.f32 %v2904_v45  ;;  %vm2442_vm9 = vweird.f32 %v5245_v47  ;;  %v2448_v54 = vand.u32 2147483648, %v5245_v47  ;;  %v2446_v41 = vand.u32 2147483647, %v5245_v47 }
 0x510   :  { %3232 = vrcp.f32 %v5243_v35  ;;  %vm5314_vm2 = vcmp.eq.f32.partialorder %v2431_v24, 8.507059e+37  ;;  %v2434_v21 = vor.u32 1.1754944e-38, %v2433_v22  ;;  %vm2457_vm0 = vweird.f32 %v5252_v17 }
 0x511   :  { %3234 = vrcp.f32 %v5245_v47  ;;  %v2449_v62 = vor.u32 1.1754944e-38, %v2448_v54  ;;  %vm2447_vm15 = vcmp.eq.f32.partialorder %v2446_v41, 8.507059e+37 }
 0x512   :  { %v2228_v1 = vpop.f32.mrf.mxu2 }
 0x513   :  { %v5248_v52 = vadd.f32 %v5176_v14, %v2228_v1  ;;  %v2463_v1 = vand.u32 2147483648, %v5252_v17 }
 0x515   :  { %v2905_v31 = vmul.f32 -1.442695, %v5248_v52  ;;  %v3231_v36 = vpop.eup %3230 }
 0x516   :  { %v5256_v4 = vpop.eup %3232  ;;  %v5258_v9 = vadd.f32 1.0, %v3231_v36 }
 0x517   :  { %3236 = vpow2.f32 %v2905_v31  ;;  %v5260_v18 = vpop.eup %3234  ;;  %v2423_v7 = vmul.f32 %v5256_v4, %v5243_v35  ;;  %vm2428_vm1 = vweird.f32 %v5256_v4  ;;  %v2461_v31 = vand.u32 2147483647, %v5252_v17 }
 0x518   :  { %3238 = vrcp.f32 %v5252_v17  ;;  %v2438_v43 = vmul.f32 %v5260_v18, %v5245_v47  ;;  %vm2443_vm6 = vweird.f32 %v5260_v18  ;;  %vm5310_vm3 = vmor %vm2427_vm8, %vm2428_vm1  ;;  %v5344_v47 = vadd.f32 %v2565_v10, %v5228_v58  ;;  %v2990_v10 = vld [vmem:[%s5477_s17] ss:$0 sm:$0xff] }
 0x519   :  { %3240 = vrcp.f32 %v5258_v9  ;;  %v2424_v63 = vsub.f32 1.0, %v2423_v7  ;;  %vm5325_vm10 = vmor %vm2442_vm9, %vm2443_vm6  ;;  %vm2462_vm11 = vcmp.eq.f32.partialorder %v2461_v31, 8.507059e+37  ;;  %vm2472_vm14 = vweird.f32 %v5258_v9 }
 0x51a   :  { %v2230_v48 = vpop.f32.mrf.mxu2  ;;  %v2439_v33 = vsub.f32 1.0, %v2438_v43  ;;  %v2567_v7 = vrot.slane %v5344_v47, 2  ;;  %v2478_v43 = vand.u32 2147483648, %v5258_v9 }
 0x51b   :  { %v5263_v49 = vadd.f32 %v5176_v14, %v2230_v48  ;;  %v2425_v19 = vmul.f32 %v5256_v4, %v2424_v63 }
 0x51c   :  { %v2440_v25 = vmul.f32 %v5260_v18, %v2439_v33  ;;  %v2568_v31 = vadd.f32 %v2567_v7, %v5344_v47  ;;  %v2961_v47 = vld [vmem:[%s5480_s20] sm:$0xff] }
 0x51d   :  { %v3237_v30 = vpop.eup %3236  ;;  %v2906_v46 = vmul.f32 -1.442695, %v5263_v49  ;;  %v2426_v34 = vadd.f32 %v5256_v4, %v2425_v19 }
 0x51e   :  { %v5274_v27 = vadd.f32 1.0, %v3237_v30  ;;  %v5276_v26 = vpop.eup %3238  ;;  %v2441_v39 = vadd.f32 %v5260_v18, %v2440_v25 }
 0x51f   :  { %3242 = vpow2.f32 %v2906_v46  ;;  %v2453_v38 = vmul.f32 %v5276_v26, %v5252_v17  ;;  %v5284_v6 = vpop.eup %3240  ;;  %vm2458_vm13 = vweird.f32 %v5276_v26  ;;  %v2464_v46 = vor.u32 1.1754944e-38, %v2463_v1  ;;  %v2962_v1 = vld [vmem:[%s5480_s20 + $0x8] sm:$0xff] }
 0x520   :  { %3244 = vrcp.f32 %v5274_v27  ;;  %v2468_v55 = vmul.f32 %v5284_v6, %v5258_v9  ;;  %v2445_v15 = vsel %vm5325_vm10, %v5260_v18, %v2441_v39  ;;  %vm5354_vm12 = vmor %vm2457_vm0, %vm2458_vm13  ;;  %v2476_v18 = vand.u32 2147483647, %v5258_v9 }
 0x521   :  { %v2454_v28 = vsub.f32 1.0, %v2453_v38  ;;  %v2450_v48 = vsel %vm2447_vm15, %v2449_v62, %v2445_v15  ;;  %vm2473_vm4 = vweird.f32 %v5284_v6  ;;  %vm2487_vm8 = vweird.f32 %v5274_v27 }
 0x522   :  { %v2233_v60 = vpop.f32.mrf.mxu2  ;;  %v2469_v44 = vsub.f32 1.0, %v2468_v55  ;;  %vm5371_vm5 = vmor %vm2472_vm14, %vm2473_vm4  ;;  %vm2477_vm1 = vcmp.eq.f32.partialorder %v2476_v18, 8.507059e+37  ;;  %v2493_v55 = vand.u32 2147483648, %v5274_v27 }
 0x523   :  { %v5282_v5 = vadd.f32 %v5176_v14, %v2233_v60  ;;  %v2455_v61 = vmul.f32 %v5276_v26, %v2454_v28  ;;  %v2551_v60 = vmul.f32 %v2450_v48, %v5226_v13  ;;  %v2479_v28 = vor.u32 1.1754944e-38, %v2478_v43 }
 0x524   :  { %v2470_v45 = vmul.f32 %v5284_v6, %v2469_v44  ;;  %v2491_v13 = vand.u32 2147483647, %v5274_v27 }
 0x525   :  { %v3243_v53 = vpop.eup %3242  ;;  %v2907_v23 = vmul.f32 -1.442695, %v5282_v5  ;;  %v2456_v12 = vadd.f32 %v5276_v26, %v2455_v61 }
 0x526   :  { %v5289_v57 = vadd.f32 1.0, %v3243_v53  ;;  %v5293_v59 = vpop.eup %3244  ;;  %v2471_v30 = vadd.f32 %v5284_v6, %v2470_v45  ;;  %vm2492_vm13 = vcmp.eq.f32.partialorder %v2491_v13, 8.507059e+37  ;;  %v2988_v13 = vld [vmem:[%s5478_s18] ss:$0 sm:$0xff] }
 0x527   :  { %3246 = vpow2.f32 %v2907_v23  ;;  %v2483_v3 = vmul.f32 %v5293_v59, %v5274_v27  ;;  %v2460_v29 = vsel %vm5354_vm12, %v5276_v26, %v2456_v12  ;;  %vm2488_vm6 = vweird.f32 %v5293_v59 }
 0x528   :  { %3248 = vrcp.f32 %v5289_v57  ;;  %v2465_v53 = vsel %vm2462_vm11, %v2464_v46, %v2460_v29  ;;  %vm2502_vm9 = vweird.f32 %v5289_v57  ;;  %v2508_v61 = vand.u32 2147483648, %v5289_v57 }
 0x529   :  { %v2484_v16 = vsub.f32 1.0, %v2483_v3  ;;  %v2494_v3 = vor.u32 1.1754944e-38, %v2493_v55 }
 0x52a   :  { %v2235_v50 = vpop.f32.mrf.mxu2  ;;  %v2509_v15 = vor.u32 1.1754944e-38, %v2508_v61 }
 0x52b   :  { %v5307_v42 = vadd.f32 %v5176_v14, %v2235_v50  ;;  %v2430_v14 = vsel %vm5310_vm3, %v5256_v4, %v2426_v34  ;;  %v2485_v17 = vmul.f32 %v5293_v59, %v2484_v16  ;;  %v2552_v34 = vmul.f32 %v2465_v53, %v5233_v40  ;;  %v2964_v40 = vld [vmem:[%s5480_s20 + $0x18] sm:$0xff] }
 0x52c   :  { %v2435_v4 = vsel %vm5314_vm2, %v2434_v21, %v2430_v14  ;;  %vm5390_vm2 = vmor %vm2487_vm8, %vm2488_vm6  ;;  %v2506_v50 = vand.u32 2147483647, %v5289_v57  ;;  %2703 = vmatpush.bf16.msrb.mxu1 %v2964_v40 }
 0x52d   :  { %v3247_v37 = vpop.eup %3246  ;;  %v2908_v56 = vmul.f32 -1.442695, %v5307_v42  ;;  %v2550_v33 = vmul.f32 %v2435_v4, %v5222_v11  ;;  %v2475_v11 = vsel %vm5371_vm5, %v5284_v6, %v2471_v30  ;;  %v2486_v25 = vadd.f32 %v5293_v59, %v2485_v17 }
 0x52e   :  { %v5331_v20 = vpop.eup %3248  ;;  %v5338_v2 = vadd.f32 1.0, %v3247_v37  ;;  %v2480_v22 = vsel %vm2477_vm1, %v2479_v28, %v2475_v11  ;;  %v2963_v37 = vld [vmem:[%s5480_s20 + $0x10] sm:$0xff]  ;;  %vm2507_vm4 = vcmp.eq.f32.partialorder %v2506_v50, 8.507059e+37  ;;  %v2989_v50 = vld [vmem:[%s5476_s16] ss:$0 sm:$0xff] }
 0x52f   :  { %v2498_v35 = vmul.f32 %v5331_v20, %v5289_v57  ;;  %3250 = vpow2.f32 %v2908_v56  ;;  %vm2503_vm3 = vweird.f32 %v5331_v20  ;;  %v2490_v27 = vsel %vm5390_vm2, %v5293_v59, %v2486_v25  ;;  %v2592_v57 = vld [vmem:[%s5479_s19] sm:$0x1] }
 0x530   :  { %3252 = vrcp.f32 %v5338_v2  ;;  %vm5403_vm15 = vmor %vm2502_vm9, %vm2503_vm3  ;;  %vm2517_vm0 = vweird.f32 %v5338_v2  ;;  %v2523_v0 = vand.u32 2147483648, %v5338_v2  ;;  %v2521_v54 = vand.u32 2147483647, %v5338_v2  ;;  %2704 = vmatpush.bf16.msrb.mxu1 %v2963_v37 }
 0x531   :  { %v2499_v36 = vsub.f32 1.0, %v2498_v35  ;;  %v2593_v14 = vadd.f32 1e-05, %v2592_v57  ;;  %v2571_v32 = vadd.f32 %v2551_v60, %v2550_v33  ;;  %v2553_v41 = vmul.f32 %v2480_v22, %v5237_v51 }
 0x532   :  { %v2495_v56 = vsel %vm2492_vm13, %v2494_v3, %v2490_v27  ;;  %v2524_v35 = vor.u32 1.1754944e-38, %v2523_v0  ;;  %vm2522_vm11 = vcmp.eq.f32.partialorder %v2521_v54, 8.507059e+37 }
 0x533   :  { %v2500_v38 = vmul.f32 %v5331_v20, %v2499_v36  ;;  %v2572_v45 = vadd.f32 %v2571_v32, %v2552_v34  ;;  %v2554_v62 = vmul.f32 %v2495_v56, %v5248_v52  ;;  %vm2600_vm8 = vweird.f32 %v2593_v14 }
 0x534   :  { %2705 = vmatpush.bf16.msrb.mxu1 %v2962_v1 }
 0x535   :  { %v3251_v63 = vpop.eup %3250  ;;  %v2501_v24 = vadd.f32 %v5331_v20, %v2500_v38  ;;  %v2573_v36 = vadd.f32 %v2572_v45, %v2553_v41 }
 0x536   :  { %v3253_v26 = vpop.eup %3252  ;;  %v5375_v23 = vadd.f32 1.0, %v3251_v63 }
 0x537   :  { %v2513_v9 = vmul.f32 %v3253_v26, %v5338_v2  ;;  %vm2518_vm10 = vweird.f32 %v3253_v26  ;;  %v2505_v59 = vsel %vm5403_vm15, %v5331_v20, %v2501_v24  ;;  %v2574_v30 = vadd.f32 %v2573_v36, %v2554_v62 }
 0x538   :  { %3254 = vrcp.f32 %v5375_v23  ;;  %vm5421_vm12 = vmor %vm2517_vm0, %vm2518_vm10  ;;  %v2510_v16 = vsel %vm2507_vm4, %v2509_v15, %v2505_v59  ;;  %v2538_v48 = vand.u32 2147483648, %v5375_v23  ;;  %v2536_v52 = vand.u32 2147483647, %v5375_v23  ;;  %2706 = vmatpush.bf16.msrb.mxu1 %v2961_v47  ;;  %v2991_v15 = vld [vmem:[%s5481_s21] ss:$0 sm:$0xff] }
 0x539   :  { %v2514_v6 = vsub.f32 1.0, %v2513_v9  ;;  %3256 = vrsqrt.f32 %v2593_v14  ;;  %v2555_v58 = vmul.f32 %v2510_v16, %v5263_v49  ;;  %vm2532_vm5 = vweird.f32 %v5375_v23 }
 0x53a   :  { %v2539_v7 = vor.u32 1.1754944e-38, %v2538_v48  ;;  %v2569_v49 = vrot.slane %v2568_v31, 1  ;;  %vm2537_vm6 = vcmp.eq.f32.partialorder %v2536_v52, 8.507059e+37 }
 0x53b   :  { %v2515_v44 = vmul.f32 %v3253_v26, %v2514_v6  ;;  %v2575_v63 = vadd.f32 %v2574_v30, %v2555_v58 }
 0x53c   :  { %v2570_v19 = vadd.f32 %v2569_v49, %v2568_v31 }
 0x53d   :  { %v2516_v8 = vadd.f32 %v3253_v26, %v2515_v44 }
 0x53e   :  { %v3255_v21 = vpop.eup %3254  ;;  %v2584_v28 = vmul.f32 0.015625, %v2570_v19 }
 0x53f   :  { %v2520_v20 = vsel %vm5421_vm12, %v3253_v26, %v2516_v8  ;;  %v2528_v2 = vmul.f32 %v3255_v21, %v5375_v23  ;;  %vm2533_vm14 = vweird.f32 %v3255_v21  ;;  %v3257_v29 = vpop.eup %3256 }
 0x540   :  { %v2525_v4 = vsel %vm2522_vm11, %v2524_v35, %v2520_v20  ;;  %vm2534_vm1 = vmor %vm2532_vm5, %vm2533_vm14  ;;  %v2595_v43 = vmul.f32 %v3257_v29, %v2593_v14  ;;  %vm2601_vm3 = vweird.f32 %v3257_v29  ;;  %v2590_v34 = vsub.f32 %v2584_v28, %v2988_v13 }
 0x541   :  { %v2529_v51 = vsub.f32 1.0, %v2528_v2  ;;  %v2556_v17 = vmul.f32 %v2525_v4, %v5282_v5  ;;  %vm2602_vm2 = vmor %vm2600_vm8, %vm2601_vm3 }
 0x542   :  { %v2596_v26 = vmul.f32 %v3257_v29, %v2595_v43 }
 0x543   :  { %v2530_v18 = vmul.f32 %v3255_v21, %v2529_v51  ;;  %v2576_v60 = vadd.f32 %v2575_v63, %v2556_v17 }
 0x544   :  { %v2597_v53 = vmul.f32 0.5, %v2596_v26 }
 0x545   :  { %v2531_v46 = vadd.f32 %v3255_v21, %v2530_v18 }
 0x546   :  { %v2598_v11 = vsub.f32 1.5, %v2597_v53 }
 0x547   :  { %v2535_v33 = vsel %vm2534_vm1, %v3255_v21, %v2531_v46 }
 0x548   :  { %v2540_v38 = vsel %vm2537_vm6, %v2539_v7, %v2535_v33  ;;  %v2599_v9 = vmul.f32 %v3257_v29, %v2598_v11 }
 0x549   :  { %v2557_v5 = vmul.f32 %v2540_v38, %v5307_v42 }
 0x54a   :  { %v2603_v24 = vsel %vm2602_vm2, %v3257_v29, %v2599_v9 }
 0x54b   :  { %v2577_v23 = vadd.f32 %v2576_v60, %v2557_v5  ;;  %v2605_v22 = vperm.slane %v2603_v24, 0 }
 0x54d   :  { %v2578_v25 = vrot.slane %v2577_v23, 4  ;;  %v2607_v27 = vmul.f32 %v2605_v22, %v2590_v34 }
 0x54f   :  { %v2579_v55 = vadd.f32 %v2578_v25, %v2577_v23  ;;  %v2613_v3 = vmul.f32 %v2989_v50, %v2607_v27 }
 0x551   :  { %v2580_v6 = vrot.slane %v2579_v55, 2  ;;  %v2619_v59 = vadd.f32 %v2990_v10, %v2613_v3 }
 0x553   :  { %v2581_v42 = vadd.f32 %v2580_v6, %v2579_v55  ;;  %v2621_v54 = vpack.c.bf16 %v2619_v59, %v2619_v59 }
 0x555   :  { %v2582_v39 = vrot.slane %v2581_v42, 1  ;;  %v2645_v21 = vunpack.c.l.b16 %v2621_v54 }
 0x557   :  { %v2583_v61 = vadd.f32 %v2582_v39, %v2581_v42 }
 0x559   :  { %v2585_v44 = vmul.f32 0.015625, %v2583_v61 }
 0x55b   :  { %v2591_v40 = vsub.f32 %v2585_v44, %v2988_v13 }
 0x55d   :  { %v2608_v0 = vmul.f32 %v2605_v22, %v2591_v40 }
 0x55f   :  { %v2614_v57 = vmul.f32 %v2989_v50, %v2608_v0 }
 0x561   :  { %v2620_v8 = vadd.f32 %v2990_v10, %v2614_v57 }
 0x563   :  { %v2622_v37 = vpack.c.bf16 %v2620_v8, %v2620_v8 }
 0x565   :  { %v2646_v14 = vunpack.c.l.b16 %v2622_v37 }
 0x567   :  { %v2647_v32 = vrot.slane %v2646_v14, 7 }
 0x569   :  { %v2648_v41 = vsel %vm1889_vm7, %v2647_v32, %v2645_v21 }
 0x56a   :  { %v2649_v56 = vpack.c.b16 %v2648_v41, %v2648_v41 }
 0x56c   :  { %2707 = vmatmul.bf16.vlgmr.msrb.gmra.mxu1 %v2649_v56 }
 0x5e9   :  { %v2708_v12 = vpop.f32.mrf.mxu1 }
 0x5ea   :  { %v2709_v20 = vadd.f32 %v2991_v15, %v2708_v12 }
 0x5ec   :  { %2712 = vst [vmem:[#allocation3] sm:$0x3] %v2709_v20 }
 0x5ed   :  { %2723 = dma.vmem_to_hbm [thread:$0]  %s2719_s14, 32, %s2721_s23, [#allocation4]  }
 0x5f1   :  { %v2710_v2 = vpop.f32.mrf.mxu1 }
 0x5f2   :  { %3291 = dma.done.wait [#allocation4], 32  }
 0x5f3   :  { %3292 = vsyncadd [#allocation4], 4294967264 }
 0x5f4   :  { %2728 = vsyncpa [#allocation4], 1 }

</bundles_post_ra>
